<compile_context>
chip_gen: v7x
topology: tpu7x:2x2x1
jax: 0.10.0
libtpu: 0.0.40
codegen_flags: <defaults>
</compile_context>

<pallas_src>
import jax
import jax.numpy as jnp
from jax import lax
from jax.experimental import pallas as pl
from jax.experimental.pallas import tpu as pltpu

EPS = 1e-5


# ---------------------------------------------------------------------------
# Weight folding (tiny tensors, XLA glue)
# ---------------------------------------------------------------------------
def _embed3(w_oihw, row_off, col_off):
    """Zero-embed a (Cout,Cin,kh,kw) conv weight into a 3x3 window -> (3,3,Cin,Cout)."""
    Co, Ci, kh, kw = w_oihw.shape
    full = jnp.zeros((3, 3, Ci, Co), jnp.float32)
    return full.at[row_off:row_off + kh, col_off:col_off + kw].set(
        jnp.transpose(w_oihw, (2, 3, 1, 0)).astype(jnp.float32))


def _branch_weight(w33, w23, w32, w22):
    # sub-pixel group g = 2*dy + dx of the 2x upsampled output:
    #   g0 (0,0) <- 3x3, g1 (0,1) <- 3x2, g2 (1,0) <- 2x3, g3 (1,1) <- 2x2
    return jnp.stack([_embed3(w33, 0, 0), _embed3(w32, 0, 1),
                      _embed3(w23, 1, 0), _embed3(w22, 1, 1)], axis=3)  # (3,3,Cin,4,Cout)


def _combined_branch_weight(p):
    wA = _branch_weight(p["w1"], p["w2"], p["w3"], p["w4"])
    wB = _branch_weight(p["w5"], p["w6"], p["w7"], p["w8"])
    w = jnp.concatenate([wA, wB], axis=3)                  # (3,3,Cin,8,Cout)
    Cin, Cout = w.shape[2], w.shape[4]
    return w.reshape(9 * Cin, 8 * Cout).astype(jnp.bfloat16)


def _conv9_subpixel_weight(w9):
    """conv9 (3x3, pad 1, over the 2x-upsampled image) as a 3x3 conv over the
    sub-pixel layout tensor (..., H, W, 4C) -> folded (9*4C, 4C) weight."""
    C = w9.shape[0]
    w_hwio = jnp.transpose(w9, (2, 3, 1, 0)).astype(jnp.float32)   # (3,3,ci,co)
    full = jnp.zeros((3, 3, 4, C, 4, C), jnp.float32)   # (dh, dw, g_in, ci, g_out, co)
    for a in range(2):
        for b in range(2):
            g_out = 2 * a + b
            for dy in (-1, 0, 1):
                for dx in (-1, 0, 1):
                    sh, ap = divmod(a + dy, 2)
                    sw, bp = divmod(b + dx, 2)
                    g_in = 2 * ap + bp
                    full = full.at[sh + 1, sw + 1, g_in, :, g_out, :].set(
                        w_hwio[dy + 1, dx + 1])
    return full.reshape(9 * 4 * C, 4 * C).astype(jnp.bfloat16)


# ---------------------------------------------------------------------------
# VMEM budgeting
# ---------------------------------------------------------------------------
def _vmem_capacity_bytes():
    try:
        v = int(pltpu.get_tpu_info().vmem_capacity_bytes)
        if v > 0:
            return v
    except Exception:
        pass
    return 64 * 1024 * 1024            # v7x-safe fallback


def _largest_row_tile(H, W, fits):
    """Largest divisor d of H with (d*W) sublane-valid whose footprint fits."""
    cands = [d for d in range(1, H + 1)
             if H % d == 0 and ((d * W) % 8 == 0 or d == H)]
    if not cands:
        cands = [H]
    best = cands[0]
    for d in cands:
        if fits(d):
            best = d
    return best


def _fp_branch(rows, W, Cin, Cout):
    M, K = rows * W, 9 * Cin
    C4, C8 = 4 * Cout, 8 * Cout
    return (2 * M * K * 2 + 2 * K * C8 * 2        # double-buffered inputs
            + 2 * 2 * M * C4 * 2                  # double-buffered bf16 outputs
            + M * C8 * 4 + M * K * 2)             # f32 acc + loaded-value slack


def _fp_conv9(rows, W, Cout):
    M = rows * W
    C4 = 4 * Cout
    K = 9 * C4
    return (2 * M * C4 * 2 + 2 * K * C4 * 2       # inputs (tile + weight)
            + 2 * M * C4 * 2                      # bf16 c9 output
            + (rows + 2) * (W + 2) * C4 * 2       # activated halo scratch
            + M * K * 2                           # patch scratch
            + M * C4 * 4 + M * K * 2 + M * C4 * 4)  # value slack


def _fp_epilogue(rows, W, Cout):
    M = rows * W
    C4 = 4 * Cout
    return 2 * 2 * M * C4 * 2 + 2 * M * C4 * 4 + 3 * M * C4 * 4


def _bn_affine(s, ss, count, gamma, beta):
    mean = s / count
    var = jnp.maximum(ss / count - mean * mean, 0.0)   # biased variance, clamped >= 0
    scale = gamma * lax.rsqrt(var + EPS)
    return scale, beta - mean * scale


# ---------------------------------------------------------------------------
# Kernel 1: fused dual-branch unpool_as_conv (lane-dense matmul + BN partial stats)
# ---------------------------------------------------------------------------
def _make_branch_kernel(C4):
    def kernel(p_ref, w_ref, b1_ref, b2_ref, st_ref):
        acc = jnp.dot(p_ref[0], w_ref[...],
                      preferred_element_type=jnp.float32)         # (M, 8*Cout) f32
        st_ref[0, 0, 0:1, :] = jnp.sum(acc, axis=0, keepdims=True)
        st_ref[0, 0, 1:2, :] = jnp.sum(acc * acc, axis=0, keepdims=True)
        b1_ref[0] = acc[:, :C4].astype(jnp.bfloat16)
        b2_ref[0] = acc[:, C4:].astype(jnp.bfloat16)
    return kernel


# ---------------------------------------------------------------------------
# Kernel 2: conv9 over the sub-pixel layout, BN1+ReLU fused on the halo-tiled read
# ---------------------------------------------------------------------------
def _make_conv9_kernel(rows, W, C4):
    tHp, Wp = rows + 2, W + 2
    M = rows * W
    K = 9 * C4

    def kernel(bm_ref, bt_ref, bb_ref, w_ref, aff_ref, c9_ref, st_ref,
               ybuf, patch):
        t = pl.program_id(1)
        last = pl.num_programs(1) - 1
        sc = aff_ref[0:1, :].reshape(1, 1, C4)
        sh = aff_ref[1:2, :].reshape(1, 1, C4)

        # Interior rows: BN1 + ReLU applied on the read path (f32 math, bf16 store).
        y_mid = jnp.maximum(bm_ref[0].astype(jnp.float32) * sc + sh, 0.0)
        ybuf[1:1 + rows, 1:1 + W, :] = y_mid.astype(jnp.bfloat16)

        # Halo rows fetched via the extra BlockSpecs; zeroed at the image border
        # (conv9 zero-pads the *activated* map).
        top = jnp.maximum(bt_ref[0].astype(jnp.float32) * sc + sh, 0.0)
        top = jnp.where(t == 0, jnp.zeros_like(top), top)
        ybuf[0:1, 1:1 + W, :] = top.astype(jnp.bfloat16)
        bot = jnp.maximum(bb_ref[0].astype(jnp.float32) * sc + sh, 0.0)
        bot = jnp.where(t == last, jnp.zeros_like(bot), bot)
        ybuf[tHp - 1:tHp, 1:1 + W, :] = bot.astype(jnp.bfloat16)

        # Halo columns: two narrow zero stores (no full-tile iota/where masking).
        ybuf[:, 0:1, :] = jnp.zeros((tHp, 1, C4), jnp.bfloat16)
        ybuf[:, Wp - 1:Wp, :] = jnp.zeros((tHp, 1, C4), jnp.bfloat16)

        # im2col over the sub-pixel layout; every tap offset is 128-lane aligned.
        for ky in range(3):
            for kx in range(3):
                k = ky * 3 + kx
                patch[:, :, k * C4:(k + 1) * C4] = ybuf[ky:ky + rows, kx:kx + W, :]

        acc = jnp.dot(patch[...].reshape(M, K), w_ref[...],
                      preferred_element_type=jnp.float32)          # (M, 4*Cout) f32
        st_ref[0, 0, 0:1, :] = jnp.sum(acc, axis=0, keepdims=True)
        st_ref[0, 0, 1:2, :] = jnp.sum(acc * acc, axis=0, keepdims=True)
        c9_ref[0] = acc.astype(jnp.bfloat16)

    return kernel


# ---------------------------------------------------------------------------
# Kernel 3: bn2(conv9) + bn1_2(branch 2) residual + final ReLU
# ---------------------------------------------------------------------------
def _epilogue_kernel(c9_ref, b2_ref, aff_ref, out_ref):
    s9 = aff_ref[0:1, :]
    h9 = aff_ref[1:2, :]
    s2 = aff_ref[2:3, :]
    h2 = aff_ref[3:4, :]
    o = (c9_ref[0].astype(jnp.float32) * s9 + h9
         + b2_ref[0].astype(jnp.float32) * s2 + h2)
    out_ref[0] = jnp.maximum(o, 0.0)


# ---------------------------------------------------------------------------
# Full forward pass
# ---------------------------------------------------------------------------
def fast_up_project_block(x_nchw, params):
    N, Cin, H, W = x_nchw.shape
    Cout = params["w1"].shape[0]
    C4, C8 = 4 * Cout, 8 * Cout
    K1 = 9 * Cin
    HW = H * W

    vmem = _vmem_capacity_bytes()
    vlimit = max(32 << 20, min(int(0.65 * vmem), 80 << 20))
    budget = int(0.7 * vlimit)
    cp = pltpu.CompilerParams(dimension_semantics=("parallel", "parallel"),
                              vmem_limit_bytes=vlimit)

    # ---- glue: 3x3 im2col of x (K folded for a single lane-dense MXU matmul) ----
    x = jnp.transpose(x_nchw, (0, 2, 3, 1)).astype(jnp.float32)        # NHWC
    xp = jnp.pad(x, ((0, 0), (1, 1), (1, 1), (0, 0)))
    patches = jnp.concatenate(
        [xp[:, ky:ky + H, kx:kx + W, :] for ky in range(3) for kx in range(3)],
        axis=-1).reshape(N, HW, K1).astype(jnp.bfloat16)

    w_all = _combined_branch_weight(params)                            # (9*Cin, 8*Cout)
    w9sub = _conv9_subpixel_weight(params["w9"])                       # (9*4C, 4C)

    # ---- kernel 1: both branches, raw conv (bf16) + BN partial stats (f32) ------
    r1 = _largest_row_tile(H, W, lambda d: _fp_branch(d, W, Cin, Cout) <= budget)
    T1, M1 = H // r1, r1 * W
    b1, b2, statsA = pl.pallas_call(
        _make_branch_kernel(C4),
        out_shape=(jax.ShapeDtypeStruct((N, HW, C4), jnp.bfloat16),
                   jax.ShapeDtypeStruct((N, HW, C4), jnp.bfloat16),
                   jax.ShapeDtypeStruct((N, T1, 2, C8), jnp.float32)),
        grid=(N, T1),
        in_specs=[pl.BlockSpec((1, M1, K1), lambda n, t: (n, t, 0)),
                  pl.BlockSpec((K1, C8), lambda n, t: (0, 0))],
        out_specs=(pl.BlockSpec((1, M1, C4), lambda n, t: (n, t, 0)),
                   pl.BlockSpec((1, M1, C4), lambda n, t: (n, t, 0)),
                   pl.BlockSpec((1, 1, 2, C8), lambda n, t: (n, t, 0, 0))),
        compiler_params=cp,
    )(patches, w_all)

    # ---- global BN statistics for both branch BatchNorms (tiny, XLA) ------------
    cnt = float(N * H * W * 4)
    sA = statsA.sum(axis=(0, 1)).reshape(2, 8, Cout)
    scale1, shift1 = _bn_affine(sA[0, :4].sum(0), sA[1, :4].sum(0), cnt,
                                params["g1_1"], params["b1_1"])
    scale2, shift2 = _bn_affine(sA[0, 4:].sum(0), sA[1, 4:].sum(0), cnt,
                                params["g1_2"], params["b1_2"])
    aff1 = jnp.stack([jnp.tile(scale1, 4), jnp.tile(shift1, 4)])       # (2, 4C) f32

    # ---- kernel 2: conv9 in sub-pixel space (BN1+ReLU fused, BlockSpec halo) ----
    b1_img = b1.reshape(N, H, W, C4)                                   # free reshape
    r2 = _largest_row_tile(H, W, lambda d: _fp_conv9(d, W, Cout) <= budget)
    T2, M2 = H // r2, r2 * W
    c9, statsB = pl.pallas_call(
        _make_conv9_kernel(r2, W, C4),
        out_shape=(jax.ShapeDtypeStruct((N, HW, C4), jnp.bfloat16),
                   jax.ShapeDtypeStruct((N, T2, 2, C4), jnp.float32)),
        grid=(N, T2),
        in_specs=[
            pl.BlockSpec((1, r2, W, C4), lambda n, t: (n, t, 0, 0)),
            pl.BlockSpec((1, 1, W, C4),
                         lambda n, t: (n, jnp.maximum(t * r2 - 1, 0), 0, 0)),
            pl.BlockSpec((1, 1, W, C4),
                         lambda n, t: (n, jnp.minimum((t + 1) * r2, H - 1), 0, 0)),
            pl.BlockSpec((9 * C4, C4), lambda n, t: (0, 0)),
            pl.BlockSpec((2, C4), lambda n, t: (0, 0)),
        ],
        out_specs=(pl.BlockSpec((1, M2, C4), lambda n, t: (n, t, 0)),
                   pl.BlockSpec((1, 1, 2, C4), lambda n, t: (n, t, 0, 0))),
        scratch_shapes=[pltpu.VMEM((r2 + 2, W + 2, C4), jnp.bfloat16),
                        pltpu.VMEM((r2, W, 9 * C4), jnp.bfloat16)],
        compiler_params=cp,
    )(b1_img, b1_img, b1_img, w9sub, aff1)

    sB = statsB.sum(axis=(0, 1)).reshape(2, 4, Cout)
    scale9, shift9 = _bn_affine(sB[0].sum(0), sB[1].sum(0), cnt,
                                params["g2"], params["b2"])
    affC = jnp.stack([jnp.tile(scale9, 4), jnp.tile(shift9, 4),
                      jnp.tile(scale2, 4), jnp.tile(shift2, 4)])       # (4, 4C) f32

    # ---- kernel 3: bn2 + residual + ReLU (lane-dense) ----------------------------
    r3 = _largest_row_tile(H, W, lambda d: _fp_epilogue(d, W, Cout) <= budget)
    T3, M3 = H // r3, r3 * W
    out_sub = pl.pallas_call(
        _epilogue_kernel,
        out_shape=jax.ShapeDtypeStruct((N, HW, C4), jnp.float32),
        grid=(N, T3),
        in_specs=[pl.BlockSpec((1, M3, C4), lambda n, t: (n, t, 0)),
                  pl.BlockSpec((1, M3, C4), lambda n, t: (n, t, 0)),
                  pl.BlockSpec((4, C4), lambda n, t: (0, 0))],
        out_specs=pl.BlockSpec((1, M3, C4), lambda n, t: (n, t, 0)),
        compiler_params=cp,
    )(c9, b2, affC)

    # depth-to-space + NCHW (free reshapes + one XLA transpose of the output).
    # TODO(synk): move this permute into the epilogue kernel (direct NCHW block
    # writes) to remove the last full-size HBM transpose pass.
    out6 = out_sub.reshape(N, H, W, 2, 2, Cout)
    return jnp.transpose(out6, (0, 5, 1, 3, 2, 4)).reshape(N, Cout, 2 * H, 2 * W)


# ---------------------------------------------------------------------------
# Pure-JAX reference (mirrors the PyTorch forward in train mode).
# quantize=True rounds values to bf16 at the same points as the Pallas path
# (MXU operands and bf16-stored intermediates); BN stats use unrounded values,
# matching the kernels' two-pass statistics.
# ---------------------------------------------------------------------------
def _conv_nhwc(x, w_oihw, pad):
    return lax.conv_general_dilated(
        x, jnp.transpose(w_oihw, (2, 3, 1, 0)), (1, 1), pad,
        dimension_numbers=("NHWC", "HWIO", "NHWC"),
        precision=lax.Precision.HIGHEST)


def reference(x_nchw, p, quantize=False):
    q = ((lambda a: a.astype(jnp.bfloat16).astype(jnp.float32))
         if quantize else (lambda a: a.astype(jnp.float32)))
    x = q(jnp.transpose(x_nchw, (0, 2, 3, 1)).astype(jnp.float32))
    N, H, W, _ = x.shape
    C = p["w1"].shape[0]

    def bn(raw, g, b):
        mean = jnp.mean(raw, axis=(0, 1, 2), keepdims=True)
        var = jnp.mean((raw - mean) ** 2, axis=(0, 1, 2), keepdims=True)
        return (q(raw) - mean) * lax.rsqrt(var + EPS) * g + b

    def unpool(wa, wb, wc, wd, g, b, relu):
        o1 = _conv_nhwc(x, q(wa), ((1, 1), (1, 1)))
        o2 = _conv_nhwc(x, q(wb), ((0, 1), (1, 1)))
        o3 = _conv_nhwc(x, q(wc), ((1, 1), (0, 1)))
        o4 = _conv_nhwc(x, q(wd), ((0, 1), (0, 1)))
        Y = jnp.zeros((N, 2 * H, 2 * W, C), jnp.float32)
        Y = Y.at[:, 0::2, 0::2].set(o1)
        Y = Y.at[:, 1::2, 0::2].set(o2)
        Y = Y.at[:, 0::2, 1::2].set(o3)
        Y = Y.at[:, 1::2, 1::2].set(o4)
        Y = bn(Y, g, b)
        return jnp.maximum(Y, 0.0) if relu else Y

    y1 = unpool(p["w1"], p["w2"], p["w3"], p["w4"], p["g1_1"], p["b1_1"], True)
    y2 = unpool(p["w5"], p["w6"], p["w7"], p["w8"], p["g1_2"], p["b1_2"], False)
    o1 = _conv_nhwc(q(y1), q(p["w9"]), ((1, 1), (1, 1)))
    o1 = bn(o1, p["g2"], p["b2"])
    out = jnp.maximum(o1 + y2, 0.0)
    return jnp.transpose(out, (0, 3, 1, 2))


# ---------------------------------------------------------------------------
if __name__ == "__main__":
    key = jax.random.PRNGKey(0)
    N, Cin, Cout, H, W = 2, 16, 32, 16, 16
    ks = jax.random.split(key, 16)

    def w(k, shape, scale=0.1):
        return scale * jax.random.normal(k, shape, jnp.float32)

    params = {
        "w1": w(ks[0], (Cout, Cin, 3, 3)),
        "w2": w(ks[1], (Cout, Cin, 2, 3)),
        "w3": w(ks[2], (Cout, Cin, 3, 2)),
        "w4": w(ks[3], (Cout, Cin, 2, 2)),
        "w5": w(ks[4], (Cout, Cin, 3, 3)),
        "w6": w(ks[5], (Cout, Cin, 2, 3)),
        "w7": w(ks[6], (Cout, Cin, 3, 2)),
        "w8": w(ks[7], (Cout, Cin, 2, 2)),
        "w9": w(ks[8], (Cout, Cout, 3, 3)),
        "g1_1": 1.0 + 0.1 * jax.random.normal(ks[9], (Cout,), jnp.float32),
        "b1_1": 0.1 * jax.random.normal(ks[10], (Cout,), jnp.float32),
        "g1_2": 1.0 + 0.1 * jax.random.normal(ks[11], (Cout,), jnp.float32),
        "b1_2": 0.1 * jax.random.normal(ks[12], (Cout,), jnp.float32),
        "g2": 1.0 + 0.1 * jax.random.normal(ks[13], (Cout,), jnp.float32),
        "b2": 0.1 * jax.random.normal(ks[14], (Cout,), jnp.float32),
    }
    x = jax.random.normal(ks[15], (N, Cin, H, W), jnp.float32)

    fwd = jax.jit(fast_up_project_block)
    out = jax.block_until_ready(fwd(x, params))

    assert out.shape == (N, Cout, 2 * H, 2 * W), out.shape
    ref_q = reference(x, params, quantize=True)     # same bf16 rounding points
    ref_f = reference(x, params, quantize=False)    # pure-f32 module semantics
    err_q = float(jnp.max(jnp.abs(out - ref_q)))
    err_f = float(jnp.max(jnp.abs(out - ref_f)))
    assert err_q < 1e-2, f"bf16-matched reference mismatch: {err_q}"
    assert err_f < 2e-1, f"f32 reference mismatch: {err_f}"
    print("KERNEL_OK")
</pallas_src>

<mosaic_0001>
module attributes {stable_mosaic.version = 11 : i64} {
  func.func @kernel(%arg0: i32, %arg1: i32, %arg2: memref<1x256x144xbf16, #tpu.memory_space<vmem>>, %arg3: memref<144x256xbf16, #tpu.memory_space<vmem>>, %arg4: memref<1x256x128xbf16, #tpu.memory_space<vmem>>, %arg5: memref<1x256x128xbf16, #tpu.memory_space<vmem>>, %arg6: memref<1x1x2x256xf32, #tpu.memory_space<vmem>>) attributes {dimension_semantics = [#tpu.dimension_semantics<parallel>, #tpu.dimension_semantics<parallel>], iteration_bounds = array<i64: 2, 1>, scalar_prefetch = 0 : i64, scratch_operands = 0 : i64, tpu.core_type = #tpu.core_type<tc>, window_params = [{transform_indices = @transform_0, window_bounds = array<i64: 1, 256, 144>}, {pipeline_mode = #tpu.pipeline_mode<synchronous>, transform_indices = @transform_1, window_bounds = array<i64: 144, 256>}, {transform_indices = @transform_2, window_bounds = array<i64: 1, 256, 128>}, {transform_indices = @transform_3, window_bounds = array<i64: 1, 256, 128>}, {transform_indices = @transform_4, window_bounds = array<i64: 1, 1, 2, 256>}]} {
    %c0 = arith.constant 0 : index
    %c0_0 = arith.constant 0 : index
    %c0_1 = arith.constant 0 : index
    %0 = vector.load %arg2[%c0, %c0_0, %c0_1] : memref<1x256x144xbf16, #tpu.memory_space<vmem>>, vector<1x256x144xbf16>
    %1 = vector.shape_cast %0 : vector<1x256x144xbf16> to vector<256x144xbf16>
    %c0_2 = arith.constant 0 : index
    %c0_3 = arith.constant 0 : index
    %2 = vector.load %arg3[%c0_2, %c0_3] : memref<144x256xbf16, #tpu.memory_space<vmem>>, vector<144x256xbf16>
    %cst = arith.constant dense<0.000000e+00> : vector<256x256xf32>
    %3 = tpu.matmul %1, %2, %cst {dimension_numbers = #tpu.dot_dimension_numbers<[1], [0], [0], [1], [0, 0, 1, 1], [], []>} : vector<256x144xbf16>, vector<144x256xbf16>, vector<256x256xf32> -> vector<256x256xf32>
    %cst_4 = arith.constant dense<0.000000e+00> : vector<256xf32>
    %4 = vector.multi_reduction <add>, %3, %cst_4 [0] : vector<256x256xf32> to vector<256xf32>
    %5 = vector.shape_cast %4 : vector<256xf32> to vector<1x256xf32>
    %c0_5 = arith.constant 0 : index
    %c0_6 = arith.constant 0 : index
    %c0_7 = arith.constant 0 : index
    %c0_8 = arith.constant 0 : index
    %6 = vector.load %arg6[%c0_5, %c0_6, %c0_7, %c0_8] : memref<1x1x2x256xf32, #tpu.memory_space<vmem>>, vector<1x1x1x256xf32>
    %7 = vector.shape_cast %6 : vector<1x1x1x256xf32> to vector<1x256xf32>
    %8 = vector.shape_cast %5 : vector<1x256xf32> to vector<1x1x1x256xf32>
    tpu.vector_store %arg6[%c0_5, %c0_6, %c0_7, %c0_8], %8 {strides = array<i32>} : memref<1x1x2x256xf32, #tpu.memory_space<vmem>>, vector<1x1x1x256xf32>,
    %9 = arith.mulf %3, %3 : vector<256x256xf32>
    %cst_9 = arith.constant dense<0.000000e+00> : vector<256xf32>
    %10 = vector.multi_reduction <add>, %9, %cst_9 [0] : vector<256x256xf32> to vector<256xf32>
    %11 = vector.shape_cast %10 : vector<256xf32> to vector<1x256xf32>
    %c0_10 = arith.constant 0 : index
    %c0_11 = arith.constant 0 : index
    %c1 = arith.constant 1 : index
    %c0_12 = arith.constant 0 : index
    %12 = vector.load %arg6[%c0_10, %c0_11, %c1, %c0_12] : memref<1x1x2x256xf32, #tpu.memory_space<vmem>>, vector<1x1x1x256xf32>
    %13 = vector.shape_cast %12 : vector<1x1x1x256xf32> to vector<1x256xf32>
    %14 = vector.shape_cast %11 : vector<1x256xf32> to vector<1x1x1x256xf32>
    tpu.vector_store %arg6[%c0_10, %c0_11, %c1, %c0_12], %14 {strides = array<i32>} : memref<1x1x2x256xf32, #tpu.memory_space<vmem>>, vector<1x1x1x256xf32>,
    %15 = vector.extract_strided_slice %3 {offsets = [0, 0], sizes = [256, 128], strides = [1, 1]} : vector<256x256xf32> to vector<256x128xf32>
    %16 = arith.truncf %15 : vector<256x128xf32> to vector<256x128xbf16>
    %c0_13 = arith.constant 0 : index
    %c0_14 = arith.constant 0 : index
    %c0_15 = arith.constant 0 : index
    %17 = vector.load %arg4[%c0_13, %c0_14, %c0_15] : memref<1x256x128xbf16, #tpu.memory_space<vmem>>, vector<1x256x128xbf16>
    %18 = vector.shape_cast %17 : vector<1x256x128xbf16> to vector<256x128xbf16>
    %19 = vector.shape_cast %16 : vector<256x128xbf16> to vector<1x256x128xbf16>
    tpu.vector_store %arg4[%c0_13, %c0_14, %c0_15], %19 {strides = array<i32>} : memref<1x256x128xbf16, #tpu.memory_space<vmem>>, vector<1x256x128xbf16>,
    %20 = vector.extract_strided_slice %3 {offsets = [0, 128], sizes = [256, 128], strides = [1, 1]} : vector<256x256xf32> to vector<256x128xf32>
    %21 = arith.truncf %20 : vector<256x128xf32> to vector<256x128xbf16>
    %c0_16 = arith.constant 0 : index
    %c0_17 = arith.constant 0 : index
    %c0_18 = arith.constant 0 : index
    %22 = vector.load %arg5[%c0_16, %c0_17, %c0_18] : memref<1x256x128xbf16, #tpu.memory_space<vmem>>, vector<1x256x128xbf16>
    %23 = vector.shape_cast %22 : vector<1x256x128xbf16> to vector<256x128xbf16>
    %24 = vector.shape_cast %21 : vector<256x128xbf16> to vector<1x256x128xbf16>
    tpu.vector_store %arg5[%c0_16, %c0_17, %c0_18], %24 {strides = array<i32>} : memref<1x256x128xbf16, #tpu.memory_space<vmem>>, vector<1x256x128xbf16>,
    return
  }
  func.func @transform_0(%arg0: i32, %arg1: i32) -> (i32, i32, i32) {
    %c0_i32 = arith.constant 0 : i32
    %c0_i32_0 = arith.constant 0 : i32
    return %arg0, %arg1, %c0_i32 : i32, i32, i32
  }
  func.func @transform_1(%arg0: i32, %arg1: i32) -> (i32, i32) {
    %c0_i32 = arith.constant 0 : i32
    %c0_i32_0 = arith.constant 0 : i32
    %c0_i32_1 = arith.constant 0 : i32
    return %c0_i32, %c0_i32_0 : i32, i32
  }
  func.func @transform_2(%arg0: i32, %arg1: i32) -> (i32, i32, i32) {
    %c0_i32 = arith.constant 0 : i32
    %c0_i32_0 = arith.constant 0 : i32
    return %arg0, %arg1, %c0_i32 : i32, i32, i32
  }
  func.func @transform_3(%arg0: i32, %arg1: i32) -> (i32, i32, i32) {
    %c0_i32 = arith.constant 0 : i32
    %c0_i32_0 = arith.constant 0 : i32
    return %arg0, %arg1, %c0_i32 : i32, i32, i32
  }
  func.func @transform_4(%arg0: i32, %arg1: i32) -> (i32, i32, i32, i32) {
    %c0_i32 = arith.constant 0 : i32
    %c0_i32_0 = arith.constant 0 : i32
    %c0_i32_1 = arith.constant 0 : i32
    return %arg0, %arg1, %c0_i32, %c0_i32_0 : i32, i32, i32, i32
  }
}

module attributes {stable_mosaic.version = 11 : i64} {
  func.func @_epilogue_kernel(%arg0: i32, %arg1: i32, %arg2: memref<1x256x128xbf16, #tpu.memory_space<vmem>>, %arg3: memref<1x256x128xbf16, #tpu.memory_space<vmem>>, %arg4: memref<4x128xf32, #tpu.memory_space<vmem>>, %arg5: memref<1x256x128xf32, #tpu.memory_space<vmem>>) attributes {dimension_semantics = [#tpu.dimension_semantics<parallel>, #tpu.dimension_semantics<parallel>], iteration_bounds = array<i64: 2, 1>, scalar_prefetch = 0 : i64, scratch_operands = 0 : i64, tpu.core_type = #tpu.core_type<tc>, window_params = [{transform_indices = @transform_0, window_bounds = array<i64: 1, 256, 128>}, {transform_indices = @transform_1, window_bounds = array<i64: 1, 256, 128>}, {pipeline_mode = #tpu.pipeline_mode<synchronous>, transform_indices = @transform_2, window_bounds = array<i64: 4, 128>}, {transform_indices = @transform_3, window_bounds = array<i64: 1, 256, 128>}]} {
    %c0 = arith.constant 0 : index
    %c0_0 = arith.constant 0 : index
    %0 = vector.load %arg4[%c0, %c0_0] : memref<4x128xf32, #tpu.memory_space<vmem>>, vector<1x128xf32>
    %c1 = arith.constant 1 : index
    %c0_1 = arith.constant 0 : index
    %1 = vector.load %arg4[%c1, %c0_1] : memref<4x128xf32, #tpu.memory_space<vmem>>, vector<1x128xf32>
    %c2 = arith.constant 2 : index
    %c0_2 = arith.constant 0 : index
    %2 = vector.load %arg4[%c2, %c0_2] : memref<4x128xf32, #tpu.memory_space<vmem>>, vector<1x128xf32>
    %c3 = arith.constant 3 : index
    %c0_3 = arith.constant 0 : index
    %3 = vector.load %arg4[%c3, %c0_3] : memref<4x128xf32, #tpu.memory_space<vmem>>, vector<1x128xf32>
    %c0_4 = arith.constant 0 : index
    %c0_5 = arith.constant 0 : index
    %c0_6 = arith.constant 0 : index
    %4 = vector.load %arg2[%c0_4, %c0_5, %c0_6] : memref<1x256x128xbf16, #tpu.memory_space<vmem>>, vector<1x256x128xbf16>
    %5 = vector.shape_cast %4 : vector<1x256x128xbf16> to vector<256x128xbf16>
    %6 = arith.extf %5 : vector<256x128xbf16> to vector<256x128xf32>
    %7 = vector.broadcast %0 : vector<1x128xf32> to vector<256x128xf32>
    %8 = arith.mulf %6, %7 : vector<256x128xf32>
    %9 = vector.broadcast %1 : vector<1x128xf32> to vector<256x128xf32>
    %10 = arith.addf %8, %9 : vector<256x128xf32>
    %c0_7 = arith.constant 0 : index
    %c0_8 = arith.constant 0 : index
    %c0_9 = arith.constant 0 : index
    %11 = vector.load %arg3[%c0_7, %c0_8, %c0_9] : memref<1x256x128xbf16, #tpu.memory_space<vmem>>, vector<1x256x128xbf16>
    %12 = vector.shape_cast %11 : vector<1x256x128xbf16> to vector<256x128xbf16>
    %13 = arith.extf %12 : vector<256x128xbf16> to vector<256x128xf32>
    %14 = vector.broadcast %2 : vector<1x128xf32> to vector<256x128xf32>
    %15 = arith.mulf %13, %14 : vector<256x128xf32>
    %16 = arith.addf %10, %15 : vector<256x128xf32>
    %17 = vector.broadcast %3 : vector<1x128xf32> to vector<256x128xf32>
    %18 = arith.addf %16, %17 : vector<256x128xf32>
    %cst = arith.constant 0.000000e+00 : f32
    %19 = vector.broadcast %cst : f32 to vector<256x128xf32>
    %20 = arith.maximumf %18, %19 : vector<256x128xf32>
    %c0_10 = arith.constant 0 : index
    %c0_11 = arith.constant 0 : index
    %c0_12 = arith.constant 0 : index
    %21 = vector.load %arg5[%c0_10, %c0_11, %c0_12] : memref<1x256x128xf32, #tpu.memory_space<vmem>>, vector<1x256x128xf32>
    %22 = vector.shape_cast %21 : vector<1x256x128xf32> to vector<256x128xf32>
    %23 = vector.shape_cast %20 : vector<256x128xf32> to vector<1x256x128xf32>
    tpu.vector_store %arg5[%c0_10, %c0_11, %c0_12], %23 {strides = array<i32>} : memref<1x256x128xf32, #tpu.memory_space<vmem>>, vector<1x256x128xf32>,
    return
  }
  func.func @transform_0(%arg0: i32, %arg1: i32) -> (i32, i32, i32) {
    %c0_i32 = arith.constant 0 : i32
    %c0_i32_0 = arith.constant 0 : i32
    return %arg0, %arg1, %c0_i32 : i32, i32, i32
  }
  func.func @transform_1(%arg0: i32, %arg1: i32) -> (i32, i32, i32) {
    %c0_i32 = arith.constant 0 : i32
    %c0_i32_0 = arith.constant 0 : i32
    return %arg0, %arg1, %c0_i32 : i32, i32, i32
  }
  func.func @transform_2(%arg0: i32, %arg1: i32) -> (i32, i32) {
    %c0_i32 = arith.constant 0 : i32
    %c0_i32_0 = arith.constant 0 : i32
    %c0_i32_1 = arith.constant 0 : i32
    return %c0_i32, %c0_i32_0 : i32, i32
  }
  func.func @transform_3(%arg0: i32, %arg1: i32) -> (i32, i32, i32) {
    %c0_i32 = arith.constant 0 : i32
    %c0_i32_0 = arith.constant 0 : i32
    return %arg0, %arg1, %c0_i32 : i32, i32, i32
  }
}

module attributes {stable_mosaic.version = 11 : i64} {
  func.func @kernel(%arg0: i32, %arg1: i32, %arg2: memref<1x16x16x128xbf16, #tpu.memory_space<vmem>>, %arg3: memref<1x1x16x128xbf16, #tpu.memory_space<vmem>>, %arg4: memref<1x1x16x128xbf16, #tpu.memory_space<vmem>>, %arg5: memref<1152x128xbf16, #tpu.memory_space<vmem>>, %arg6: memref<2x128xf32, #tpu.memory_space<vmem>>, %arg7: memref<1x256x128xbf16, #tpu.memory_space<vmem>>, %arg8: memref<1x1x2x128xf32, #tpu.memory_space<vmem>>, %arg9: memref<18x18x128xbf16, #tpu.memory_space<vmem>>, %arg10: memref<16x16x1152xbf16, #tpu.memory_space<vmem>>) attributes {dimension_semantics = [#tpu.dimension_semantics<parallel>, #tpu.dimension_semantics<parallel>], iteration_bounds = array<i64: 2, 1>, scalar_prefetch = 0 : i64, scratch_operands = 2 : i64, tpu.core_type = #tpu.core_type<tc>, window_params = [{transform_indices = @transform_0, window_bounds = array<i64: 1, 16, 16, 128>}, {transform_indices = @transform_1, window_bounds = array<i64: 1, 1, 16, 128>}, {transform_indices = @transform_2, window_bounds = array<i64: 1, 1, 16, 128>}, {pipeline_mode = #tpu.pipeline_mode<synchronous>, transform_indices = @transform_3, window_bounds = array<i64: 1152, 128>}, {pipeline_mode = #tpu.pipeline_mode<synchronous>, transform_indices = @transform_4, window_bounds = array<i64: 2, 128>}, {transform_indices = @transform_5, window_bounds = array<i64: 1, 256, 128>}, {transform_indices = @transform_6, window_bounds = array<i64: 1, 1, 2, 128>}]} {
    %c0 = arith.constant 0 : index
    %c0_0 = arith.constant 0 : index
    %0 = vector.load %arg6[%c0, %c0_0] : memref<2x128xf32, #tpu.memory_space<vmem>>, vector<1x128xf32>
    %1 = vector.shape_cast %0 : vector<1x128xf32> to vector<1x1x128xf32>
    %c1 = arith.constant 1 : index
    %c0_1 = arith.constant 0 : index
    %2 = vector.load %arg6[%c1, %c0_1] : memref<2x128xf32, #tpu.memory_space<vmem>>, vector<1x128xf32>
    %3 = vector.shape_cast %2 : vector<1x128xf32> to vector<1x1x128xf32>
    %c0_2 = arith.constant 0 : index
    %c0_3 = arith.constant 0 : index
    %c0_4 = arith.constant 0 : index
    %c0_5 = arith.constant 0 : index
    %4 = vector.load %arg2[%c0_2, %c0_3, %c0_4, %c0_5] : memref<1x16x16x128xbf16, #tpu.memory_space<vmem>>, vector<1x16x16x128xbf16>
    %5 = vector.shape_cast %4 : vector<1x16x16x128xbf16> to vector<16x16x128xbf16>
    %6 = arith.extf %5 : vector<16x16x128xbf16> to vector<16x16x128xf32>
    %7 = vector.broadcast %1 : vector<1x1x128xf32> to vector<16x16x128xf32>
    %8 = arith.mulf %6, %7 : vector<16x16x128xf32>
    %9 = vector.broadcast %3 : vector<1x1x128xf32> to vector<16x16x128xf32>
    %10 = arith.addf %8, %9 : vector<16x16x128xf32>
    %cst = arith.constant 0.000000e+00 : f32
    %11 = vector.broadcast %cst : f32 to vector<16x16x128xf32>
    %12 = arith.maximumf %10, %11 : vector<16x16x128xf32>
    %13 = arith.truncf %12 : vector<16x16x128xf32> to vector<16x16x128xbf16>
    %c1_6 = arith.constant 1 : index
    %c1_7 = arith.constant 1 : index
    %c0_8 = arith.constant 0 : index
    %14 = vector.load %arg9[%c1_6, %c1_7, %c0_8] : memref<18x18x128xbf16, #tpu.memory_space<vmem>>, vector<16x16x128xbf16>
    tpu.vector_store %arg9[%c1_6, %c1_7, %c0_8], %13 {strides = array<i32>} : memref<18x18x128xbf16, #tpu.memory_space<vmem>>, vector<16x16x128xbf16>,
    %c0_9 = arith.constant 0 : index
    %c0_10 = arith.constant 0 : index
    %c0_11 = arith.constant 0 : index
    %c0_12 = arith.constant 0 : index
    %15 = vector.load %arg3[%c0_9, %c0_10, %c0_11, %c0_12] : memref<1x1x16x128xbf16, #tpu.memory_space<vmem>>, vector<1x1x16x128xbf16>
    %16 = vector.shape_cast %15 : vector<1x1x16x128xbf16> to vector<1x16x128xbf16>
    %17 = arith.extf %16 : vector<1x16x128xbf16> to vector<1x16x128xf32>
    %18 = vector.broadcast %1 : vector<1x1x128xf32> to vector<1x16x128xf32>
    %19 = arith.mulf %17, %18 : vector<1x16x128xf32>
    %20 = vector.broadcast %3 : vector<1x1x128xf32> to vector<1x16x128xf32>
    %21 = arith.addf %19, %20 : vector<1x16x128xf32>
    %cst_13 = arith.constant 0.000000e+00 : f32
    %22 = vector.broadcast %cst_13 : f32 to vector<1x16x128xf32>
    %23 = arith.maximumf %21, %22 : vector<1x16x128xf32>
    %c0_i32 = arith.constant 0 : i32
    %24 = arith.cmpi eq, %arg1, %c0_i32 : i32
    %cst_14 = arith.constant 0.000000e+00 : f32
    %25 = vector.broadcast %cst_14 : f32 to vector<1x16x128xf32>
    %26 = arith.select %24, %25, %23 : vector<1x16x128xf32>
    %27 = arith.truncf %26 : vector<1x16x128xf32> to vector<1x16x128xbf16>
    %c0_15 = arith.constant 0 : index
    %c1_16 = arith.constant 1 : index
    %c0_17 = arith.constant 0 : index
    %28 = vector.load %arg9[%c0_15, %c1_16, %c0_17] : memref<18x18x128xbf16, #tpu.memory_space<vmem>>, vector<1x16x128xbf16>
    tpu.vector_store %arg9[%c0_15, %c1_16, %c0_17], %27 {strides = array<i32>} : memref<18x18x128xbf16, #tpu.memory_space<vmem>>, vector<1x16x128xbf16>,
    %c0_18 = arith.constant 0 : index
    %c0_19 = arith.constant 0 : index
    %c0_20 = arith.constant 0 : index
    %c0_21 = arith.constant 0 : index
    %29 = vector.load %arg4[%c0_18, %c0_19, %c0_20, %c0_21] : memref<1x1x16x128xbf16, #tpu.memory_space<vmem>>, vector<1x1x16x128xbf16>
    %30 = vector.shape_cast %29 : vector<1x1x16x128xbf16> to vector<1x16x128xbf16>
    %31 = arith.extf %30 : vector<1x16x128xbf16> to vector<1x16x128xf32>
    %32 = vector.broadcast %1 : vector<1x1x128xf32> to vector<1x16x128xf32>
    %33 = arith.mulf %31, %32 : vector<1x16x128xf32>
    %34 = vector.broadcast %3 : vector<1x1x128xf32> to vector<1x16x128xf32>
    %35 = arith.addf %33, %34 : vector<1x16x128xf32>
    %cst_22 = arith.constant 0.000000e+00 : f32
    %36 = vector.broadcast %cst_22 : f32 to vector<1x16x128xf32>
    %37 = arith.maximumf %35, %36 : vector<1x16x128xf32>
    %c0_i32_23 = arith.constant 0 : i32
    %38 = arith.cmpi eq, %arg1, %c0_i32_23 : i32
    %cst_24 = arith.constant 0.000000e+00 : f32
    %39 = vector.broadcast %cst_24 : f32 to vector<1x16x128xf32>
    %40 = arith.select %38, %39, %37 : vector<1x16x128xf32>
    %41 = arith.truncf %40 : vector<1x16x128xf32> to vector<1x16x128xbf16>
    %c17 = arith.constant 17 : index
    %c1_25 = arith.constant 1 : index
    %c0_26 = arith.constant 0 : index
    %42 = vector.load %arg9[%c17, %c1_25, %c0_26] : memref<18x18x128xbf16, #tpu.memory_space<vmem>>, vector<1x16x128xbf16>
    tpu.vector_store %arg9[%c17, %c1_25, %c0_26], %41 {strides = array<i32>} : memref<18x18x128xbf16, #tpu.memory_space<vmem>>, vector<1x16x128xbf16>,
    %cst_27 = arith.constant 0.000000e+00 : bf16
    %43 = vector.broadcast %cst_27 : bf16 to vector<18x1x128xbf16>
    %c0_28 = arith.constant 0 : index
    %c0_29 = arith.constant 0 : index
    %c0_30 = arith.constant 0 : index
    %44 = vector.load %arg9[%c0_28, %c0_29, %c0_30] : memref<18x18x128xbf16, #tpu.memory_space<vmem>>, vector<18x1x128xbf16>
    tpu.vector_store %arg9[%c0_28, %c0_29, %c0_30], %43 {strides = array<i32>} : memref<18x18x128xbf16, #tpu.memory_space<vmem>>, vector<18x1x128xbf16>,
    %cst_31 = arith.constant 0.000000e+00 : bf16
    %45 = vector.broadcast %cst_31 : bf16 to vector<18x1x128xbf16>
    %c0_32 = arith.constant 0 : index
    %c17_33 = arith.constant 17 : index
    %c0_34 = arith.constant 0 : index
    %46 = vector.load %arg9[%c0_32, %c17_33, %c0_34] : memref<18x18x128xbf16, #tpu.memory_space<vmem>>, vector<18x1x128xbf16>
    tpu.vector_store %arg9[%c0_32, %c17_33, %c0_34], %45 {strides = array<i32>} : memref<18x18x128xbf16, #tpu.memory_space<vmem>>, vector<18x1x128xbf16>,
    %c0_35 = arith.constant 0 : index
    %c0_36 = arith.constant 0 : index
    %c0_37 = arith.constant 0 : index
    %47 = vector.load %arg9[%c0_35, %c0_36, %c0_37] : memref<18x18x128xbf16, #tpu.memory_space<vmem>>, vector<16x16x128xbf16>
    %c0_38 = arith.constant 0 : index
    %c0_39 = arith.constant 0 : index
    %c0_40 = arith.constant 0 : index
    %48 = vector.load %arg10[%c0_38, %c0_39, %c0_40] : memref<16x16x1152xbf16, #tpu.memory_space<vmem>>, vector<16x16x128xbf16>
    tpu.vector_store %arg10[%c0_38, %c0_39, %c0_40], %47 {strides = array<i32>} : memref<16x16x1152xbf16, #tpu.memory_space<vmem>>, vector<16x16x128xbf16>,
    %c0_41 = arith.constant 0 : index
    %c1_42 = arith.constant 1 : index
    %c0_43 = arith.constant 0 : index
    %49 = vector.load %arg9[%c0_41, %c1_42, %c0_43] : memref<18x18x128xbf16, #tpu.memory_space<vmem>>, vector<16x16x128xbf16>
    %c0_44 = arith.constant 0 : index
    %c0_45 = arith.constant 0 : index
    %c128 = arith.constant 128 : index
    %50 = vector.load %arg10[%c0_44, %c0_45, %c128] : memref<16x16x1152xbf16, #tpu.memory_space<vmem>>, vector<16x16x128xbf16>
    tpu.vector_store %arg10[%c0_44, %c0_45, %c128], %49 {strides = array<i32>} : memref<16x16x1152xbf16, #tpu.memory_space<vmem>>, vector<16x16x128xbf16>,
    %c0_46 = arith.constant 0 : index
    %c2 = arith.constant 2 : index
    %c0_47 = arith.constant 0 : index
    %51 = vector.load %arg9[%c0_46, %c2, %c0_47] : memref<18x18x128xbf16, #tpu.memory_space<vmem>>, vector<16x16x128xbf16>
    %c0_48 = arith.constant 0 : index
    %c0_49 = arith.constant 0 : index
    %c256 = arith.constant 256 : index
    %52 = vector.load %arg10[%c0_48, %c0_49, %c256] : memref<16x16x1152xbf16, #tpu.memory_space<vmem>>, vector<16x16x128xbf16>
    tpu.vector_store %arg10[%c0_48, %c0_49, %c256], %51 {strides = array<i32>} : memref<16x16x1152xbf16, #tpu.memory_space<vmem>>, vector<16x16x128xbf16>,
    %c1_50 = arith.constant 1 : index
    %c0_51 = arith.constant 0 : index
    %c0_52 = arith.constant 0 : index
    %53 = vector.load %arg9[%c1_50, %c0_51, %c0_52] : memref<18x18x128xbf16, #tpu.memory_space<vmem>>, vector<16x16x128xbf16>
    %c0_53 = arith.constant 0 : index
    %c0_54 = arith.constant 0 : index
    %c384 = arith.constant 384 : index
    %54 = vector.load %arg10[%c0_53, %c0_54, %c384] : memref<16x16x1152xbf16, #tpu.memory_space<vmem>>, vector<16x16x128xbf16>
    tpu.vector_store %arg10[%c0_53, %c0_54, %c384], %53 {strides = array<i32>} : memref<16x16x1152xbf16, #tpu.memory_space<vmem>>, vector<16x16x128xbf16>,
    %c1_55 = arith.constant 1 : index
    %c1_56 = arith.constant 1 : index
    %c0_57 = arith.constant 0 : index
    %55 = vector.load %arg9[%c1_55, %c1_56, %c0_57] : memref<18x18x128xbf16, #tpu.memory_space<vmem>>, vector<16x16x128xbf16>
    %c0_58 = arith.constant 0 : index
    %c0_59 = arith.constant 0 : index
    %c512 = arith.constant 512 : index
    %56 = vector.load %arg10[%c0_58, %c0_59, %c512] : memref<16x16x1152xbf16, #tpu.memory_space<vmem>>, vector<16x16x128xbf16>
    tpu.vector_store %arg10[%c0_58, %c0_59, %c512], %55 {strides = array<i32>} : memref<16x16x1152xbf16, #tpu.memory_space<vmem>>, vector<16x16x128xbf16>,
    %c1_60 = arith.constant 1 : index
    %c2_61 = arith.constant 2 : index
    %c0_62 = arith.constant 0 : index
    %57 = vector.load %arg9[%c1_60, %c2_61, %c0_62] : memref<18x18x128xbf16, #tpu.memory_space<vmem>>, vector<16x16x128xbf16>
    %c0_63 = arith.constant 0 : index
    %c0_64 = arith.constant 0 : index
    %c640 = arith.constant 640 : index
    %58 = vector.load %arg10[%c0_63, %c0_64, %c640] : memref<16x16x1152xbf16, #tpu.memory_space<vmem>>, vector<16x16x128xbf16>
    tpu.vector_store %arg10[%c0_63, %c0_64, %c640], %57 {strides = array<i32>} : memref<16x16x1152xbf16, #tpu.memory_space<vmem>>, vector<16x16x128xbf16>,
    %c2_65 = arith.constant 2 : index
    %c0_66 = arith.constant 0 : index
    %c0_67 = arith.constant 0 : index
    %59 = vector.load %arg9[%c2_65, %c0_66, %c0_67] : memref<18x18x128xbf16, #tpu.memory_space<vmem>>, vector<16x16x128xbf16>
    %c0_68 = arith.constant 0 : index
    %c0_69 = arith.constant 0 : index
    %c768 = arith.constant 768 : index
    %60 = vector.load %arg10[%c0_68, %c0_69, %c768] : memref<16x16x1152xbf16, #tpu.memory_space<vmem>>, vector<16x16x128xbf16>
    tpu.vector_store %arg10[%c0_68, %c0_69, %c768], %59 {strides = array<i32>} : memref<16x16x1152xbf16, #tpu.memory_space<vmem>>, vector<16x16x128xbf16>,
    %c2_70 = arith.constant 2 : index
    %c1_71 = arith.constant 1 : index
    %c0_72 = arith.constant 0 : index
    %61 = vector.load %arg9[%c2_70, %c1_71, %c0_72] : memref<18x18x128xbf16, #tpu.memory_space<vmem>>, vector<16x16x128xbf16>
    %c0_73 = arith.constant 0 : index
    %c0_74 = arith.constant 0 : index
    %c896 = arith.constant 896 : index
    %62 = vector.load %arg10[%c0_73, %c0_74, %c896] : memref<16x16x1152xbf16, #tpu.memory_space<vmem>>, vector<16x16x128xbf16>
    tpu.vector_store %arg10[%c0_73, %c0_74, %c896], %61 {strides = array<i32>} : memref<16x16x1152xbf16, #tpu.memory_space<vmem>>, vector<16x16x128xbf16>,
    %c2_75 = arith.constant 2 : index
    %c2_76 = arith.constant 2 : index
    %c0_77 = arith.constant 0 : index
    %63 = vector.load %arg9[%c2_75, %c2_76, %c0_77] : memref<18x18x128xbf16, #tpu.memory_space<vmem>>, vector<16x16x128xbf16>
    %c0_78 = arith.constant 0 : index
    %c0_79 = arith.constant 0 : index
    %c1024 = arith.constant 1024 : index
    %64 = vector.load %arg10[%c0_78, %c0_79, %c1024] : memref<16x16x1152xbf16, #tpu.memory_space<vmem>>, vector<16x16x128xbf16>
    tpu.vector_store %arg10[%c0_78, %c0_79, %c1024], %63 {strides = array<i32>} : memref<16x16x1152xbf16, #tpu.memory_space<vmem>>, vector<16x16x128xbf16>,
    %c0_80 = arith.constant 0 : index
    %c0_81 = arith.constant 0 : index
    %c0_82 = arith.constant 0 : index
    %65 = vector.load %arg10[%c0_80, %c0_81, %c0_82] : memref<16x16x1152xbf16, #tpu.memory_space<vmem>>, vector<16x16x1152xbf16>
    %66 = vector.shape_cast %65 : vector<16x16x1152xbf16> to vector<256x1152xbf16>
    %c0_83 = arith.constant 0 : index
    %c0_84 = arith.constant 0 : index
    %67 = vector.load %arg5[%c0_83, %c0_84] : memref<1152x128xbf16, #tpu.memory_space<vmem>>, vector<1152x128xbf16>
    %cst_85 = arith.constant dense<0.000000e+00> : vector<256x128xf32>
    %68 = tpu.matmul %66, %67, %cst_85 {dimension_numbers = #tpu.dot_dimension_numbers<[1], [0], [0], [1], [0, 0, 1, 1], [], []>} : vector<256x1152xbf16>, vector<1152x128xbf16>, vector<256x128xf32> -> vector<256x128xf32>
    %cst_86 = arith.constant dense<0.000000e+00> : vector<128xf32>
    %69 = vector.multi_reduction <add>, %68, %cst_86 [0] : vector<256x128xf32> to vector<128xf32>
    %70 = vector.shape_cast %69 : vector<128xf32> to vector<1x128xf32>
    %c0_87 = arith.constant 0 : index
    %c0_88 = arith.constant 0 : index
    %c0_89 = arith.constant 0 : index
    %c0_90 = arith.constant 0 : index
    %71 = vector.load %arg8[%c0_87, %c0_88, %c0_89, %c0_90] : memref<1x1x2x128xf32, #tpu.memory_space<vmem>>, vector<1x1x1x128xf32>
    %72 = vector.shape_cast %71 : vector<1x1x1x128xf32> to vector<1x128xf32>
    %73 = vector.shape_cast %70 : vector<1x128xf32> to vector<1x1x1x128xf32>
    tpu.vector_store %arg8[%c0_87, %c0_88, %c0_89, %c0_90], %73 {strides = array<i32>} : memref<1x1x2x128xf32, #tpu.memory_space<vmem>>, vector<1x1x1x128xf32>,
    %74 = arith.mulf %68, %68 : vector<256x128xf32>
    %cst_91 = arith.constant dense<0.000000e+00> : vector<128xf32>
    %75 = vector.multi_reduction <add>, %74, %cst_91 [0] : vector<256x128xf32> to vector<128xf32>
    %76 = vector.shape_cast %75 : vector<128xf32> to vector<1x128xf32>
    %c0_92 = arith.constant 0 : index
    %c0_93 = arith.constant 0 : index
    %c1_94 = arith.constant 1 : index
    %c0_95 = arith.constant 0 : index
    %77 = vector.load %arg8[%c0_92, %c0_93, %c1_94, %c0_95] : memref<1x1x2x128xf32, #tpu.memory_space<vmem>>, vector<1x1x1x128xf32>
    %78 = vector.shape_cast %77 : vector<1x1x1x128xf32> to vector<1x128xf32>
    %79 = vector.shape_cast %76 : vector<1x128xf32> to vector<1x1x1x128xf32>
    tpu.vector_store %arg8[%c0_92, %c0_93, %c1_94, %c0_95], %79 {strides = array<i32>} : memref<1x1x2x128xf32, #tpu.memory_space<vmem>>, vector<1x1x1x128xf32>,
    %80 = arith.truncf %68 : vector<256x128xf32> to vector<256x128xbf16>
    %c0_96 = arith.constant 0 : index
    %c0_97 = arith.constant 0 : index
    %c0_98 = arith.constant 0 : index
    %81 = vector.load %arg7[%c0_96, %c0_97, %c0_98] : memref<1x256x128xbf16, #tpu.memory_space<vmem>>, vector<1x256x128xbf16>
    %82 = vector.shape_cast %81 : vector<1x256x128xbf16> to vector<256x128xbf16>
    %83 = vector.shape_cast %80 : vector<256x128xbf16> to vector<1x256x128xbf16>
    tpu.vector_store %arg7[%c0_96, %c0_97, %c0_98], %83 {strides = array<i32>} : memref<1x256x128xbf16, #tpu.memory_space<vmem>>, vector<1x256x128xbf16>,
    return
  }
  func.func @transform_0(%arg0: i32, %arg1: i32) -> (i32, i32, i32, i32) {
    %c0_i32 = arith.constant 0 : i32
    %c0_i32_0 = arith.constant 0 : i32
    %c0_i32_1 = arith.constant 0 : i32
    return %arg0, %arg1, %c0_i32, %c0_i32_0 : i32, i32, i32, i32
  }
  func.func @transform_1(%arg0: i32, %arg1: i32) -> (i32, i32, i32, i32) {
    %c16_i32 = arith.constant 16 : i32
    %0 = arith.muli %arg1, %c16_i32 : i32
    %c1_i32 = arith.constant 1 : i32
    %1 = arith.subi %0, %c1_i32 : i32
    %c0_i32 = arith.constant 0 : i32
    %2 = arith.maxsi %1, %c0_i32 : i32
    %c0_i32_0 = arith.constant 0 : i32
    %c0_i32_1 = arith.constant 0 : i32
    %c0_i32_2 = arith.constant 0 : i32
    return %arg0, %2, %c0_i32_0, %c0_i32_1 : i32, i32, i32, i32
  }
  func.func @transform_2(%arg0: i32, %arg1: i32) -> (i32, i32, i32, i32) {
    %c1_i32 = arith.constant 1 : i32
    %0 = arith.addi %arg1, %c1_i32 : i32
    %c16_i32 = arith.constant 16 : i32
    %1 = arith.muli %0, %c16_i32 : i32
    %c15_i32 = arith.constant 15 : i32
    %2 = arith.minsi %1, %c15_i32 : i32
    %c0_i32 = arith.constant 0 : i32
    %c0_i32_0 = arith.constant 0 : i32
    %c0_i32_1 = arith.constant 0 : i32
    return %arg0, %2, %c0_i32, %c0_i32_0 : i32, i32, i32, i32
  }
  func.func @transform_3(%arg0: i32, %arg1: i32) -> (i32, i32) {
    %c0_i32 = arith.constant 0 : i32
    %c0_i32_0 = arith.constant 0 : i32
    %c0_i32_1 = arith.constant 0 : i32
    return %c0_i32, %c0_i32_0 : i32, i32
  }
  func.func @transform_4(%arg0: i32, %arg1: i32) -> (i32, i32) {
    %c0_i32 = arith.constant 0 : i32
    %c0_i32_0 = arith.constant 0 : i32
    %c0_i32_1 = arith.constant 0 : i32
    return %c0_i32, %c0_i32_0 : i32, i32
  }
  func.func @transform_5(%arg0: i32, %arg1: i32) -> (i32, i32, i32) {
    %c0_i32 = arith.constant 0 : i32
    %c0_i32_0 = arith.constant 0 : i32
    return %arg0, %arg1, %c0_i32 : i32, i32, i32
  }
  func.func @transform_6(%arg0: i32, %arg1: i32) -> (i32, i32, i32, i32) {
    %c0_i32 = arith.constant 0 : i32
    %c0_i32_0 = arith.constant 0 : i32
    %c0_i32_1 = arith.constant 0 : i32
    return %arg0, %arg1, %c0_i32, %c0_i32_0 : i32, i32, i32, i32
  }
}

</mosaic_0001>

<bundles_post_ra>
// kernel: tile.33
= control target key start
LH: loop header
LB: loop body
LE: loop exit
PB: predicated region body
PF: predicated region fallthrough
CT: control target
= control target key end

     0   :  { %s22_s0 = inlined_call_operand.vmem [shape: f32[32], index: 0, kind: input, shape index: {}]   ;;  %s23_s1 = inlined_call_operand.vmem [shape: f32[4,32], index: 1, kind: output, shape index: {}]  }
   0x1   :  { %v4_v0 = vld [vmem:[%s22_s0] ss:$0 sm:$0xff] }
   0x2   :  { %5 = vst [vmem:[%s23_s1] sm:$0xf] %v4_v0 }

// kernel: tile.38
= control target key start
LH: loop header
LB: loop body
LE: loop exit
PB: predicated region body
PF: predicated region fallthrough
CT: control target
= control target key end

     0   :  { %vm7_vm0 = vcmask 261120   ;;  %s37_s8 = smov 32   ;;  %s38_s9 = smov 64   ;;  %vm13_vm1 = vcmask 1048320   ;;  %vm19_vm2 = vcmask 785920   ;;  %vm25_vm3 = vcmask 523520   ;;  %s55_s0 = inlined_call_operand.vmem [shape: f32[4,32], index: 0, kind: input, shape index: {}]   ;;  %s56_s1 = inlined_call_operand.vmem [shape: f32[1,128], index: 1, kind: output, shape index: {}]  }
   0x1   :  { %v4_v0 = vld [vmem:[%s55_s0] sm:$0xf]  ;;  %s36_s0 = smov 96  }
   0x2   :  { %5 = vst [vmem:[#allocation1] sm:$0xf] %v4_v0 }
   0x9   :  { %v10_v1 = vld [vmem:[#allocation1 + $0x3] sm:$0x1]   ;;  %v22_v2 = vld [vmem:[#allocation1 + $0x1] sm:$0x1]   ;;  %v6_v3 = vld [vmem:[#allocation1] sm:$0x1]  }
   0xa   :  { %11 = vrot.lane.b32.xlu0 %v10_v1, %s36_s0  ;;  %23 = vrot.lane.b32.xlu1 %v22_v2, %s37_s8  ;;  %v16_v4 = vld [vmem:[#allocation1 + $0x2] sm:$0x1]   ;;  %8 = vst.msk [vmem:[#allocation0] sm:$0x1] %vm7_vm0, %v6_v3  }
   0xe   :  { %17 = vrot.lane.b32.xlu0 %v16_v4, %s38_s9 }
  0x7c   :  { %v12_v5 = vpop.permute.xlu0 %11   ;;  %v24_v6 = vpop.permute.xlu1 %23  }
  0x7d   :  { %14 = vst.msk [vmem:[#allocation0] sm:$0x1] %vm13_vm1, %v12_v5  }
  0x80   :  { %v18_v7 = vpop.permute.xlu0 %17  }
  0x81   :  { %20 = vst.msk [vmem:[#allocation0] sm:$0x1] %vm19_vm2, %v18_v7  }
  0x82   :  { %26 = vst.msk [vmem:[#allocation0] sm:$0x1] %vm25_vm3, %v24_v6  }
  0x89   :  { %v30_v8 = vld [vmem:[#allocation0] sm:$0x1] }
  0x8a   :  { %32 = vst [vmem:[%s56_s1] sm:$0x1] %v30_v8 }

// kernel: fast_up_project_block.3
= control target key start
LH: loop header
LB: loop body
LE: loop exit
PB: predicated region body
PF: predicated region fallthrough
CT: control target
= control target key end

     0   :  { %s2153_s15 = smov 0   ;;  %s2155_s16 = smov 0   ;;  %s2529_s0 = inlined_call_operand.vmem [shape: bf16[2,256,144], index: 0, kind: input, shape index: {}]   ;;  %s2530_s1 = inlined_call_operand.vmem [shape: bf16[144,256], index: 1, kind: input, shape index: {}]   ;;  %s2531_s2 = inlined_call_operand.vmem [shape: bf16[2,256,128], index: 2, kind: output, shape index: {0}]   ;;  %s2532_s3 = inlined_call_operand.vmem [shape: bf16[2,256,128], index: 3, kind: output, shape index: {1}]   ;;  %s2533_s4 = inlined_call_operand.vmem [shape: f32[2,1,2,256], index: 4, kind: output, shape index: {2}]  }
   0x1   :  { %s2157_s17 = smov 0  }
   0x2 LB: > { %s27_s18 = sadd.s32 1, %s2121_s16  ;;  %p1585_p0 = scmp.ge.s32.totalorder %s2125_s17, 1  ;;  %s2125_s17 = sphi %s2157_s17, %s15_s17   ;;  %s2121_s16 = sphi %s2155_s16, %s2535_s16   ;;  %s2117_s15 = sphi %s2153_s15, %s2534_s15  }
   0x3   : > { %p29_p1 = scmp.ge.s32.totalorder %s27_s18, 2  ;;  %p193_p2 = scmp.lt.s32.totalorder %s2125_s17, 3 }
   0x5   : > { %s2537_s18 = smov (%p29_p1, %s27_s18), 0  ;;  %p194_p3 = pnand %p1585_p0, %p193_p2 }
   0x6   : > { %v2028_v0 = vld [vmem:[%s2530_s1 + $0x4] ss:$8 sps:$4 sm:$0xff] (!%p194_p3)   ;;  %p247_p4 = scmp.lt.s32.totalorder (!%p194_p3), %s2117_s15, 1  ;;  %v2030_v1 = vld [vmem:[%s2530_s1] ss:$8 sps:$4 sm:$0xff] (!%p194_p3)   ;;  %vm571_vm0 = vcmask (!%p194_p3), 130048  }
   0x7   : > { %197 = sbr.rel (%p194_p3) target bundleno = 369 (0x171), region = 28  ;;  %620 = vmatprep.subr.bf16.mxu0 (!%p194_p3), %v2028_v0  ;;  %v2031_v2 = vld [vmem:[%s2530_s1 + $0x14] ss:$8 sps:$4 sm:$0xff] (!%p194_p3)   ;;  %1985 = vmatprep.subr.bf16.mxu1 (!%p194_p3), %v2028_v0  ;;  %v2033_v3 = vld [vmem:[%s2530_s1 + $0x10] ss:$8 sps:$4 sm:$0xff] (!%p194_p3)  }
   0x8   : > { %621 = vmatpush1.bf16.msra.mxu0 (!%p194_p3), %v2030_v1  ;;  %1994 = vmatpush1.bf16.msra.mxu1 (!%p194_p3), %v2030_v1  ;;  %v2034_v4 = vld [vmem:[%s2530_s1 + $0x24] ss:$8 sps:$4 sm:$0xff] (!%p194_p3)   ;;  %v2036_v5 = vld [vmem:[%s2530_s1 + $0x20] ss:$8 sps:$4 sm:$0xff] (!%p194_p3)   ;;  %v2037_v6 = vld [vmem:[%s2530_s1 + $0x34] ss:$8 sps:$4 sm:$0xff] (!%p194_p3)  }
   0x9   : > { %622 = vmatprep.subr.bf16.mxu0 (!%p194_p3), %v2031_v2  ;;  %1986 = vmatprep.subr.bf16.mxu1 (!%p194_p3), %v2031_v2  ;;  %v2039_v7 = vld [vmem:[%s2530_s1 + $0x30] ss:$8 sps:$4 sm:$0xff] (!%p194_p3)   ;;  %v2040_v8 = vld [vmem:[%s2530_s1 + $0x44] ss:$8 sps:$4 sm:$0xff] (!%p194_p3)   ;;  %v2042_v10 = vld [vmem:[%s2530_s1 + $0x40] ss:$8 sps:$4 sm:$0xff] (!%p194_p3)  }
   0xa   : > { %v2043_v11 = vld [vmem:[%s2530_s1 + $0x54] ss:$8 sps:$4 sm:$0xff] (!%p194_p3)   ;;  %v2045_v13 = vld [vmem:[%s2530_s1 + $0x50] ss:$8 sps:$4 sm:$0xff] (!%p194_p3)   ;;  %v2046_v14 = vld [vmem:[%s2530_s1 + $0x64] ss:$8 sps:$4 sm:$0xff] (!%p194_p3)  }
   0xb   : > { %v2048_v15 = vld [vmem:[%s2530_s1 + $0x60] ss:$8 sps:$4 sm:$0xff] (!%p194_p3)   ;;  %v2049_v16 = vld [vmem:[%s2530_s1 + $0x74] ss:$8 sps:$4 sm:$0xff] (!%p194_p3)   ;;  %v2051_v17 = vld [vmem:[%s2530_s1 + $0x70] ss:$8 sps:$4 sm:$0xff] (!%p194_p3)  }
   0xc   : > { %623 = vmatpush1.bf16.msra.mxu0 (!%p194_p3), %v2033_v3  ;;  %1995 = vmatpush1.bf16.msra.mxu1 (!%p194_p3), %v2033_v3  ;;  %v2052_v18 = vld [vmem:[%s2530_s1 + $0x84] ss:$8 sps:$4 sm:$0xff] (!%p194_p3)   ;;  %v2054_v19 = vld [vmem:[%s2530_s1 + $0x80] ss:$8 sps:$4 sm:$0xff] (!%p194_p3)  }
   0xd   : > { %624 = vmatprep.subr.bf16.mxu0 (!%p194_p3), %v2034_v4  ;;  %1987 = vmatprep.subr.bf16.mxu1 (!%p194_p3), %v2034_v4 }
   0xe   : > { %s2539_s15 = smov (!%p247_p4, %s2117_s15), 1 }
   0xf   : > { %s1727_s5 = sshll.u32 %s2539_s15, 8  ;;  %s1728_s12 = sshll.u32 %s2539_s15, 7 }
  0x10   : > { %s2198_s10 = scalar_lea.vmem %s2529_s0, %s1727_s5  ;;  %625 = vmatpush1.bf16.msra.mxu0 %v2036_v5  ;;  %1996 = vmatpush1.bf16.msra.mxu1 %v2036_v5  ;;  %s2287_s19 = scalar_lea.vmem %s2531_s2, %s1728_s12 }
  0x11   : > { %626 = vmatprep.subr.bf16.mxu0 %v2037_v6  ;;  %1988 = vmatprep.subr.bf16.mxu1 %v2037_v6  ;;  %v2057_v9 = vld [vmem:[%s2198_s10 + $0x4] ss:$8 sps:$4 sm:$0xff]   ;;  %v2055_v20 = vld [vmem:[%s2198_s10] ss:$8 sps:$4 sm:$0xff]   ;;  %v2058_v21 = vld [vmem:[%s2198_s10 + $0x14] ss:$8 sps:$4 sm:$0xff]   ;;  %s2294_s21 = scalar_lea.vmem %s2532_s3, %s1728_s12 }
  0x12   : > { %1644 = vmatprep.mubr.msk.bf16.mxu0 %vm571_vm0, %v2057_v9  ;;  %v2069_v12 = vld [vmem:[%s2198_s10 + $0x84] ss:$8 sps:$4 sm:$0xff]   ;;  %v2067_v22 = vld [vmem:[%s2198_s10 + $0x80] ss:$8 sps:$4 sm:$0xff]   ;;  %v2073_v23 = vld [vmem:[%s2198_s10 + $0x94] ss:$8 sps:$4 sm:$0xff]  }
  0x13   : > { %1652 = vmatprep.mubr.msk.bf16.mxu1 %vm571_vm0, %v2069_v12  ;;  %v2060_v24 = vld [vmem:[%s2198_s10 + $0x10] ss:$8 sps:$4 sm:$0xff]   ;;  %v2061_v25 = vld [vmem:[%s2198_s10 + $0x24] ss:$8 sps:$4 sm:$0xff]   ;;  %v2063_v28 = vld [vmem:[%s2198_s10 + $0x20] ss:$8 sps:$4 sm:$0xff]  }
  0x14   : > { %627 = vmatpush1.bf16.msra.mxu0 %v2039_v7  ;;  %1997 = vmatpush1.bf16.msra.mxu1 %v2039_v7  ;;  %v2075_v26 = vld [vmem:[%s2198_s10 + $0x90] ss:$8 sps:$4 sm:$0xff]   ;;  %v2079_v27 = vld [vmem:[%s2198_s10 + $0xa4] ss:$8 sps:$4 sm:$0xff]   ;;  %v2064_v29 = vld [vmem:[%s2198_s10 + $0x34] ss:$8 sps:$4 sm:$0xff]  }
  0x15   : > { %628 = vmatprep.subr.bf16.mxu0 %v2040_v8  ;;  %1989 = vmatprep.subr.bf16.mxu1 %v2040_v8  ;;  %v2081_v30 = vld [vmem:[%s2198_s10 + $0xa0] ss:$8 sps:$4 sm:$0xff]   ;;  %v2085_v31 = vld [vmem:[%s2198_s10 + $0xb4] ss:$8 sps:$4 sm:$0xff]   ;;  %v2066_v32 = vld [vmem:[%s2198_s10 + $0x30] ss:$8 sps:$4 sm:$0xff]  }
  0x16   : > { %v2070_v33 = vld [vmem:[%s2198_s10 + $0x44] ss:$8 sps:$4 sm:$0xff]   ;;  %v2087_v34 = vld [vmem:[%s2198_s10 + $0xb0] ss:$8 sps:$4 sm:$0xff]   ;;  %v2072_v36 = vld [vmem:[%s2198_s10 + $0x40] ss:$8 sps:$4 sm:$0xff]  }
  0x17   : > { %v2091_v35 = vld [vmem:[%s2198_s10 + $0xc4] ss:$8 sps:$4 sm:$0xff]   ;;  %v2076_v37 = vld [vmem:[%s2198_s10 + $0x54] ss:$8 sps:$4 sm:$0xff]   ;;  %v2093_v38 = vld [vmem:[%s2198_s10 + $0xc0] ss:$8 sps:$4 sm:$0xff]  }
  0x18   : > { %629 = vmatpush1.bf16.msra.mxu0 %v2042_v10  ;;  %1998 = vmatpush1.bf16.msra.mxu1 %v2042_v10  ;;  %v2094_v39 = vld [vmem:[%s2198_s10 + $0xd4] ss:$8 sps:$4 sm:$0xff]   ;;  %v2078_v40 = vld [vmem:[%s2198_s10 + $0x50] ss:$8 sps:$4 sm:$0xff]   ;;  %v2082_v41 = vld [vmem:[%s2198_s10 + $0x64] ss:$8 sps:$4 sm:$0xff]  }
  0x19   : > { %630 = vmatprep.subr.bf16.mxu0 %v2043_v11  ;;  %1990 = vmatprep.subr.bf16.mxu1 %v2043_v11  ;;  %v2096_v42 = vld [vmem:[%s2198_s10 + $0xd0] ss:$8 sps:$4 sm:$0xff]   ;;  %v2097_v43 = vld [vmem:[%s2198_s10 + $0xe4] ss:$8 sps:$4 sm:$0xff]   ;;  %v2084_v44 = vld [vmem:[%s2198_s10 + $0x60] ss:$8 sps:$4 sm:$0xff]  }
  0x1a   : > { %v2088_v45 = vld [vmem:[%s2198_s10 + $0x74] ss:$8 sps:$4 sm:$0xff]   ;;  %v2099_v46 = vld [vmem:[%s2198_s10 + $0xe0] ss:$8 sps:$4 sm:$0xff]   ;;  %v2090_v48 = vld [vmem:[%s2198_s10 + $0x70] ss:$8 sps:$4 sm:$0xff]  }
  0x1b   : > { %v2100_v47 = vld [vmem:[%s2198_s10 + $0xf4] ss:$8 sps:$4 sm:$0xff]   ;;  %v2102_v49 = vld [vmem:[%s2198_s10 + $0xf0] ss:$8 sps:$4 sm:$0xff]   ;;  %s1730_s22 = sshll.u32 %s2539_s15, 2 }
  0x1c   : > { %631 = vmatpush1.bf16.msra.mxu0 %v2045_v13  ;;  %1999 = vmatpush1.bf16.msra.mxu1 %v2045_v13  ;;  %s285_s25 = scalar_lea.vmem %s2533_s4, %s1730_s22 }
  0x1d   : > { %632 = vmatprep.subr.bf16.mxu0 %v2046_v14  ;;  %1991 = vmatprep.subr.bf16.mxu1 %v2046_v14 }
  0x20   : > { %633 = vmatpush1.bf16.msra.mxu0 %v2048_v15  ;;  %2000 = vmatpush1.bf16.msra.mxu1 %v2048_v15 }
  0x21   : > { %634 = vmatprep.subr.bf16.mxu0 %v2049_v16  ;;  %1992 = vmatprep.subr.bf16.mxu1 %v2049_v16 }
  0x24   : > { %635 = vmatpush1.bf16.msra.mxu0 %v2051_v17  ;;  %2001 = vmatpush1.bf16.msra.mxu1 %v2051_v17 }
  0x25   : > { %636 = vmatprep.subr.bf16.mxu0 %v2052_v18  ;;  %1993 = vmatprep.subr.bf16.mxu1 %v2052_v18 }
  0x28   : > { %637 = vmatpush1.bf16.msra.mxu0 %v2054_v19  ;;  %2002 = vmatpush1.bf16.msra.mxu1 %v2054_v19 }
  0x2b   : > { %653 = vmatmul.mubr.bf16.vlgmr.msra.gmra.mrb[0].mxu0 %v2055_v20  ;;  %733 = vmatmul.mubr.bf16.vlgmr.msra.gmra.mrb[0].mxu1 %v2067_v22 }
  0x2c   : > { %1645 = vmatprep.mubr.msk.bf16.mxu0 %vm571_vm0, %v2058_v21  ;;  %1653 = vmatprep.mubr.msk.bf16.mxu1 %vm571_vm0, %v2073_v23 }
  0x33   : > { %663 = vmatmul.mubr.bf16.gmra.mrb[4].mxu0 %v2060_v24  ;;  %743 = vmatmul.mubr.bf16.gmra.mrb[4].mxu1 %v2075_v26 }
  0x34   : > { %1646 = vmatprep.mubr.msk.bf16.mxu0 %vm571_vm0, %v2061_v25  ;;  %1654 = vmatprep.mubr.msk.bf16.mxu1 %vm571_vm0, %v2079_v27 }
  0x3b   : > { %673 = vmatmul.mubr.bf16.gmra.mrb[8].mxu0 %v2063_v28  ;;  %753 = vmatmul.mubr.bf16.gmra.mrb[8].mxu1 %v2081_v30 }
  0x3c   : > { %1647 = vmatprep.mubr.msk.bf16.mxu0 %vm571_vm0, %v2064_v29  ;;  %1655 = vmatprep.mubr.msk.bf16.mxu1 %vm571_vm0, %v2085_v31 }
  0x43   : > { %683 = vmatmul.mubr.bf16.gmra.mrb[12].mxu0 %v2066_v32  ;;  %763 = vmatmul.mubr.bf16.gmra.mrb[12].mxu1 %v2087_v34 }
  0x44   : > { %1648 = vmatprep.mubr.msk.bf16.mxu0 %vm571_vm0, %v2070_v33  ;;  %1656 = vmatprep.mubr.msk.bf16.mxu1 %vm571_vm0, %v2091_v35 }
  0x4b   : > { %693 = vmatmul.mubr.bf16.gmra.mrb[16].mxu0 %v2072_v36  ;;  %773 = vmatmul.mubr.bf16.gmra.mrb[16].mxu1 %v2093_v38 }
  0x4c   : > { %1649 = vmatprep.mubr.msk.bf16.mxu0 %vm571_vm0, %v2076_v37  ;;  %1657 = vmatprep.mubr.msk.bf16.mxu1 %vm571_vm0, %v2094_v39 }
  0x53   : > { %703 = vmatmul.mubr.bf16.gmra.mrb[20].mxu0 %v2078_v40  ;;  %783 = vmatmul.mubr.bf16.gmra.mrb[20].mxu1 %v2096_v42 }
  0x54   : > { %1650 = vmatprep.mubr.msk.bf16.mxu0 %vm571_vm0, %v2082_v41  ;;  %1658 = vmatprep.mubr.msk.bf16.mxu1 %vm571_vm0, %v2097_v43 }
  0x5b   : > { %713 = vmatmul.mubr.bf16.gmra.mrb[24].mxu0 %v2084_v44  ;;  %793 = vmatmul.mubr.bf16.gmra.mrb[24].mxu1 %v2099_v46 }
  0x5c   : > { %1651 = vmatprep.mubr.msk.bf16.mxu0 %vm571_vm0, %v2088_v45  ;;  %1659 = vmatprep.mubr.msk.bf16.mxu1 %vm571_vm0, %v2100_v47 }
  0x63   : > { %723 = vmatmul.mubr.bf16.gmra.mrb[28].mxu0 %v2090_v48  ;;  %803 = vmatmul.mubr.bf16.gmra.mrb[28].mxu1 %v2102_v49 }
  0xfe   : > { %v654_v50 = vpop.f32.mrb[0].mxu0  ;;  %v2282_v52 = vpop.f32.mrb[0].mxu1 }
  0xff   : > { %v656_v51 = vpop.f32.mrb[1].mxu0  ;;  %v2289_v54 = vpop.f32.mrb[1].mxu1  ;;  %v910_v55 = vmul.f32 %v654_v50, %v654_v50 }
 0x100   : > { %v658_v53 = vpop.f32.mrb[2].mxu0  ;;  %v2296_v60 = vpop.f32.mrb[2].mxu1  ;;  %v911_v61 = vmul.f32 %v656_v51, %v656_v51 }
 0x101   : > { %v813_v56 = vadd.f32 %v658_v53, %v654_v50  ;;  %v912_v57 = vmul.f32 %v658_v53, %v658_v53  ;;  %v1798_v58 = vpack.c.bf16 %v658_v53, %v654_v50  ;;  %v660_v59 = vpop.f32.mrb[3].mxu0  ;;  %v2298_v1 = vpop.f32.mrb[3].mxu1  ;;  %v1838_v3 = vpack.c.bf16 %v2296_v60, %v2282_v52 }
 0x102   : > { %v850_v62 = vadd.f32 %v660_v59, %v656_v51  ;;  %v913_v63 = vmul.f32 %v660_v59, %v660_v59  ;;  %v1878_v0 = vpack.c.bf16 %v660_v59, %v656_v51  ;;  %v1918_v4 = vpack.c.bf16 %v2298_v1, %v2289_v54 }
 0x103   : > { %v974_v2 = vadd.f32 %v912_v57, %v910_v55  ;;  %1799 = vst [vmem:[%s2287_s19] sm:$0xff] %v1798_v58   ;;  %1962 = vst [vmem:[%s2287_s19 + $0x40] sm:$0xff] %v1838_v3  }
 0x104   : > { %v1011_v5 = vadd.f32 %v913_v63, %v911_v61  ;;  %1879 = vst [vmem:[%s2294_s21] sm:$0xff] %v1878_v0   ;;  %1977 = vst [vmem:[%s2294_s21 + $0x40] sm:$0xff] %v1918_v4  }
 0x106   : > { %v664_v6 = vpop.f32.mrb[4].mxu0  ;;  %v2308_v10 = vpop.f32.mrb[4].mxu1 }
 0x107   : > { %v814_v7 = vadd.f32 %v813_v56, %v664_v6  ;;  %v914_v8 = vmul.f32 %v664_v6, %v664_v6  ;;  %v666_v9 = vpop.f32.mrb[5].mxu0  ;;  %v2310_v14 = vpop.f32.mrb[5].mxu1 }
 0x108   : > { %v851_v11 = vadd.f32 %v850_v62, %v666_v9  ;;  %v915_v12 = vmul.f32 %v666_v9, %v666_v9  ;;  %v668_v13 = vpop.f32.mrb[6].mxu0  ;;  %v2312_v20 = vpop.f32.mrb[6].mxu1 }
 0x109   : > { %v975_v15 = vadd.f32 %v974_v2, %v914_v8  ;;  %v815_v16 = vadd.f32 %v814_v7, %v668_v13  ;;  %v916_v17 = vmul.f32 %v668_v13, %v668_v13  ;;  %v1803_v18 = vpack.c.bf16 %v668_v13, %v664_v6  ;;  %v670_v19 = vpop.f32.mrb[7].mxu0  ;;  %v2314_v25 = vpop.f32.mrb[7].mxu1 }
 0x10a   : > { %v1012_v21 = vadd.f32 %v1011_v5, %v915_v12  ;;  %v852_v22 = vadd.f32 %v851_v11, %v670_v19  ;;  %v917_v23 = vmul.f32 %v670_v19, %v670_v19  ;;  %v1883_v24 = vpack.c.bf16 %v670_v19, %v666_v9 }
 0x10b   : > { %v976_v26 = vadd.f32 %v975_v15, %v916_v17  ;;  %1955 = vst [vmem:[%s2287_s19 + $0x8] sm:$0xff] %v1803_v18   ;;  %v1843_v27 = vpack.c.bf16 %v2312_v20, %v2308_v10  ;;  %v1923_v29 = vpack.c.bf16 %v2314_v25, %v2310_v14 }
 0x10c   : > { %v1013_v28 = vadd.f32 %v1012_v21, %v917_v23  ;;  %1970 = vst [vmem:[%s2294_s21 + $0x8] sm:$0xff] %v1883_v24  }
 0x10d   : > { %1963 = vst [vmem:[%s2287_s19 + $0x48] sm:$0xff] %v1843_v27   ;;  %1978 = vst [vmem:[%s2294_s21 + $0x48] sm:$0xff] %v1923_v29  }
 0x10e   : > { %v674_v30 = vpop.f32.mrb[8].mxu0  ;;  %v2324_v34 = vpop.f32.mrb[8].mxu1 }
 0x10f   : > { %v816_v31 = vadd.f32 %v815_v16, %v674_v30  ;;  %v918_v32 = vmul.f32 %v674_v30, %v674_v30  ;;  %v676_v33 = vpop.f32.mrb[9].mxu0  ;;  %v2326_v38 = vpop.f32.mrb[9].mxu1 }
 0x110   : > { %v853_v35 = vadd.f32 %v852_v22, %v676_v33  ;;  %v919_v36 = vmul.f32 %v676_v33, %v676_v33  ;;  %v678_v37 = vpop.f32.mrb[10].mxu0  ;;  %v2328_v44 = vpop.f32.mrb[10].mxu1 }
 0x111   : > { %v977_v39 = vadd.f32 %v976_v26, %v918_v32  ;;  %v817_v40 = vadd.f32 %v816_v31, %v678_v37  ;;  %v920_v41 = vmul.f32 %v678_v37, %v678_v37  ;;  %v1808_v42 = vpack.c.bf16 %v678_v37, %v674_v30  ;;  %v680_v43 = vpop.f32.mrb[11].mxu0  ;;  %v2330_v49 = vpop.f32.mrb[11].mxu1 }
 0x112   : > { %v1014_v45 = vadd.f32 %v1013_v28, %v919_v36  ;;  %v854_v46 = vadd.f32 %v853_v35, %v680_v43  ;;  %v921_v47 = vmul.f32 %v680_v43, %v680_v43  ;;  %v1888_v48 = vpack.c.bf16 %v680_v43, %v676_v33 }
 0x113   : > { %v978_v50 = vadd.f32 %v977_v39, %v920_v41  ;;  %1956 = vst [vmem:[%s2287_s19 + $0x10] sm:$0xff] %v1808_v42   ;;  %v1848_v51 = vpack.c.bf16 %v2328_v44, %v2324_v34  ;;  %v1928_v55 = vpack.c.bf16 %v2330_v49, %v2326_v38 }
 0x114   : > { %v1015_v53 = vadd.f32 %v1014_v45, %v921_v47  ;;  %1971 = vst [vmem:[%s2294_s21 + $0x10] sm:$0xff] %v1888_v48  }
 0x115   : > { %1964 = vst [vmem:[%s2287_s19 + $0x50] sm:$0xff] %v1848_v51   ;;  %1979 = vst [vmem:[%s2294_s21 + $0x50] sm:$0xff] %v1928_v55  }
 0x116   : > { %v684_v56 = vpop.f32.mrb[12].mxu0  ;;  %v2340_v61 = vpop.f32.mrb[12].mxu1 }
 0x117   : > { %v818_v57 = vadd.f32 %v817_v40, %v684_v56  ;;  %v922_v58 = vmul.f32 %v684_v56, %v684_v56  ;;  %v686_v59 = vpop.f32.mrb[13].mxu0  ;;  %v2342_v2 = vpop.f32.mrb[13].mxu1 }
 0x118   : > { %v855_v62 = vadd.f32 %v854_v46, %v686_v59  ;;  %v923_v63 = vmul.f32 %v686_v59, %v686_v59  ;;  %v688_v0 = vpop.f32.mrb[14].mxu0  ;;  %v2344_v8 = vpop.f32.mrb[14].mxu1 }
 0x119   : > { %v979_v3 = vadd.f32 %v978_v50, %v922_v58  ;;  %v819_v4 = vadd.f32 %v818_v57, %v688_v0  ;;  %v924_v5 = vmul.f32 %v688_v0, %v688_v0  ;;  %v1813_v6 = vpack.c.bf16 %v688_v0, %v684_v56  ;;  %v690_v7 = vpop.f32.mrb[15].mxu0  ;;  %v2346_v15 = vpop.f32.mrb[15].mxu1 }
 0x11a   : > { %v1016_v9 = vadd.f32 %v1015_v53, %v923_v63  ;;  %v856_v11 = vadd.f32 %v855_v62, %v690_v7  ;;  %v925_v12 = vmul.f32 %v690_v7, %v690_v7  ;;  %v1893_v13 = vpack.c.bf16 %v690_v7, %v686_v59 }
 0x11b   : > { %v980_v16 = vadd.f32 %v979_v3, %v924_v5  ;;  %1957 = vst [vmem:[%s2287_s19 + $0x18] sm:$0xff] %v1813_v6   ;;  %v1853_v17 = vpack.c.bf16 %v2344_v8, %v2340_v61  ;;  %v1933_v19 = vpack.c.bf16 %v2346_v15, %v2342_v2 }
 0x11c   : > { %v1017_v18 = vadd.f32 %v1016_v9, %v925_v12  ;;  %1972 = vst [vmem:[%s2294_s21 + $0x18] sm:$0xff] %v1893_v13  }
 0x11d   : > { %1965 = vst [vmem:[%s2287_s19 + $0x58] sm:$0xff] %v1853_v17   ;;  %1980 = vst [vmem:[%s2294_s21 + $0x58] sm:$0xff] %v1933_v19  }
 0x11e   : > { %v694_v21 = vpop.f32.mrb[16].mxu0  ;;  %v2356_v26 = vpop.f32.mrb[16].mxu1 }
 0x11f   : > { %v820_v22 = vadd.f32 %v819_v4, %v694_v21  ;;  %v926_v23 = vmul.f32 %v694_v21, %v694_v21  ;;  %v696_v24 = vpop.f32.mrb[17].mxu0  ;;  %v2358_v30 = vpop.f32.mrb[17].mxu1 }
 0x120   : > { %v857_v27 = vadd.f32 %v856_v11, %v696_v24  ;;  %v927_v28 = vmul.f32 %v696_v24, %v696_v24  ;;  %v698_v29 = vpop.f32.mrb[18].mxu0  ;;  %v2360_v37 = vpop.f32.mrb[18].mxu1 }
 0x121   : > { %v981_v31 = vadd.f32 %v980_v16, %v926_v23  ;;  %v821_v32 = vadd.f32 %v820_v22, %v698_v29  ;;  %v928_v33 = vmul.f32 %v698_v29, %v698_v29  ;;  %v1818_v35 = vpack.c.bf16 %v698_v29, %v694_v21  ;;  %v700_v36 = vpop.f32.mrb[19].mxu0  ;;  %v2362_v43 = vpop.f32.mrb[19].mxu1 }
 0x122   : > { %v1018_v39 = vadd.f32 %v1017_v18, %v927_v28  ;;  %v858_v40 = vadd.f32 %v857_v27, %v700_v36  ;;  %v929_v41 = vmul.f32 %v700_v36, %v700_v36  ;;  %v1898_v42 = vpack.c.bf16 %v700_v36, %v696_v24 }
 0x123   : > { %v982_v45 = vadd.f32 %v981_v31, %v928_v33  ;;  %1958 = vst [vmem:[%s2287_s19 + $0x20] sm:$0xff] %v1818_v35   ;;  %v1858_v46 = vpack.c.bf16 %v2360_v37, %v2356_v26  ;;  %v1938_v48 = vpack.c.bf16 %v2362_v43, %v2358_v30 }
 0x124   : > { %v1019_v47 = vadd.f32 %v1018_v39, %v929_v41  ;;  %1973 = vst [vmem:[%s2294_s21 + $0x20] sm:$0xff] %v1898_v42  }
 0x125   : > { %1966 = vst [vmem:[%s2287_s19 + $0x60] sm:$0xff] %v1858_v46   ;;  %1981 = vst [vmem:[%s2294_s21 + $0x60] sm:$0xff] %v1938_v48  }
 0x126   : > { %v704_v50 = vpop.f32.mrb[20].mxu0  ;;  %v2372_v56 = vpop.f32.mrb[20].mxu1 }
 0x127   : > { %v822_v51 = vadd.f32 %v821_v32, %v704_v50  ;;  %v930_v53 = vmul.f32 %v704_v50, %v704_v50  ;;  %v706_v55 = vpop.f32.mrb[21].mxu0  ;;  %v2374_v62 = vpop.f32.mrb[21].mxu1 }
 0x128   : > { %v859_v57 = vadd.f32 %v858_v40, %v706_v55  ;;  %v931_v58 = vmul.f32 %v706_v55, %v706_v55  ;;  %v708_v59 = vpop.f32.mrb[22].mxu0  ;;  %v2376_v6 = vpop.f32.mrb[22].mxu1 }
 0x129   : > { %v983_v63 = vadd.f32 %v982_v45, %v930_v53  ;;  %v823_v0 = vadd.f32 %v822_v51, %v708_v59  ;;  %v932_v3 = vmul.f32 %v708_v59, %v708_v59  ;;  %v1823_v4 = vpack.c.bf16 %v708_v59, %v704_v50  ;;  %v710_v5 = vpop.f32.mrb[23].mxu0  ;;  %v2378_v13 = vpop.f32.mrb[23].mxu1 }
 0x12a   : > { %v1020_v7 = vadd.f32 %v1019_v47, %v931_v58  ;;  %v860_v9 = vadd.f32 %v859_v57, %v710_v5  ;;  %v933_v11 = vmul.f32 %v710_v5, %v710_v5  ;;  %v1903_v12 = vpack.c.bf16 %v710_v5, %v706_v55 }
 0x12b   : > { %v984_v16 = vadd.f32 %v983_v63, %v932_v3  ;;  %1959 = vst [vmem:[%s2287_s19 + $0x28] sm:$0xff] %v1823_v4   ;;  %v1863_v17 = vpack.c.bf16 %v2376_v6, %v2372_v56  ;;  %v1943_v19 = vpack.c.bf16 %v2378_v13, %v2374_v62 }
 0x12c   : > { %v1021_v18 = vadd.f32 %v1020_v7, %v933_v11  ;;  %1974 = vst [vmem:[%s2294_s21 + $0x28] sm:$0xff] %v1903_v12  }
 0x12d   : > { %1967 = vst [vmem:[%s2287_s19 + $0x68] sm:$0xff] %v1863_v17   ;;  %1982 = vst [vmem:[%s2294_s21 + $0x68] sm:$0xff] %v1943_v19  }
 0x12e   : > { %v714_v21 = vpop.f32.mrb[24].mxu0  ;;  %v2388_v27 = vpop.f32.mrb[24].mxu1 }
 0x12f   : > { %v824_v22 = vadd.f32 %v823_v0, %v714_v21  ;;  %v934_v23 = vmul.f32 %v714_v21, %v714_v21  ;;  %v716_v24 = vpop.f32.mrb[25].mxu0  ;;  %v2390_v32 = vpop.f32.mrb[25].mxu1 }
 0x130   : > { %v861_v28 = vadd.f32 %v860_v9, %v716_v24  ;;  %v935_v29 = vmul.f32 %v716_v24, %v716_v24  ;;  %v718_v31 = vpop.f32.mrb[26].mxu0  ;;  %v2392_v41 = vpop.f32.mrb[26].mxu1 }
 0x131   : > { %v985_v33 = vadd.f32 %v984_v16, %v934_v23  ;;  %v825_v35 = vadd.f32 %v824_v22, %v718_v31  ;;  %v936_v36 = vmul.f32 %v718_v31, %v718_v31  ;;  %v1828_v39 = vpack.c.bf16 %v718_v31, %v714_v21  ;;  %v720_v40 = vpop.f32.mrb[27].mxu0  ;;  %v2394_v48 = vpop.f32.mrb[27].mxu1 }
 0x132   : > { %v1022_v42 = vadd.f32 %v1021_v18, %v935_v29  ;;  %v862_v45 = vadd.f32 %v861_v28, %v720_v40  ;;  %v937_v46 = vmul.f32 %v720_v40, %v720_v40  ;;  %v1908_v47 = vpack.c.bf16 %v720_v40, %v716_v24 }
 0x133   : > { %v986_v50 = vadd.f32 %v985_v33, %v936_v36  ;;  %1960 = vst [vmem:[%s2287_s19 + $0x30] sm:$0xff] %v1828_v39   ;;  %v1868_v51 = vpack.c.bf16 %v2392_v41, %v2388_v27  ;;  %v1948_v55 = vpack.c.bf16 %v2394_v48, %v2390_v32  ;;  %v942_v28 = vmul.f32 %v2282_v52, %v2282_v52 }
 0x134   : > { %v1023_v53 = vadd.f32 %v1022_v42, %v937_v46  ;;  %1975 = vst [vmem:[%s2294_s21 + $0x30] sm:$0xff] %v1908_v47   ;;  %v943_v33 = vmul.f32 %v2289_v54, %v2289_v54  ;;  %v944_v40 = vmul.f32 %v2296_v60, %v2296_v60  ;;  %v945_v46 = vmul.f32 %v2298_v1, %v2298_v1 }
 0x135   : > { %1968 = vst [vmem:[%s2287_s19 + $0x70] sm:$0xff] %v1868_v51   ;;  %1983 = vst [vmem:[%s2294_s21 + $0x70] sm:$0xff] %v1948_v55  }
 0x136   : > { %v724_v57 = vpop.f32.mrb[28].mxu0  ;;  %v2404_v0 = vpop.f32.mrb[28].mxu1 }
 0x137   : > { %v826_v58 = vadd.f32 %v825_v35, %v724_v57  ;;  %v938_v59 = vmul.f32 %v724_v57, %v724_v57  ;;  %v726_v63 = vpop.f32.mrb[29].mxu0  ;;  %v2406_v7 = vpop.f32.mrb[29].mxu1 }
 0x138   : > { %v863_v3 = vadd.f32 %v862_v45, %v726_v63  ;;  %v939_v4 = vmul.f32 %v726_v63, %v726_v63  ;;  %v728_v5 = vpop.f32.mrb[30].mxu0  ;;  %v2408_v18 = vpop.f32.mrb[30].mxu1 }
 0x139   : > { %v987_v9 = vadd.f32 %v986_v50, %v938_v59  ;;  %v827_v11 = vadd.f32 %v826_v58, %v728_v5  ;;  %v940_v12 = vmul.f32 %v728_v5, %v728_v5  ;;  %v1833_v16 = vpack.c.bf16 %v728_v5, %v724_v57  ;;  %v730_v17 = vpop.f32.mrb[31].mxu0  ;;  %v2410_v24 = vpop.f32.mrb[31].mxu1 }
 0x13a   : > { %v1024_v19 = vadd.f32 %v1023_v53, %v939_v4  ;;  %v864_v21 = vadd.f32 %v863_v3, %v730_v17  ;;  %v941_v22 = vmul.f32 %v730_v17, %v730_v17  ;;  %v1913_v23 = vpack.c.bf16 %v730_v17, %v726_v63 }
 0x13b   : > { %v828_v29 = vadd.f32 %v827_v11, %v2282_v52  ;;  %v988_v31 = vadd.f32 %v987_v9, %v940_v12  ;;  %1961 = vst [vmem:[%s2287_s19 + $0x38] sm:$0xff] %v1833_v16   ;;  %v1873_v39 = vpack.c.bf16 %v2408_v18, %v2404_v0  ;;  %v1953_v52 = vpack.c.bf16 %v2410_v24, %v2406_v7 }
 0x13c   : > { %v865_v35 = vadd.f32 %v864_v21, %v2289_v54  ;;  %v1025_v36 = vadd.f32 %v1024_v19, %v941_v22  ;;  %1976 = vst [vmem:[%s2294_s21 + $0x38] sm:$0xff] %v1913_v23   ;;  %v946_v50 = vmul.f32 %v2308_v10, %v2308_v10  ;;  %v948_v58 = vmul.f32 %v2312_v20, %v2312_v20 }
 0x13d   : > { %v829_v42 = vadd.f32 %v828_v29, %v2296_v60  ;;  %v989_v45 = vadd.f32 %v988_v31, %v942_v28  ;;  %1969 = vst [vmem:[%s2287_s19 + $0x78] sm:$0xff] %v1873_v39   ;;  %1984 = vst [vmem:[%s2294_s21 + $0x78] sm:$0xff] %v1953_v52   ;;  %v947_v60 = vmul.f32 %v2310_v14, %v2310_v14 }
 0x13e   : > { %v866_v47 = vadd.f32 %v865_v35, %v2298_v1  ;;  %v1026_v54 = vadd.f32 %v1025_v36, %v943_v33  ;;  %v949_v63 = vmul.f32 %v2314_v25, %v2314_v25  ;;  %v950_v4 = vmul.f32 %v2324_v34, %v2324_v34 }
 0x13f   : > { %v830_v51 = vadd.f32 %v829_v42, %v2308_v10  ;;  %v990_v53 = vadd.f32 %v989_v45, %v944_v40  ;;  %v958_v39 = vmul.f32 %v2356_v26, %v2356_v26  ;;  %v959_v42 = vmul.f32 %v2358_v30, %v2358_v30 }
 0x140   : > { %v867_v55 = vadd.f32 %v866_v47, %v2310_v14  ;;  %v1027_v57 = vadd.f32 %v1026_v54, %v945_v46  ;;  %v951_v14 = vmul.f32 %v2326_v38, %v2326_v38  ;;  %v960_v46 = vmul.f32 %v2360_v37, %v2360_v37 }
 0x141   : > { %v831_v1 = vadd.f32 %v830_v51, %v2312_v20  ;;  %v991_v59 = vadd.f32 %v990_v53, %v946_v50  ;;  %v952_v20 = vmul.f32 %v2328_v44, %v2328_v44  ;;  %v961_v54 = vmul.f32 %v2362_v43, %v2362_v43 }
 0x142   : > { %v868_v3 = vadd.f32 %v867_v55, %v2314_v25  ;;  %v1028_v10 = vadd.f32 %v1027_v57, %v947_v60  ;;  %v953_v25 = vmul.f32 %v2330_v49, %v2330_v49  ;;  %v962_v51 = vmul.f32 %v2372_v56, %v2372_v56 }
 0x143   : > { %v992_v5 = vadd.f32 %v991_v59, %v948_v58  ;;  %v832_v9 = vadd.f32 %v831_v1, %v2324_v34  ;;  %v954_v34 = vmul.f32 %v2340_v61, %v2340_v61  ;;  %v963_v60 = vmul.f32 %v2374_v62, %v2374_v62 }
 0x144   : > { %v1029_v11 = vadd.f32 %v1028_v10, %v949_v63  ;;  %v869_v12 = vadd.f32 %v868_v3, %v2326_v38  ;;  %v955_v38 = vmul.f32 %v2342_v2, %v2342_v2  ;;  %v964_v57 = vmul.f32 %v2376_v6, %v2376_v6 }
 0x145   : > { %v833_v16 = vadd.f32 %v832_v9, %v2328_v44  ;;  %v993_v17 = vadd.f32 %v992_v5, %v950_v4  ;;  %v956_v44 = vmul.f32 %v2344_v8, %v2344_v8  ;;  %v965_v1 = vmul.f32 %v2378_v13, %v2378_v13 }
 0x146   : > { %v870_v19 = vadd.f32 %v869_v12, %v2330_v49  ;;  %v1030_v21 = vadd.f32 %v1029_v11, %v951_v14  ;;  %v957_v49 = vmul.f32 %v2346_v15, %v2346_v15  ;;  %v966_v63 = vmul.f32 %v2388_v27, %v2388_v27 }
 0x147   : > { %v834_v22 = vadd.f32 %v833_v16, %v2340_v61  ;;  %v994_v23 = vadd.f32 %v993_v17, %v952_v20  ;;  %v967_v10 = vmul.f32 %v2390_v32, %v2390_v32  ;;  %v968_v5 = vmul.f32 %v2392_v41, %v2392_v41 }
 0x148   : > { %v871_v28 = vadd.f32 %v870_v19, %v2342_v2  ;;  %v1031_v29 = vadd.f32 %v1030_v21, %v953_v25  ;;  %v971_v11 = vmul.f32 %v2406_v7, %v2406_v7  ;;  %v972_v25 = vmul.f32 %v2408_v18, %v2408_v18 }
 0x149   : > { %v835_v31 = vadd.f32 %v834_v22, %v2344_v8  ;;  %v995_v33 = vadd.f32 %v994_v23, %v954_v34 }
 0x14a   : > { %v872_v35 = vadd.f32 %v871_v28, %v2346_v15  ;;  %v1032_v36 = vadd.f32 %v1031_v29, %v955_v38 }
 0x14b   : > { %v836_v61 = vadd.f32 %v835_v31, %v2356_v26  ;;  %v996_v40 = vadd.f32 %v995_v33, %v956_v44  ;;  %v893_v31 = vlaneseq }
 0x14c   : > { %v873_v2 = vadd.f32 %v872_v35, %v2358_v30  ;;  %v1033_v45 = vadd.f32 %v1032_v36, %v957_v49 }
 0x14d   : > { %v997_v8 = vadd.f32 %v996_v40, %v958_v39  ;;  %v837_v52 = vadd.f32 %v836_v61, %v2360_v37  ;;  %vm907_vm1 = vcmp.lt.s32.totalorder %v893_v31, 256 }
 0x14e   : > { %v1034_v15 = vadd.f32 %v1033_v45, %v959_v42  ;;  %v874_v47 = vadd.f32 %v873_v2, %v2362_v43  ;;  %v894_v2 = vshrl.u32 %v893_v31, 7 }
 0x14f   : > { %v998_v26 = vadd.f32 %v997_v8, %v960_v46  ;;  %v838_v50 = vadd.f32 %v837_v52, %v2372_v56 }
 0x150   : > { %v1035_v30 = vadd.f32 %v1034_v15, %v961_v54  ;;  %v875_v53 = vadd.f32 %v874_v47, %v2374_v62 }
 0x151   : > { %v999_v55 = vadd.f32 %v998_v26, %v962_v51  ;;  %v839_v37 = vadd.f32 %v838_v50, %v2376_v6 }
 0x152   : > { %v1036_v58 = vadd.f32 %v1035_v30, %v963_v60  ;;  %v876_v43 = vadd.f32 %v875_v53, %v2378_v13  ;;  %v970_v13 = vmul.f32 %v2404_v0, %v2404_v0 }
 0x153   : > { %v1000_v59 = vadd.f32 %v999_v55, %v964_v57  ;;  %v840_v56 = vadd.f32 %v839_v37, %v2388_v27  ;;  %v969_v27 = vmul.f32 %v2394_v48, %v2394_v48 }
 0x154   : > { %v1037_v3 = vadd.f32 %v1036_v58, %v965_v1  ;;  %v877_v62 = vadd.f32 %v876_v43, %v2390_v32 }
 0x155   : > { %v1001_v4 = vadd.f32 %v1000_v59, %v966_v63  ;;  %v841_v6 = vadd.f32 %v840_v56, %v2392_v41 }
 0x156   : > { %v1038_v9 = vadd.f32 %v1037_v3, %v967_v10  ;;  %v878_v14 = vadd.f32 %v877_v62, %v2394_v48  ;;  %v973_v48 = vmul.f32 %v2410_v24, %v2410_v24 }
 0x157   : > { %v1002_v12 = vadd.f32 %v1001_v4, %v968_v5  ;;  %v842_v32 = vadd.f32 %v841_v6, %v2404_v0 }
 0x158   : > { %v1039_v20 = vadd.f32 %v1038_v9, %v969_v27  ;;  %v879_v16 = vadd.f32 %v878_v14, %v2406_v7  ;;  %v2127_v7 = vmov 1966171168  }
 0x159   : > { %v1003_v17 = vadd.f32 %v1002_v12, %v970_v13  ;;  %v843_v41 = vadd.f32 %v842_v32, %v2408_v18  ;;  %v891_v44 = vunpack.c.l.s4 %v2127_v7 }
 0x15a   : > { %v1040_v19 = vadd.f32 %v1039_v20, %v971_v11  ;;  %v880_v21 = vadd.f32 %v879_v16, %v2410_v24 }
 0x15b   : > { %v844_v34 = vrot.slane %v843_v41, 4  ;;  %v1004_v22 = vadd.f32 %v1003_v17, %v972_v25  ;;  %v892_v24 = vunpack.c.0.s8 %v891_v44 }
 0x15c   : > { %v881_v23 = vrot.slane %v880_v21, 4  ;;  %v1041_v38 = vadd.f32 %v1040_v19, %v973_v48 }
 0x15d   : > { %v845_v0 = vadd.f32 %v844_v34, %v843_v41  ;;  %v1005_v28 = vrot.slane %v1004_v22, 4  ;;  %v895_v26 = vsub.s32 %v892_v24, %v894_v2 }
 0x15e   : > { %v882_v29 = vadd.f32 %v881_v23, %v880_v21  ;;  %v1042_v33 = vrot.slane %v1041_v38, 4 }
 0x15f   : > { %v846_v49 = vrot.slane %v845_v0, 2  ;;  %v1006_v35 = vadd.f32 %v1005_v28, %v1004_v22 }
 0x160   : > { %v883_v18 = vrot.slane %v882_v29, 2  ;;  %v1043_v36 = vadd.f32 %v1042_v33, %v1041_v38 }
 0x161   : > { %v847_v61 = vadd.f32 %v846_v49, %v845_v0  ;;  %v1007_v39 = vrot.slane %v1006_v35, 2 }
 0x162   : > { %v884_v40 = vadd.f32 %v883_v18, %v882_v29  ;;  %v1044_v42 = vrot.slane %v1043_v36, 2 }
 0x163   : > { %v848_v45 = vrot.slane %v847_v61, 1  ;;  %v1008_v8 = vadd.f32 %v1007_v39, %v1006_v35 }
 0x164   : > { %v885_v52 = vrot.slane %v884_v40, 1  ;;  %v1045_v46 = vadd.f32 %v1044_v42, %v1043_v36 }
 0x165   : > { %v849_v15 = vadd.f32 %v848_v45, %v847_v61  ;;  %v1009_v47 = vrot.slane %v1008_v8, 1 }
 0x166   : > { %v886_v54 = vadd.f32 %v885_v52, %v884_v40  ;;  %v1046_v50 = vrot.slane %v1045_v46, 1 }
 0x167   : > { %v1010_v51 = vadd.f32 %v1009_v47, %v1008_v8 }
 0x168   : > { %v889_v30 = vcombine.low %v849_v15, %v886_v54  ;;  %v1047_v53 = vadd.f32 %v1046_v50, %v1045_v46 }
 0x16a   : > { %v896_v60 = vrot.slane %v889_v30, %v895_v26  ;;  %v1050_v55 = vcombine.low %v1010_v51, %v1047_v53 }
 0x16c   : > { %v903_v37 = vrot.slane %v896_v60, %v895_v26  ;;  %v1057_v57 = vrot.slane %v1050_v55, %v895_v26 }
 0x16e   : > { %909 = vst.msk [vmem:[%s285_s25] ss:$2 sm:$0x3] %vm907_vm1, %v903_v37  ;;  %v1064_v58 = vrot.slane %v1057_v57, %v895_v26 }
 0x170   : > { %1660 = vst.msk [vmem:[%s285_s25 + $0x1] ss:$2 sm:$0x3] %vm907_vm1, %v1064_v58 }
 0x171 PF: > { %s15_s17 = sadd.s32 1, %s2125_s17   ;;  %s2534_s15 = smov %s2121_s16 }
 0x172   : > { %p12_p5 = scmp.ge.s32.totalorder %s15_s17, 4   ;;  %s2535_s16 = smov %s2537_s18 }
 0x174   :  { %14 = sbr.rel (!%p12_p5) target bundleno = 2 (0x2), region = 83 }

// kernel: squeeze.82
= control target key start
LH: loop header
LB: loop body
LE: loop exit
PB: predicated region body
PF: predicated region fallthrough
CT: control target
= control target key end

     0   :  { %s37_s8 = smov 32   ;;  %vm7_vm0 = vcmask 261120   ;;  %s38_s9 = smov 64   ;;  %s55_s0 = inlined_call_operand.vmem [shape: f32[128], index: 0, kind: input, shape index: {}]   ;;  %s56_s1 = inlined_call_operand.vmem [shape: f32[4,32], index: 1, kind: output, shape index: {}]  }
   0x1   :  { %v4_v0 = vld [vmem:[%s55_s0] sm:$0x1]  ;;  %s36_s0 = smov 96  }
   0x2   :  { %5 = vst [vmem:[#allocation1] sm:$0x1] %v4_v0 }
   0x9   :  { %v9_v1 = vld [vmem:[#allocation1] sm:$0x1]  }
   0xa   :  { %v21_v2 = vld [vmem:[#allocation1] sm:$0x1]   ;;  %10 = vrot.lane.b32.xlu0 %v9_v1, %s36_s0 }
   0xb   :  { %22 = vrot.lane.b32.xlu1 %v21_v2, %s37_s8  ;;  %v6_v3 = vld [vmem:[#allocation1] sm:$0x1]  }
   0xc   :  { %v15_v4 = vld [vmem:[#allocation1] sm:$0x1]   ;;  %8 = vst.msk [vmem:[#allocation0] sm:$0x1] %vm7_vm0, %v6_v3  }
   0xe   :  { %16 = vrot.lane.b32.xlu0 %v15_v4, %s38_s9 }
  0x7c   :  { %v11_v5 = vpop.permute.xlu0 %10  }
  0x7d   :  { %v23_v6 = vpop.permute.xlu1 %22   ;;  %14 = vst.msk [vmem:[#allocation0 + $0x1] sm:$0x1] %vm7_vm0, %v11_v5  }
  0x7e   :  { %26 = vst.msk [vmem:[#allocation0 + $0x3] sm:$0x1] %vm7_vm0, %v23_v6  }
  0x80   :  { %v17_v7 = vpop.permute.xlu0 %16  }
  0x81   :  { %20 = vst.msk [vmem:[#allocation0 + $0x2] sm:$0x1] %vm7_vm0, %v17_v7  }
  0x88   :  { %v30_v8 = vld [vmem:[#allocation0] sm:$0xf] }
  0x89   :  { %32 = vst [vmem:[%s56_s1] sm:$0xf] %v30_v8 }

// kernel: fast_up_project_block.5
= control target key start
LH: loop header
LB: loop body
LE: loop exit
PB: predicated region body
PF: predicated region fallthrough
CT: control target
= control target key end

     0   :  { %s969_s12 = smov 0   ;;  %s971_s13 = smov 0   ;;  %s1227_s0 = inlined_call_operand.vmem [shape: bf16[2,256,128], index: 0, kind: input, shape index: {}]   ;;  %s1228_s1 = inlined_call_operand.vmem [shape: bf16[2,256,128], index: 1, kind: input, shape index: {}]   ;;  %s1229_s2 = inlined_call_operand.vmem [shape: f32[4,128], index: 2, kind: input, shape index: {}]   ;;  %s1230_s3 = inlined_call_operand.vmem [shape: f32[2,256,128], index: 3, kind: output, shape index: {}]  }
   0x1   :  { %s973_s14 = smov 0  }
   0x2 LB: > { %s25_s15 = sadd.s32 1, %s943_s13  ;;  %p727_p0 = scmp.ge.s32.totalorder %s947_s14, 1  ;;  %s947_s14 = sphi %s973_s14, %s13_s14   ;;  %s943_s13 = sphi %s971_s13, %s1232_s13   ;;  %s939_s12 = sphi %s969_s12, %s1231_s12  }
   0x3   : > { %p27_p1 = scmp.ge.s32.totalorder %s25_s15, 2  ;;  %p175_p2 = scmp.lt.s32.totalorder %s947_s14, 3 }
   0x5   : > { %s1234_s15 = smov (%p27_p1, %s25_s15), 0  ;;  %p176_p3 = pnand %p727_p0, %p175_p2 }
   0x6   : > { %p217_p4 = scmp.lt.s32.totalorder (!%p176_p3), %s939_s12, 1  ;;  %v1003_v0 = vld [vmem:[%s1229_s2] ss:$0 sm:$0xff] (!%p176_p3)  ;;  %v1008_v1 = vld [vmem:[%s1229_s2 + $0x2] ss:$0 sm:$0xff] (!%p176_p3) }
   0x7   : > { %179 = sbr.rel (%p176_p3) target bundleno = 90 (0x5a), region = 32  ;;  %v1017_v10 = vld [vmem:[%s1229_s2 + $0x1] ss:$0 sm:$0xff] (!%p176_p3)  ;;  %v1034_v29 = vld [vmem:[%s1229_s2 + $0x3] ss:$0 sm:$0xff] (!%p176_p3) }
   0xe   : > { %s1236_s12 = smov (!%p217_p4, %s939_s12), 1 }
   0xf   : > { %s740_s16 = sshll.u32 %s1236_s12, 7  ;;  %s742_s4 = sshll.u32 %s1236_s12, 8 }
  0x10   : > { %s993_s19 = scalar_lea.vmem %s1227_s0, %s740_s16  ;;  %s998_s22 = scalar_lea.vmem %s1228_s1, %s740_s16 }
  0x11   : > { %v744_v2 = vld [vmem:[%s993_s19] sm:$0xff]   ;;  %v871_v4 = vld [vmem:[%s993_s19 + $0x8] sm:$0xff]   ;;  %v872_v15 = vld [vmem:[%s993_s19 + $0x10] sm:$0xff]   ;;  %s1051_s7 = scalar_lea.vmem %s1230_s3, %s742_s4 }
  0x12   : > { %v808_v3 = vld [vmem:[%s998_s22] sm:$0xff]   ;;  %v745_v5 = vunpack.c.l.bf16 %v744_v2  ;;  %v746_v7 = vunpack.c.h.bf16 %v744_v2  ;;  %v886_v9 = vld [vmem:[%s998_s22 + $0x8] sm:$0xff]   ;;  %v749_v11 = vunpack.c.l.bf16 %v871_v4  ;;  %v750_v13 = vunpack.c.h.bf16 %v871_v4  ;;  %v887_v16 = vld [vmem:[%s998_s22 + $0x10] sm:$0xff]  }
  0x13   : > { %v809_v6 = vunpack.c.l.bf16 %v808_v3  ;;  %v810_v8 = vunpack.c.h.bf16 %v808_v3  ;;  %v813_v12 = vunpack.c.l.bf16 %v886_v9  ;;  %v814_v14 = vunpack.c.h.bf16 %v886_v9  ;;  %v873_v34 = vld [vmem:[%s993_s19 + $0x18] sm:$0xff]   ;;  %v874_v56 = vld [vmem:[%s993_s19 + $0x20] sm:$0xff]  }
  0x14   : > { %v318_v17 = vmul.f32 %v745_v5, %v1003_v0  ;;  %v319_v19 = vmul.f32 %v746_v7, %v1003_v0  ;;  %v320_v21 = vmul.f32 %v749_v11, %v1003_v0  ;;  %v321_v23 = vmul.f32 %v750_v13, %v1003_v0  ;;  %v888_v39 = vld [vmem:[%s998_s22 + $0x18] sm:$0xff]   ;;  %v889_v57 = vld [vmem:[%s998_s22 + $0x20] sm:$0xff]  }
  0x15   : > { %v454_v18 = vmul.f32 %v809_v6, %v1008_v1  ;;  %v455_v20 = vmul.f32 %v810_v8, %v1008_v1  ;;  %v456_v22 = vmul.f32 %v813_v12, %v1008_v1  ;;  %v457_v24 = vmul.f32 %v814_v14, %v1008_v1  ;;  %v875_v8 = vld [vmem:[%s993_s19 + $0x28] sm:$0xff]  }
  0x16   : > { %v354_v25 = vadd.f32 %v1017_v10, %v318_v17  ;;  %v355_v26 = vadd.f32 %v1017_v10, %v319_v19  ;;  %v753_v27 = vunpack.c.l.bf16 %v872_v15  ;;  %v817_v28 = vunpack.c.l.bf16 %v887_v16  ;;  %v890_v14 = vld [vmem:[%s998_s22 + $0x28] sm:$0xff]  }
  0x17   : > { %v356_v30 = vadd.f32 %v1017_v10, %v320_v21  ;;  %v357_v31 = vadd.f32 %v1017_v10, %v321_v23  ;;  %v754_v32 = vunpack.c.h.bf16 %v872_v15  ;;  %v818_v33 = vunpack.c.h.bf16 %v887_v16 }
  0x18   : > { %v486_v35 = vadd.f32 %v454_v18, %v354_v25  ;;  %v487_v36 = vadd.f32 %v455_v20, %v355_v26  ;;  %v322_v37 = vmul.f32 %v753_v27, %v1003_v0  ;;  %v458_v38 = vmul.f32 %v817_v28, %v1008_v1  ;;  %v876_v27 = vld [vmem:[%s993_s19 + $0x30] sm:$0xff]  }
  0x19   : > { %v488_v40 = vadd.f32 %v456_v22, %v356_v30  ;;  %v489_v41 = vadd.f32 %v457_v24, %v357_v31  ;;  %v323_v42 = vmul.f32 %v754_v32, %v1003_v0  ;;  %v459_v43 = vmul.f32 %v818_v33, %v1008_v1  ;;  %v891_v33 = vld [vmem:[%s998_s22 + $0x30] sm:$0xff]  }
  0x1a   : > { %v522_v44 = vadd.f32 %v1034_v29, %v486_v35  ;;  %v523_v45 = vadd.f32 %v1034_v29, %v487_v36  ;;  %v358_v46 = vadd.f32 %v1017_v10, %v322_v37  ;;  %v757_v47 = vunpack.c.l.bf16 %v873_v34 }
  0x1b   : > { %v524_v48 = vadd.f32 %v1034_v29, %v488_v40  ;;  %v525_v49 = vadd.f32 %v1034_v29, %v489_v41  ;;  %v359_v50 = vadd.f32 %v1017_v10, %v323_v42  ;;  %v821_v51 = vunpack.c.l.bf16 %v888_v39 }
  0x1c   : > { %v554_v52 = vmax.f32 %v522_v44, 0.0  ;;  %v555_v53 = vmax.f32 %v523_v45, 0.0  ;;  %v490_v54 = vadd.f32 %v458_v38, %v358_v46  ;;  %v324_v55 = vmul.f32 %v757_v47, %v1003_v0 }
  0x1d   : > { %v556_v58 = vmax.f32 %v524_v48, 0.0  ;;  %v557_v59 = vmax.f32 %v525_v49, 0.0  ;;  %v491_v60 = vadd.f32 %v459_v43, %v359_v50  ;;  %v460_v61 = vmul.f32 %v821_v51, %v1008_v1  ;;  %v877_v50 = vld [vmem:[%s993_s19 + $0x38] sm:$0xff]  }
  0x1e   : > { %586 = vst [vmem:[%s1051_s7] sm:$0xff] %v554_v52  ;;  %587 = vst [vmem:[%s1051_s7 + $0x8] sm:$0xff] %v555_v53  ;;  %v526_v62 = vadd.f32 %v1034_v29, %v490_v54  ;;  %v360_v63 = vadd.f32 %v1017_v10, %v324_v55  ;;  %v758_v2 = vunpack.c.h.bf16 %v873_v34  ;;  %v822_v3 = vunpack.c.h.bf16 %v888_v39  ;;  %v892_v51 = vld [vmem:[%s998_s22 + $0x38] sm:$0xff]  }
  0x1f   : > { %588 = vst [vmem:[%s1051_s7 + $0x10] sm:$0xff] %v556_v58  ;;  %589 = vst [vmem:[%s1051_s7 + $0x18] sm:$0xff] %v557_v59  ;;  %v527_v4 = vadd.f32 %v1034_v29, %v491_v60  ;;  %v761_v5 = vunpack.c.l.bf16 %v874_v56  ;;  %v825_v6 = vunpack.c.l.bf16 %v889_v57  ;;  %v762_v7 = vunpack.c.h.bf16 %v874_v56 }
  0x20   : > { %v558_v9 = vmax.f32 %v526_v62, 0.0  ;;  %v492_v11 = vadd.f32 %v460_v61, %v360_v63  ;;  %v325_v12 = vmul.f32 %v758_v2, %v1003_v0  ;;  %v461_v13 = vmul.f32 %v822_v3, %v1008_v1  ;;  %v878_v2 = vld [vmem:[%s993_s19 + $0x40] sm:$0xff]  }
  0x21   : > { %v559_v15 = vmax.f32 %v527_v4, 0.0  ;;  %v326_v16 = vmul.f32 %v761_v5, %v1003_v0  ;;  %v462_v17 = vmul.f32 %v825_v6, %v1008_v1  ;;  %v327_v18 = vmul.f32 %v762_v7, %v1003_v0  ;;  %v893_v7 = vld [vmem:[%s998_s22 + $0x40] sm:$0xff]  }
  0x22   : > { %590 = vst [vmem:[%s1051_s7 + $0x20] sm:$0xff] %v558_v9  ;;  %v528_v19 = vadd.f32 %v1034_v29, %v492_v11  ;;  %v361_v20 = vadd.f32 %v1017_v10, %v325_v12  ;;  %v826_v21 = vunpack.c.h.bf16 %v889_v57  ;;  %v765_v22 = vunpack.c.l.bf16 %v875_v8 }
  0x23   : > { %591 = vst [vmem:[%s1051_s7 + $0x28] sm:$0xff] %v559_v15  ;;  %v362_v23 = vadd.f32 %v1017_v10, %v326_v16  ;;  %v363_v24 = vadd.f32 %v1017_v10, %v327_v18  ;;  %v829_v25 = vunpack.c.l.bf16 %v890_v14  ;;  %v766_v26 = vunpack.c.h.bf16 %v875_v8 }
  0x24   : > { %v560_v28 = vmax.f32 %v528_v19, 0.0  ;;  %v493_v30 = vadd.f32 %v461_v13, %v361_v20  ;;  %v463_v31 = vmul.f32 %v826_v21, %v1008_v1  ;;  %v328_v32 = vmul.f32 %v765_v22, %v1003_v0  ;;  %v879_v21 = vld [vmem:[%s993_s19 + $0x48] sm:$0xff]  }
  0x25   : > { %v494_v34 = vadd.f32 %v462_v17, %v362_v23  ;;  %v464_v35 = vmul.f32 %v829_v25, %v1008_v1  ;;  %v329_v36 = vmul.f32 %v766_v26, %v1003_v0  ;;  %v830_v37 = vunpack.c.h.bf16 %v890_v14  ;;  %v894_v26 = vld [vmem:[%s998_s22 + $0x48] sm:$0xff]  }
  0x26   : > { %592 = vst [vmem:[%s1051_s7 + $0x30] sm:$0xff] %v560_v28  ;;  %v529_v38 = vadd.f32 %v1034_v29, %v493_v30  ;;  %v495_v39 = vadd.f32 %v463_v31, %v363_v24  ;;  %v364_v40 = vadd.f32 %v1017_v10, %v328_v32  ;;  %v769_v41 = vunpack.c.l.bf16 %v876_v27 }
  0x27   : > { %v530_v42 = vadd.f32 %v1034_v29, %v494_v34  ;;  %v365_v43 = vadd.f32 %v1017_v10, %v329_v36  ;;  %v465_v44 = vmul.f32 %v830_v37, %v1008_v1  ;;  %v833_v45 = vunpack.c.l.bf16 %v891_v33 }
  0x28   : > { %v561_v46 = vmax.f32 %v529_v38, 0.0  ;;  %v531_v47 = vadd.f32 %v1034_v29, %v495_v39  ;;  %v496_v48 = vadd.f32 %v464_v35, %v364_v40  ;;  %v330_v49 = vmul.f32 %v769_v41, %v1003_v0 }
  0x29   : > { %v562_v52 = vmax.f32 %v530_v42, 0.0  ;;  %v497_v53 = vadd.f32 %v465_v44, %v365_v43  ;;  %v466_v54 = vmul.f32 %v833_v45, %v1008_v1  ;;  %v770_v55 = vunpack.c.h.bf16 %v876_v27  ;;  %v880_v44 = vld [vmem:[%s993_s19 + $0x50] sm:$0xff]  }
  0x2a   : > { %593 = vst [vmem:[%s1051_s7 + $0x38] sm:$0xff] %v561_v46  ;;  %v563_v56 = vmax.f32 %v531_v47, 0.0  ;;  %v532_v57 = vadd.f32 %v1034_v29, %v496_v48  ;;  %v366_v58 = vadd.f32 %v1017_v10, %v330_v49  ;;  %v834_v59 = vunpack.c.h.bf16 %v891_v33  ;;  %v895_v45 = vld [vmem:[%s998_s22 + $0x50] sm:$0xff]  }
  0x2b   : > { %594 = vst [vmem:[%s1051_s7 + $0x40] sm:$0xff] %v562_v52  ;;  %v533_v60 = vadd.f32 %v1034_v29, %v497_v53  ;;  %v331_v61 = vmul.f32 %v770_v55, %v1003_v0  ;;  %v773_v62 = vunpack.c.l.bf16 %v877_v50  ;;  %v837_v63 = vunpack.c.l.bf16 %v892_v51 }
  0x2c   : > { %595 = vst [vmem:[%s1051_s7 + $0x48] sm:$0xff] %v563_v56  ;;  %v564_v3 = vmax.f32 %v532_v57, 0.0  ;;  %v498_v4 = vadd.f32 %v466_v54, %v366_v58  ;;  %v467_v5 = vmul.f32 %v834_v59, %v1008_v1  ;;  %v774_v6 = vunpack.c.h.bf16 %v877_v50  ;;  %v881_v58 = vld [vmem:[%s993_s19 + $0x58] sm:$0xff]  }
  0x2d   : > { %v565_v8 = vmax.f32 %v533_v60, 0.0  ;;  %v367_v9 = vadd.f32 %v1017_v10, %v331_v61  ;;  %v332_v11 = vmul.f32 %v773_v62, %v1003_v0  ;;  %v468_v12 = vmul.f32 %v837_v63, %v1008_v1  ;;  %v896_v63 = vld [vmem:[%s998_s22 + $0x58] sm:$0xff]  }
  0x2e   : > { %596 = vst [vmem:[%s1051_s7 + $0x50] sm:$0xff] %v564_v3  ;;  %v534_v13 = vadd.f32 %v1034_v29, %v498_v4  ;;  %v333_v14 = vmul.f32 %v774_v6, %v1003_v0  ;;  %v838_v15 = vunpack.c.h.bf16 %v892_v51  ;;  %v777_v16 = vunpack.c.l.bf16 %v878_v2 }
  0x2f   : > { %597 = vst [vmem:[%s1051_s7 + $0x58] sm:$0xff] %v565_v8  ;;  %v499_v17 = vadd.f32 %v467_v5, %v367_v9  ;;  %v368_v18 = vadd.f32 %v1017_v10, %v332_v11  ;;  %v841_v19 = vunpack.c.l.bf16 %v893_v7  ;;  %v778_v20 = vunpack.c.h.bf16 %v878_v2 }
  0x30   : > { %v566_v22 = vmax.f32 %v534_v13, 0.0  ;;  %v369_v23 = vadd.f32 %v1017_v10, %v333_v14  ;;  %v469_v24 = vmul.f32 %v838_v15, %v1008_v1  ;;  %v334_v25 = vmul.f32 %v777_v16, %v1003_v0  ;;  %v882_v15 = vld [vmem:[%s993_s19 + $0x60] sm:$0xff]  }
  0x31   : > { %v535_v27 = vadd.f32 %v1034_v29, %v499_v17  ;;  %v500_v28 = vadd.f32 %v468_v12, %v368_v18  ;;  %v470_v30 = vmul.f32 %v841_v19, %v1008_v1  ;;  %v335_v31 = vmul.f32 %v778_v20, %v1003_v0  ;;  %v897_v20 = vld [vmem:[%s998_s22 + $0x60] sm:$0xff]  }
  0x32   : > { %598 = vst [vmem:[%s1051_s7 + $0x60] sm:$0xff] %v566_v22  ;;  %v501_v32 = vadd.f32 %v469_v24, %v369_v23  ;;  %v370_v33 = vadd.f32 %v1017_v10, %v334_v25  ;;  %v842_v34 = vunpack.c.h.bf16 %v893_v7  ;;  %v781_v35 = vunpack.c.l.bf16 %v879_v21 }
  0x33   : > { %v567_v36 = vmax.f32 %v535_v27, 0.0  ;;  %v536_v37 = vadd.f32 %v1034_v29, %v500_v28  ;;  %v371_v38 = vadd.f32 %v1017_v10, %v335_v31  ;;  %v845_v39 = vunpack.c.l.bf16 %v894_v26 }
  0x34   : > { %v537_v40 = vadd.f32 %v1034_v29, %v501_v32  ;;  %v502_v41 = vadd.f32 %v470_v30, %v370_v33  ;;  %v471_v42 = vmul.f32 %v842_v34, %v1008_v1  ;;  %v336_v43 = vmul.f32 %v781_v35, %v1003_v0 }
  0x35   : > { %599 = vst [vmem:[%s1051_s7 + $0x68] sm:$0xff] %v567_v36  ;;  %v568_v46 = vmax.f32 %v536_v37, 0.0  ;;  %v472_v47 = vmul.f32 %v845_v39, %v1008_v1  ;;  %v782_v48 = vunpack.c.h.bf16 %v879_v21  ;;  %v846_v49 = vunpack.c.h.bf16 %v894_v26  ;;  %v898_v39 = vld [vmem:[%s998_s22 + $0x68] sm:$0xff]  }
  0x36   : > { %v569_v50 = vmax.f32 %v537_v40, 0.0  ;;  %v538_v51 = vadd.f32 %v1034_v29, %v502_v41  ;;  %v503_v52 = vadd.f32 %v471_v42, %v371_v38  ;;  %v372_v53 = vadd.f32 %v1017_v10, %v336_v43  ;;  %v883_v38 = vld [vmem:[%s993_s19 + $0x68] sm:$0xff]  }
  0x37   : > { %600 = vst [vmem:[%s1051_s7 + $0x70] sm:$0xff] %v568_v46  ;;  %v337_v54 = vmul.f32 %v782_v48, %v1003_v0  ;;  %v473_v55 = vmul.f32 %v846_v49, %v1008_v1  ;;  %v785_v56 = vunpack.c.l.bf16 %v880_v44  ;;  %v849_v57 = vunpack.c.l.bf16 %v895_v45 }
  0x38   : > { %601 = vst [vmem:[%s1051_s7 + $0x78] sm:$0xff] %v569_v50  ;;  %v570_v59 = vmax.f32 %v538_v51, 0.0  ;;  %v539_v60 = vadd.f32 %v1034_v29, %v503_v52  ;;  %v504_v61 = vadd.f32 %v472_v47, %v372_v53  ;;  %v786_v62 = vunpack.c.h.bf16 %v880_v44  ;;  %v884_v52 = vld [vmem:[%s993_s19 + $0x70] sm:$0xff]  }
  0x39   : > { %v373_v2 = vadd.f32 %v1017_v10, %v337_v54  ;;  %v338_v3 = vmul.f32 %v785_v56, %v1003_v0  ;;  %v474_v4 = vmul.f32 %v849_v57, %v1008_v1  ;;  %v850_v5 = vunpack.c.h.bf16 %v895_v45  ;;  %v899_v57 = vld [vmem:[%s998_s22 + $0x70] sm:$0xff]  }
  0x3a   : > { %602 = vst [vmem:[%s1051_s7 + $0x80] sm:$0xff] %v570_v59  ;;  %v571_v6 = vmax.f32 %v539_v60, 0.0  ;;  %v540_v7 = vadd.f32 %v1034_v29, %v504_v61  ;;  %v339_v8 = vmul.f32 %v786_v62, %v1003_v0  ;;  %v789_v9 = vunpack.c.l.bf16 %v881_v58 }
  0x3b   : > { %v505_v11 = vadd.f32 %v473_v55, %v373_v2  ;;  %v374_v12 = vadd.f32 %v1017_v10, %v338_v3  ;;  %v475_v13 = vmul.f32 %v850_v5, %v1008_v1  ;;  %v853_v14 = vunpack.c.l.bf16 %v896_v63 }
  0x3c   : > { %603 = vst [vmem:[%s1051_s7 + $0x88] sm:$0xff] %v571_v6  ;;  %v572_v16 = vmax.f32 %v540_v7, 0.0  ;;  %v375_v17 = vadd.f32 %v1017_v10, %v339_v8  ;;  %v340_v18 = vmul.f32 %v789_v9, %v1003_v0  ;;  %v790_v19 = vunpack.c.h.bf16 %v881_v58  ;;  %v885_v8 = vld [vmem:[%s993_s19 + $0x78] sm:$0xff]  }
  0x3d   : > { %v541_v21 = vadd.f32 %v1034_v29, %v505_v11  ;;  %v506_v22 = vadd.f32 %v474_v4, %v374_v12  ;;  %v476_v23 = vmul.f32 %v853_v14, %v1008_v1  ;;  %v854_v24 = vunpack.c.h.bf16 %v896_v63  ;;  %v900_v14 = vld [vmem:[%s998_s22 + $0x78] sm:$0xff]  }
  0x3e   : > { %604 = vst [vmem:[%s1051_s7 + $0x90] sm:$0xff] %v572_v16  ;;  %v507_v25 = vadd.f32 %v475_v13, %v375_v17  ;;  %v376_v26 = vadd.f32 %v1017_v10, %v340_v18  ;;  %v341_v27 = vmul.f32 %v790_v19, %v1003_v0  ;;  %v793_v28 = vunpack.c.l.bf16 %v882_v15 }
  0x3f   : > { %v573_v30 = vmax.f32 %v541_v21, 0.0  ;;  %v542_v31 = vadd.f32 %v1034_v29, %v506_v22  ;;  %v477_v32 = vmul.f32 %v854_v24, %v1008_v1  ;;  %v857_v33 = vunpack.c.l.bf16 %v897_v20 }
  0x40   : > { %v543_v34 = vadd.f32 %v1034_v29, %v507_v25  ;;  %v508_v35 = vadd.f32 %v476_v23, %v376_v26  ;;  %v377_v36 = vadd.f32 %v1017_v10, %v341_v27  ;;  %v342_v37 = vmul.f32 %v793_v28, %v1003_v0 }
  0x41   : > { %605 = vst [vmem:[%s1051_s7 + $0x98] sm:$0xff] %v573_v30  ;;  %v574_v40 = vmax.f32 %v542_v31, 0.0  ;;  %v478_v41 = vmul.f32 %v857_v33, %v1008_v1  ;;  %v794_v42 = vunpack.c.h.bf16 %v882_v15  ;;  %v858_v43 = vunpack.c.h.bf16 %v897_v20 }
  0x42   : > { %v575_v44 = vmax.f32 %v543_v34, 0.0  ;;  %v544_v45 = vadd.f32 %v1034_v29, %v508_v35  ;;  %v509_v46 = vadd.f32 %v477_v32, %v377_v36  ;;  %v378_v47 = vadd.f32 %v1017_v10, %v342_v37 }
  0x43   : > { %606 = vst [vmem:[%s1051_s7 + $0xa0] sm:$0xff] %v574_v40  ;;  %v343_v48 = vmul.f32 %v794_v42, %v1003_v0  ;;  %v479_v49 = vmul.f32 %v858_v43, %v1008_v1  ;;  %v797_v50 = vunpack.c.l.bf16 %v883_v38  ;;  %v861_v51 = vunpack.c.l.bf16 %v898_v39 }
  0x44   : > { %607 = vst [vmem:[%s1051_s7 + $0xa8] sm:$0xff] %v575_v44  ;;  %v576_v53 = vmax.f32 %v544_v45, 0.0  ;;  %v545_v54 = vadd.f32 %v1034_v29, %v509_v46  ;;  %v510_v55 = vadd.f32 %v478_v41, %v378_v47  ;;  %v798_v56 = vunpack.c.h.bf16 %v883_v38 }
  0x45   : > { %v379_v58 = vadd.f32 %v1017_v10, %v343_v48  ;;  %v344_v59 = vmul.f32 %v797_v50, %v1003_v0  ;;  %v480_v60 = vmul.f32 %v861_v51, %v1008_v1  ;;  %v862_v61 = vunpack.c.h.bf16 %v898_v39 }
  0x46   : > { %608 = vst [vmem:[%s1051_s7 + $0xb0] sm:$0xff] %v576_v53  ;;  %v577_v62 = vmax.f32 %v545_v54, 0.0  ;;  %v546_v63 = vadd.f32 %v1034_v29, %v510_v55  ;;  %v345_v2 = vmul.f32 %v798_v56, %v1003_v0  ;;  %v801_v3 = vunpack.c.l.bf16 %v884_v52 }
  0x47   : > { %v511_v4 = vadd.f32 %v479_v49, %v379_v58  ;;  %v380_v5 = vadd.f32 %v1017_v10, %v344_v59  ;;  %v481_v6 = vmul.f32 %v862_v61, %v1008_v1  ;;  %v865_v7 = vunpack.c.l.bf16 %v899_v57 }
  0x48   : > { %609 = vst [vmem:[%s1051_s7 + $0xb8] sm:$0xff] %v577_v62  ;;  %v578_v9 = vmax.f32 %v546_v63, 0.0  ;;  %v381_v11 = vadd.f32 %v1017_v10, %v345_v2  ;;  %v346_v12 = vmul.f32 %v801_v3, %v1003_v0  ;;  %v802_v13 = vunpack.c.h.bf16 %v884_v52 }
  0x49   : > { %v547_v15 = vadd.f32 %v1034_v29, %v511_v4  ;;  %v512_v16 = vadd.f32 %v480_v60, %v380_v5  ;;  %v482_v17 = vmul.f32 %v865_v7, %v1008_v1  ;;  %v866_v18 = vunpack.c.h.bf16 %v899_v57 }
  0x4a   : > { %610 = vst [vmem:[%s1051_s7 + $0xc0] sm:$0xff] %v578_v9  ;;  %v513_v19 = vadd.f32 %v481_v6, %v381_v11  ;;  %v382_v20 = vadd.f32 %v1017_v10, %v346_v12  ;;  %v347_v21 = vmul.f32 %v802_v13, %v1003_v0  ;;  %v805_v22 = vunpack.c.l.bf16 %v885_v8 }
  0x4b   : > { %v579_v23 = vmax.f32 %v547_v15, 0.0  ;;  %v548_v24 = vadd.f32 %v1034_v29, %v512_v16  ;;  %v483_v25 = vmul.f32 %v866_v18, %v1008_v1  ;;  %v869_v26 = vunpack.c.l.bf16 %v900_v14 }
  0x4c   : > { %v549_v27 = vadd.f32 %v1034_v29, %v513_v19  ;;  %v514_v28 = vadd.f32 %v482_v17, %v382_v20  ;;  %v383_v30 = vadd.f32 %v1017_v10, %v347_v21  ;;  %v348_v31 = vmul.f32 %v805_v22, %v1003_v0 }
  0x4d   : > { %611 = vst [vmem:[%s1051_s7 + $0xc8] sm:$0xff] %v579_v23  ;;  %v580_v32 = vmax.f32 %v548_v24, 0.0  ;;  %v484_v33 = vmul.f32 %v869_v26, %v1008_v1  ;;  %v806_v34 = vunpack.c.h.bf16 %v885_v8  ;;  %v870_v35 = vunpack.c.h.bf16 %v900_v14 }
  0x4e   : > { %v581_v36 = vmax.f32 %v549_v27, 0.0  ;;  %v550_v37 = vadd.f32 %v1034_v29, %v514_v28  ;;  %v515_v38 = vadd.f32 %v483_v25, %v383_v30  ;;  %v384_v39 = vadd.f32 %v1017_v10, %v348_v31 }
  0x4f   : > { %612 = vst [vmem:[%s1051_s7 + $0xd0] sm:$0xff] %v580_v32  ;;  %v349_v40 = vmul.f32 %v806_v34, %v1003_v0  ;;  %v485_v41 = vmul.f32 %v870_v35, %v1008_v1 }
  0x50   : > { %613 = vst [vmem:[%s1051_s7 + $0xd8] sm:$0xff] %v581_v36  ;;  %v582_v42 = vmax.f32 %v550_v37, 0.0  ;;  %v551_v43 = vadd.f32 %v1034_v29, %v515_v38  ;;  %v516_v44 = vadd.f32 %v484_v33, %v384_v39 }
  0x51   : > { %v385_v45 = vadd.f32 %v1017_v10, %v349_v40 }
  0x52   : > { %614 = vst [vmem:[%s1051_s7 + $0xe0] sm:$0xff] %v582_v42  ;;  %v583_v46 = vmax.f32 %v551_v43, 0.0  ;;  %v552_v47 = vadd.f32 %v1034_v29, %v516_v44 }
  0x53   : > { %v517_v48 = vadd.f32 %v485_v41, %v385_v45 }
  0x54   : > { %615 = vst [vmem:[%s1051_s7 + $0xe8] sm:$0xff] %v583_v46  ;;  %v584_v49 = vmax.f32 %v552_v47, 0.0 }
  0x55   : > { %v553_v50 = vadd.f32 %v1034_v29, %v517_v48 }
  0x56   : > { %616 = vst [vmem:[%s1051_s7 + $0xf0] sm:$0xff] %v584_v49 }
  0x57   : > { %v585_v0 = vmax.f32 %v553_v50, 0.0 }
  0x59   : > { %617 = vst [vmem:[%s1051_s7 + $0xf8] sm:$0xff] %v585_v0 }
  0x5a PF: > { %s13_s14 = sadd.s32 1, %s947_s14   ;;  %s1231_s12 = smov %s943_s13 }
  0x5b   : > { %p10_p5 = scmp.ge.s32.totalorder %s13_s14, 4   ;;  %s1232_s13 = smov %s1234_s15 }
  0x5d   :  { %12 = sbr.rel (!%p10_p5) target bundleno = 2 (0x2), region = 65 }

// kernel: fast_up_project_block.4
= control target key start
LH: loop header
LB: loop body
LE: loop exit
PB: predicated region body
PF: predicated region fallthrough
CT: control target
= control target key end

     0   :  { %s7296_s21 = smov 0   ;;  %s7298_s22 = smov 0   ;;  %s8367_s0 = inlined_call_operand.vmem [shape: bf16[2,16,16,128], index: 0, kind: input, shape index: {}, may-alias: {0,1,2}]   ;;  %s8368_s1 = inlined_call_operand.vmem [shape: bf16[2,16,16,128], index: 1, kind: input, shape index: {}, may-alias: {0,1,2}]   ;;  %s8369_s2 = inlined_call_operand.vmem [shape: bf16[2,16,16,128], index: 2, kind: input, shape index: {}, may-alias: {0,1,2}]   ;;  %s8370_s3 = inlined_call_operand.vmem [shape: bf16[1152,128], index: 3, kind: input, shape index: {}]   ;;  %s8371_s4 = inlined_call_operand.vmem [shape: f32[2,128], index: 4, kind: input, shape index: {}]   ;;  %s8372_s5 = inlined_call_operand.vmem [shape: bf16[2,256,128], index: 5, kind: output, shape index: {0}]   ;;  %s8373_s6 = inlined_call_operand.vmem [shape: f32[2,1,2,128], index: 6, kind: output, shape index: {1}]  }
   0x1   :  { %s7300_s1 = smov 0  }
   0x2 LB: > { %s29_s2 = sadd.s32 1, %s7254_s22  ;;  %p5722_p0 = scmp.ge.s32.totalorder %s7258_s1, 1  ;;  %s7258_s1 = sphi %s7300_s1, %s17_s1   ;;  %s7254_s22 = sphi %s7298_s22, %s8383_s22   ;;  %s7250_s21 = sphi %s7296_s21, %s8382_s21  }
   0x3   : > { %p31_p1 = scmp.ge.s32.totalorder %s29_s2, 2  ;;  %p303_p2 = scmp.lt.s32.totalorder %s7258_s1, 3 }
   0x5   : > { %s8385_s2 = smov (%p31_p1, %s29_s2), 0  ;;  %p304_p3 = pnand %p5722_p0, %p303_p2 }
   0x6   : > { %v6920_v0 = vld [vmem:[%s8370_s3 + $0x40] sm:$0xff] (!%p304_p3)   ;;  %v6922_v2 = vld [vmem:[%s8370_s3 + $0x48] sm:$0xff] (!%p304_p3)   ;;  %v7260_v4 = vmov (!%p304_p3), 0.0|0.0   ;;  %v6924_v6 = vld [vmem:[%s8370_s3 + $0x50] sm:$0xff] (!%p304_p3)   ;;  %vm1028_vm0 = vcmask (!%p304_p3), 1043456   ;;  %p376_p4 = scmp.lt.s32.totalorder (!%p304_p3), %s7250_s21, 1 }
   0x7   : > { %307 = sbr.rel (%p304_p3) target bundleno = 635 (0x27b), region = 40  ;;  %v6921_v1 = vld [vmem:[%s8370_s3] sm:$0xff] (!%p304_p3)   ;;  %6359 = vmatprep.subr.bf16.mxu0 (!%p304_p3), %v6920_v0  ;;  %6879 = vmatprep.subr.bf16.mxu1 (!%p304_p3), %v6920_v0  ;;  %v6923_v3 = vld [vmem:[%s8370_s3 + $0x8] sm:$0xff] (!%p304_p3)   ;;  %v5766_v5 = vcombine.low (!%p304_p3), %v7260_v4, %v7260_v4  ;;  %v5767_v7 = vcombine.high (!%p304_p3), %v7260_v4, %v7260_v4  ;;  %v6925_v9 = vld [vmem:[%s8370_s3 + $0x10] sm:$0xff] (!%p304_p3)   ;;  %vm1035_vm1 = vcmask (!%p304_p3), 1040384   ;;  %vm2070_vm10 = vcmask (!%p304_p3), 1046528  }
   0x8   : > { %6360 = vmatpush3.bf16.msra.mxu0 (!%p304_p3), %v6921_v1  ;;  %6887 = vmatpush3.bf16.msra.mxu1 (!%p304_p3), %v6921_v1  ;;  %v6926_v10 = vld [vmem:[%s8370_s3 + $0x58] sm:$0xff] (!%p304_p3)   ;;  %v6928_v17 = vld [vmem:[%s8370_s3 + $0x60] sm:$0xff] (!%p304_p3)   ;;  %v6930_v19 = vld [vmem:[%s8370_s3 + $0x68] sm:$0xff] (!%p304_p3)   ;;  %vm704_vm2 = vsmask.f32 (!%p304_p3), 256 }
   0x9   : > { %6361 = vmatprep.subr.bf16.mxu0 (!%p304_p3), %v6922_v2  ;;  %6880 = vmatprep.subr.bf16.mxu1 (!%p304_p3), %v6922_v2  ;;  %v1168_v8 = vshrl.u32 (!%p304_p3), %v5766_v5, 16  ;;  %v1176_v11 = vshrl.u32 (!%p304_p3), %v5767_v7, 16  ;;  %v1171_v12 = vshll.u32 (!%p304_p3), %v5766_v5, 16  ;;  %v6927_v13 = vld [vmem:[%s8370_s3 + $0x18] sm:$0xff] (!%p304_p3)   ;;  %v1179_v16 = vshll.u32 (!%p304_p3), %v5767_v7, 16  ;;  %v6929_v18 = vld [vmem:[%s8370_s3 + $0x20] sm:$0xff] (!%p304_p3)   ;;  %vm7383_vm7 = vmand (!%p304_p3), %vm1035_vm1, %vm704_vm2 }
   0xa   : > { %vm705_vm3 = vsmask.f32 (!%p304_p3), 4368  ;;  %vm1029_vm4 = vsmask.f32 (!%p304_p3), 7938  ;;  %v1187_v25 = vld [vmem:[#allocation2] sm:$0xf] (!%p304_p3) }
   0xb   : > { %v1170_v14 = vrot.slane (!%p304_p3), %v1168_v8, 7  ;;  %v7341_v15 = vrot.slane (!%p304_p3), %v1176_v11, 7  ;;  %vm7367_vm5 = vmor (!%p304_p3), %vm704_vm2, %vm705_vm3  ;;  %v1191_v26 = vld [vmem:[#allocation2 + $0x8] sm:$0x1] (!%p304_p3)  ;;  %v7393_v32 = vld [vmem:[%s8371_s4] ss:$0 sm:$0xff] (!%p304_p3) }
   0xc   : > { %6362 = vmatpush3.bf16.msra.mxu0 (!%p304_p3), %v6923_v3  ;;  %6888 = vmatpush3.bf16.msra.mxu1 (!%p304_p3), %v6923_v3  ;;  %v6931_v27 = vld [vmem:[%s8370_s3 + $0x28] sm:$0xff] (!%p304_p3)   ;;  %vm7376_vm6 = vmand (!%p304_p3), %vm1028_vm0, %vm1029_vm4  ;;  %v6932_v34 = vld [vmem:[%s8370_s3 + $0x70] sm:$0xff] (!%p304_p3)   ;;  %vm1669_vm9 = vsmask.f32 (!%p304_p3), 7424 }
   0xd   : > { %6363 = vmatprep.subr.bf16.mxu0 (!%p304_p3), %v6924_v6  ;;  %6881 = vmatprep.subr.bf16.mxu1 (!%p304_p3), %v6924_v6  ;;  %v1174_v20 = vrot.slane (!%p304_p3), %v1170_v14, 4  ;;  %v1181_v21 = vor.u32 (!%p304_p3), %v1179_v16, %v7341_v15  ;;  %v7356_v22 = vor.u32 (!%p304_p3), %v1171_v12, %v1170_v14  ;;  %v1183_v23 = vrot.slane (!%p304_p3), %v7341_v15, 4  ;;  %v7407_v39 = vld [vmem:[%s8371_s4 + $0x1] ss:$0 sm:$0xff] (!%p304_p3)  ;;  %v6933_v44 = vld [vmem:[%s8370_s3 + $0x30] sm:$0xff] (!%p304_p3)   ;;  %v6934_v47 = vld [vmem:[%s8370_s3 + $0x78] sm:$0xff] (!%p304_p3)  }
   0xe   : > { %s8387_s21 = smov (!%p376_p4, %s7250_s21), 1  ;;  %v6935_v50 = vld [vmem:[%s8370_s3 + $0x38] sm:$0xff]   ;;  %vm7428_vm8 = vmand %vm1035_vm1, %vm1029_vm4  ;;  %v6943_v56 = vld [vmem:[%s8370_s3 + $0xc0] sm:$0xff]  }
   0xf   : > { %s6116_s23 = sshll.u32 %s8387_s21, 7  ;;  %v1182_v29 = vsel %vm7367_vm5, %v1174_v20, %v1181_v21  ;;  %v1188_v31 = vsel %vm7376_vm6, %v7356_v22, %v1187_v25  ;;  %v1192_v35 = vsel %vm7383_vm7, %v1183_v23, %v1191_v26  ;;  %v6944_v0 = vld [vmem:[%s8370_s3 + $0x140] sm:$0xff]  }
  0x10   : > { %6364 = vmatpush3.bf16.msra.mxu0 %v6925_v9  ;;  %6889 = vmatpush3.bf16.msra.mxu1 %v6925_v9  ;;  %s7365_s26 = scalar_lea.vmem %s8367_s0, %s6116_s23  ;;  %1190 = vst [vmem:[#allocation2 + $0x4] sm:$0xf] %v1182_v29  ;;  %1236 = vst [vmem:[#allocation2 + $0xd0] sm:$0xf] %v1182_v29  ;;  %v1031_v9 = vld [vmem:[#allocation2 + $0xc] sm:$0xf]  ;;  %s8305_s18 = scalar_lea.vmem %s8372_s5, %s6116_s23 }
  0x11   : > { %6365 = vmatprep.subr.bf16.mxu0 %v6926_v10  ;;  %6882 = vmatprep.subr.bf16.mxu1 %v6926_v10  ;;  %v6186_v33 = vld [vmem:[%s7365_s26] sm:$0xff]   ;;  %1189 = vst [vmem:[#allocation2] sm:$0xf] %v1188_v31  ;;  %v6339_v38 = vld [vmem:[%s7365_s26 + $0x58] sm:$0xff]   ;;  %1193 = vst [vmem:[#allocation2 + $0x8] sm:$0x1] %v1192_v35 }
  0x12   : > { %v6187_v36 = vunpack.c.l.bf16 %v6186_v33  ;;  %v6188_v37 = vunpack.c.h.bf16 %v6186_v33  ;;  %v6231_v40 = vunpack.c.l.bf16 %v6339_v38  ;;  %v6232_v41 = vunpack.c.h.bf16 %v6339_v38  ;;  %v6329_v4 = vld [vmem:[%s7365_s26 + $0x8] sm:$0xff]   ;;  %v1037_v10 = vld [vmem:[#allocation2 + $0x14] sm:$0x1]  ;;  %v6340_v21 = vld [vmem:[%s7365_s26 + $0x60] sm:$0xff]   ;;  %s5731_s23 = sshll.u32 %s8387_s21, 1 }
  0x13   : > { %v6192_v20 = vunpack.c.h.bf16 %v6329_v4  ;;  %v6235_v29 = vunpack.c.l.bf16 %v6340_v21  ;;  %v6236_v31 = vunpack.c.h.bf16 %v6340_v21  ;;  %s436_s24 = scalar_lea.vmem %s8373_s6, %s5731_s23 }
  0x14   : > { %6366 = vmatpush3.bf16.msra.mxu0 %v6927_v13  ;;  %6890 = vmatpush3.bf16.msra.mxu1 %v6927_v13  ;;  %v508_v42 = vmul.f32 %v6187_v36, %v7393_v32  ;;  %v509_v43 = vmul.f32 %v6188_v37, %v7393_v32  ;;  %v530_v45 = vmul.f32 %v6231_v40, %v7393_v32 }
  0x15   : > { %6367 = vmatprep.subr.bf16.mxu0 %v6928_v17  ;;  %6883 = vmatprep.subr.bf16.mxu1 %v6928_v17  ;;  %v531_v46 = vmul.f32 %v6232_v41, %v7393_v32 }
  0x16   : > { %v544_v48 = vadd.f32 %v7407_v39, %v508_v42  ;;  %v545_v49 = vadd.f32 %v7407_v39, %v509_v43  ;;  %v566_v51 = vadd.f32 %v7407_v39, %v530_v45 }
  0x17   : > { %v567_v52 = vadd.f32 %v7407_v39, %v531_v46 }
  0x18   : > { %6368 = vmatpush3.bf16.msra.mxu0 %v6929_v18  ;;  %6891 = vmatpush3.bf16.msra.mxu1 %v6929_v18  ;;  %v576_v54 = vmax.f32 %v544_v48, 0.0  ;;  %v577_v55 = vmax.f32 %v545_v49, 0.0  ;;  %v1240_v57 = vld [vmem:[#allocation2] sm:$0x1]  ;;  %v598_v58 = vmax.f32 %v566_v51, 0.0  ;;  %v511_v51 = vmul.f32 %v6192_v20, %v7393_v32 }
  0x19   : > { %6369 = vmatprep.subr.bf16.mxu0 %v6930_v19  ;;  %6884 = vmatprep.subr.bf16.mxu1 %v6930_v19  ;;  %v599_v59 = vmax.f32 %v567_v52, 0.0  ;;  %v1241_v60 = vsel %vm7383_vm7, 0, %v1240_v57  ;;  %v1295_v61 = vld [vmem:[#allocation2 + $0x8] sm:$0x1]  ;;  %v1110_v18 = vld [vmem:[#allocation2 + $0x90] sm:$0xf]  ;;  %v6191_v19 = vunpack.c.l.bf16 %v6329_v4 }
  0x1a   : > { %v6121_v62 = vpack.c.bf16 %v576_v54, %v576_v54  ;;  %v6122_v63 = vpack.c.bf16 %v577_v55, %v577_v55  ;;  %1242 = vst [vmem:[#allocation2] sm:$0x1] %v1241_v60  ;;  %v1296_v1 = vsel %vm7428_vm8, 0, %v1295_v61  ;;  %v6143_v2 = vpack.c.bf16 %v598_v58, %v598_v58 }
  0x1b   : > { %v6144_v3 = vpack.c.bf16 %v599_v59, %v599_v59  ;;  %1297 = vst [vmem:[#allocation2 + $0x8] sm:$0x1] %v1296_v1  ;;  %v510_v46 = vmul.f32 %v6191_v19, %v7393_v32  ;;  %v547_v58 = vadd.f32 %v7407_v39, %v511_v51  ;;  %v533_v59 = vmul.f32 %v6236_v31, %v7393_v32 }
  0x1c   : > { %6370 = vmatpush3.bf16.msra.mxu0 %v6931_v27  ;;  %6892 = vmatpush3.bf16.msra.mxu1 %v6931_v27  ;;  %v708_v5 = vshrl.u32 %v6121_v62, 16  ;;  %v711_v6 = vshll.u32 %v6121_v62, 16  ;;  %v716_v7 = vshrl.u32 %v6122_v63, 16  ;;  %v719_v8 = vshll.u32 %v6122_v63, 16  ;;  %v1114_v27 = vld [vmem:[#allocation2 + $0x98] sm:$0x1] }
  0x1d   : > { %6371 = vmatprep.subr.bf16.mxu0 %v6932_v34  ;;  %6885 = vmatprep.subr.bf16.mxu1 %v6932_v34  ;;  %v895_v11 = vshrl.u32 %v6143_v2, 16  ;;  %v898_v12 = vshll.u32 %v6143_v2, 16  ;;  %v903_v13 = vshrl.u32 %v6144_v3, 16  ;;  %v906_v14 = vshll.u32 %v6144_v3, 16 }
  0x1e   : > { %v710_v16 = vrot.slane %v708_v5, 7  ;;  %v718_v17 = vrot.slane %v716_v7, 7  ;;  %v546_v55 = vadd.f32 %v7407_v39, %v510_v46  ;;  %v569_v1 = vadd.f32 %v7407_v39, %v533_v59  ;;  %v6948_v7 = vld [vmem:[%s8370_s3 + $0x100] sm:$0xff]  }
  0x1f   : > { %v897_v25 = vrot.slane %v895_v11, 7  ;;  %v905_v26 = vrot.slane %v903_v13, 7  ;;  %v6341_v13 = vld [vmem:[%s7365_s26 + $0x68] sm:$0xff]  }
  0x20   : > { %6372 = vmatpush3.bf16.msra.mxu0 %v6933_v44  ;;  %6893 = vmatpush3.bf16.msra.mxu1 %v6933_v44  ;;  %v713_v33 = vor.u32 %v711_v6, %v710_v16  ;;  %v714_v34 = vrot.slane %v710_v16, 4  ;;  %v721_v35 = vor.u32 %v719_v8, %v718_v17  ;;  %v723_v36 = vrot.slane %v718_v17, 4  ;;  %v6330_v6 = vld [vmem:[%s7365_s26 + $0x10] sm:$0xff]  }
  0x21   : > { %6373 = vmatprep.subr.bf16.mxu0 %v6934_v47  ;;  %6886 = vmatprep.subr.bf16.mxu1 %v6934_v47  ;;  %v900_v37 = vor.u32 %v898_v12, %v897_v25  ;;  %v901_v38 = vrot.slane %v897_v25, 4  ;;  %v908_v40 = vor.u32 %v906_v14, %v905_v26  ;;  %v910_v41 = vrot.slane %v905_v26, 4  ;;  %v6936_v42 = vld [vmem:[#allocation2] sm:$0xff]  }
  0x22   : > { %v722_v43 = vsel %vm7367_vm5, %v714_v34, %v721_v35  ;;  %v1032_v44 = vsel %vm7376_vm6, %v713_v33, %v1031_v9  ;;  %v1038_v45 = vsel %vm7383_vm7, %v723_v36, %v1037_v10  ;;  %v6937_v47 = vld [vmem:[#allocation2 + $0x8] ss:$0 sps:$4 sm:$0x11]   ;;  %v1671_v52 = vshrl.u32 %v6936_v42, 16  ;;  %v6938_v3 = vld [vmem:[#allocation2] sm:$0xff]  }
  0x23   : > { %1033 = vst [vmem:[#allocation2 + $0xc] sm:$0xf] %v1032_v44  ;;  %1034 = vst [vmem:[#allocation2 + $0x10] sm:$0xf] %v722_v43  ;;  %v909_v48 = vsel %vm7367_vm5, %v901_v38, %v908_v40  ;;  %v1111_v49 = vsel %vm7376_vm6, %v900_v37, %v1110_v18  ;;  %v1673_v54 = vshll.u32 %v6936_v42, 16  ;;  %v1678_v57 = vshll.u32 %v6937_v47, 16 }
  0x24   : > { %6374 = vmatpush3.bf16.msra.mxu0 %v6935_v50  ;;  %6894 = vmatpush3.bf16.msra.mxu1 %v6935_v50  ;;  %1039 = vst [vmem:[#allocation2 + $0x14] sm:$0x1] %v1038_v45  ;;  %v1115_v50 = vsel %vm7383_vm7, %v910_v41, %v1114_v27  ;;  %1112 = vst [vmem:[#allocation2 + $0x90] sm:$0xf] %v1111_v49  ;;  %v578_v61 = vmax.f32 %v546_v55, 0.0  ;;  %v601_v9 = vmax.f32 %v569_v1, 0.0  ;;  %v6195_v11 = vunpack.c.l.bf16 %v6330_v6 }
  0x25   : > { %6471 = vmatprep.subr.bf16.mxu1 %v6943_v56  ;;  %6583 = vmatprep.subr.bf16.mxu0 %v6944_v0  ;;  %1113 = vst [vmem:[#allocation2 + $0x94] sm:$0xf] %v909_v48  ;;  %1116 = vst [vmem:[#allocation2 + $0x98] sm:$0x1] %v1115_v50  ;;  %v532_v56 = vmul.f32 %v6235_v29, %v7393_v32  ;;  %v1675_v60 = vrot.slane %v1673_v54, 1  ;;  %v1680_v63 = vrot.slane %v1678_v57, 1  ;;  %v6196_v12 = vunpack.c.h.bf16 %v6330_v6 }
  0x26   : > { %v579_v0 = vmax.f32 %v547_v58, 0.0  ;;  %v6123_v4 = vpack.c.bf16 %v578_v61, %v578_v61  ;;  %v6960_v10 = vld [vmem:[%s8370_s3 + $0x148] sm:$0xff]   ;;  %v6239_v19 = vunpack.c.l.bf16 %v6341_v13  ;;  %v6146_v27 = vpack.c.bf16 %v601_v9, %v601_v9  ;;  %v1040_v42 = vld [vmem:[#allocation2 + $0x18] sm:$0xf]  ;;  %v1044_v43 = vld [vmem:[#allocation2 + $0x20] sm:$0x1] }
  0x27   : > { %v568_v62 = vadd.f32 %v7407_v39, %v532_v56  ;;  %v1676_v2 = vor.u32 %v1675_v60, %v1671_v52  ;;  %v6962_v29 = vld [vmem:[%s8370_s3 + $0x108] sm:$0xff]   ;;  %v512_v31 = vmul.f32 %v6195_v11, %v7393_v32  ;;  %v513_v35 = vmul.f32 %v6196_v12, %v7393_v32  ;;  %v1117_v50 = vld [vmem:[#allocation2 + $0x9c] sm:$0xf]  ;;  %v1121_v56 = vld [vmem:[#allocation2 + $0xa4] sm:$0x1] }
  0x28   : > { %v6124_v8 = vpack.c.bf16 %v579_v0, %v579_v0  ;;  %v6240_v36 = vunpack.c.h.bf16 %v6341_v13  ;;  %v725_v37 = vshrl.u32 %v6123_v4, 16  ;;  %v728_v38 = vshll.u32 %v6123_v4, 16 }
  0x29   : > { %v600_v5 = vmax.f32 %v568_v62, 0.0  ;;  %v1681_v14 = vsel %vm1669_vm9, %v1676_v2, %v1680_v63  ;;  %v920_v46 = vshrl.u32 %v6146_v27, 16  ;;  %v923_v47 = vshll.u32 %v6146_v27, 16 }
  0x2a   : > { %v1243_v16 = vld [vmem:[#allocation2 + $0xc] sm:$0x1]  ;;  %4504 = vmatprep.mubr.bf16.mxu0 %v1681_v14  ;;  %v733_v40 = vshrl.u32 %v6124_v8, 16  ;;  %v736_v41 = vshll.u32 %v6124_v8, 16  ;;  %v727_v48 = vrot.slane %v725_v37, 7  ;;  %v548_v51 = vadd.f32 %v7407_v39, %v512_v31  ;;  %v6947_v37 = vld [vmem:[%s8370_s3 + $0x80] sm:$0xff]  }
  0x2b   : > { %v1298_v17 = vld [vmem:[#allocation2 + $0x14] sm:$0x1]  ;;  %v6145_v18 = vpack.c.bf16 %v600_v5, %v600_v5  ;;  %v1244_v20 = vsel %vm7383_vm7, 0, %v1243_v16  ;;  %v1276_v25 = vld [vmem:[#allocation2 + $0x90] sm:$0x1]  ;;  %4505 = vmatmul.mubr.bf16.vlgmr.msra.gmra.mrb[0].mxu0 %v6938_v3  ;;  %v534_v52 = vmul.f32 %v6239_v19, %v7393_v32  ;;  %v922_v55 = vrot.slane %v920_v46, 7 }
  0x2c   : > { %v1299_v21 = vsel %vm7428_vm8, 0, %v1298_v17  ;;  %v1331_v26 = vld [vmem:[#allocation2 + $0x98] sm:$0x1]  ;;  %1245 = vst [vmem:[#allocation2 + $0xc] sm:$0x1] %v1244_v20  ;;  %v1277_v33 = vsel %vm7383_vm7, 0, %v1276_v25  ;;  %6584 = vmatpush3.bf16.msra.mxu0 %v6948_v7  ;;  %v549_v57 = vadd.f32 %v7407_v39, %v513_v35  ;;  %v535_v58 = vmul.f32 %v6240_v36, %v7393_v32 }
  0x2d   : > { %1300 = vst [vmem:[#allocation2 + $0x14] sm:$0x1] %v1299_v21  ;;  %v1332_v34 = vsel %vm7428_vm8, 0, %v1331_v26  ;;  %1278 = vst [vmem:[#allocation2 + $0x90] sm:$0x1] %v1277_v33  ;;  %v912_v44 = vshrl.u32 %v6145_v18, 16  ;;  %6585 = vmatprep.subr.bf16.mxu0 %v6960_v10  ;;  %v730_v59 = vor.u32 %v728_v38, %v727_v48  ;;  %v925_v1 = vor.u32 %v923_v47, %v922_v55 }
  0x2e   : > { %1333 = vst [vmem:[#allocation2 + $0x98] sm:$0x1] %v1332_v34  ;;  %v915_v45 = vshll.u32 %v6145_v18, 16  ;;  %v735_v49 = vrot.slane %v733_v40, 7  ;;  %v731_v60 = vrot.slane %v727_v48, 4  ;;  %v927_v2 = vrot.slane %v922_v55, 4 }
  0x2f   : > { %v914_v54 = vrot.slane %v912_v44, 7  ;;  %v1041_v5 = vsel %vm7376_vm6, %v730_v59, %v1040_v42  ;;  %v580_v7 = vmax.f32 %v548_v51, 0.0  ;;  %v570_v17 = vadd.f32 %v7407_v39, %v534_v52  ;;  %v6331_v42 = vld [vmem:[%s7365_s26 + $0x18] sm:$0xff]   ;;  %v6949_v46 = vld [vmem:[%s8370_s3 + $0xc8] sm:$0xff]   ;;  %v1047_v48 = vld [vmem:[#allocation2 + $0x24] sm:$0xf] }
  0x30   : > { %v738_v61 = vor.u32 %v736_v41, %v735_v49  ;;  %v740_v62 = vrot.slane %v735_v49, 4  ;;  %6586 = vmatpush3.bf16.msra.mxu0 %v6962_v29  ;;  %1042 = vst [vmem:[#allocation2 + $0x18] sm:$0xf] %v1041_v5  ;;  %v1122_v12 = vsel %vm7383_vm7, %v927_v2, %v1121_v56  ;;  %v571_v25 = vadd.f32 %v7407_v39, %v535_v58 }
  0x31   : > { %v917_v63 = vor.u32 %v915_v45, %v914_v54  ;;  %v918_v0 = vrot.slane %v914_v54, 4  ;;  %1123 = vst [vmem:[#allocation2 + $0xa4] sm:$0x1] %v1122_v12  ;;  %v6125_v16 = vpack.c.bf16 %v580_v7, %v580_v7  ;;  %v581_v27 = vmax.f32 %v549_v57, 0.0 }
  0x32   : > { %v739_v4 = vsel %vm7367_vm5, %v731_v60, %v738_v61  ;;  %v1045_v6 = vsel %vm7383_vm7, %v740_v62, %v1044_v43  ;;  %v602_v41 = vmax.f32 %v570_v17, 0.0  ;;  %v603_v49 = vmax.f32 %v571_v25, 0.0  ;;  %v6958_v25 = vld [vmem:[%s8370_s3 + $0x90] sm:$0xff]  }
  0x33   : > { %v6939_v3 = vld [vmem:[#allocation2 + $0xc] sm:$0xff]   ;;  %1043 = vst [vmem:[#allocation2 + $0x1c] sm:$0xf] %v739_v4  ;;  %1046 = vst [vmem:[#allocation2 + $0x20] sm:$0x1] %v1045_v6  ;;  %v926_v10 = vsel %vm7367_vm5, %v918_v0, %v925_v1  ;;  %v1118_v11 = vsel %vm7376_vm6, %v917_v63, %v1117_v50  ;;  %v742_v34 = vshrl.u32 %v6125_v16, 16  ;;  %v7507_v38 = vpack.c.bf16 %v581_v27, %v581_v27 }
  0x34   : > { %v6940_v8 = vld [vmem:[#allocation2 + $0x14] ss:$0 sps:$4 sm:$0x11]   ;;  %v1683_v13 = vshrl.u32 %v6939_v3, 16  ;;  %v1685_v14 = vshll.u32 %v6939_v3, 16  ;;  %v6945_v36 = vld [vmem:[#allocation2 + $0xc] sm:$0xff]   ;;  %v6147_v54 = vpack.c.bf16 %v602_v41, %v602_v41  ;;  %v6199_v55 = vunpack.c.l.bf16 %v6331_v42 }
  0x35   : > { %v6941_v9 = vld [vmem:[#allocation2 + $0x90] sm:$0xff]   ;;  %1119 = vst [vmem:[#allocation2 + $0x9c] sm:$0xf] %v1118_v11  ;;  %1120 = vst [vmem:[#allocation2 + $0xa0] sm:$0xf] %v926_v10  ;;  %v1690_v18 = vshll.u32 %v6940_v8, 16  ;;  %v6200_v56 = vunpack.c.h.bf16 %v6331_v42  ;;  %v6148_v2 = vpack.c.bf16 %v603_v49, %v603_v49 }
  0x36   : > { %v6942_v19 = vld [vmem:[#allocation2 + $0x98] ss:$0 sps:$4 sm:$0x11]   ;;  %v1815_v20 = vshrl.u32 %v6941_v9, 16  ;;  %v1817_v21 = vshll.u32 %v6941_v9, 16  ;;  %v1687_v26 = vrot.slane %v1685_v14, 1  ;;  %v514_v3 = vmul.f32 %v6199_v55, %v7393_v32 }
  0x37   : > { %v1692_v29 = vrot.slane %v1690_v18, 1  ;;  %v1822_v33 = vshll.u32 %v6942_v19, 16  ;;  %v745_v40 = vshll.u32 %v6125_v16, 16  ;;  %v6946_v45 = vld [vmem:[#allocation2 + $0x90] sm:$0xff]   ;;  %v7513_v47 = vrot.slane %v742_v34, 7  ;;  %v6950_v63 = vld [vmem:[%s8370_s3 + $0x88] sm:$0xff]  }
  0x38   : > { %v1819_v31 = vrot.slane %v1817_v21, 1  ;;  %v1688_v35 = vor.u32 %v1687_v26, %v1683_v13  ;;  %v1246_v51 = vld [vmem:[#allocation2 + $0x18] sm:$0x1]  ;;  %v1334_v61 = vld [vmem:[#allocation2 + $0xa4] sm:$0x1]  ;;  %v6955_v4 = vld [vmem:[%s8370_s3 + $0xd0] sm:$0xff]   ;;  %v550_v21 = vadd.f32 %v7407_v39, %v514_v3 }
  0x39   : > { %v1824_v44 = vrot.slane %v1822_v33, 1  ;;  %v1247_v58 = vsel %vm7383_vm7, 0, %v1246_v51  ;;  %v747_v62 = vor.u32 %v745_v40, %v7513_v47  ;;  %v1335_v1 = vsel %vm7428_vm8, 0, %v1334_v61  ;;  %v6342_v8 = vld [vmem:[%s7365_s26 + $0x70] sm:$0xff]   ;;  %v1051_v10 = vld [vmem:[#allocation2 + $0x2c] sm:$0x1] }
  0x3a   : > { %v1820_v43 = vor.u32 %v1819_v31, %v1815_v20  ;;  %v1693_v50 = vsel %vm1669_vm9, %v1688_v35, %v1692_v29  ;;  %v1301_v52 = vld [vmem:[#allocation2 + $0x20] sm:$0x1]  ;;  %1248 = vst [vmem:[#allocation2 + $0x18] sm:$0x1] %v1247_v58  ;;  %1336 = vst [vmem:[#allocation2 + $0xa4] sm:$0x1] %v1335_v1  ;;  %v515_v20 = vmul.f32 %v6200_v56, %v7393_v32  ;;  %v6243_v29 = vunpack.c.l.bf16 %v6342_v8 }
  0x3b   : > { %4512 = vmatprep.mubr.bf16.mxu0 %v1693_v50  ;;  %v1302_v59 = vsel %vm7428_vm8, 0, %v1301_v52  ;;  %v750_v5 = vshrl.u32 %v7507_v38, 16  ;;  %v753_v6 = vshll.u32 %v7507_v38, 16  ;;  %v1048_v7 = vsel %vm7376_vm6, %v747_v62, %v1047_v48  ;;  %v6978_v9 = vld [vmem:[%s8370_s3 + $0x150] sm:$0xff]   ;;  %v1124_v18 = vld [vmem:[#allocation2 + $0xa8] sm:$0xf] }
  0x3c   : > { %v1825_v57 = vsel %vm1669_vm9, %v1820_v43, %v1824_v44  ;;  %v1279_v60 = vld [vmem:[#allocation2 + $0x9c] sm:$0x1]  ;;  %4513 = vmatmul.mubr.bf16.gmra.mrb[4].mxu0 %v6945_v36  ;;  %1303 = vst [vmem:[#allocation2 + $0x20] sm:$0x1] %v1302_v59  ;;  %1049 = vst [vmem:[#allocation2 + $0x24] sm:$0xf] %v1048_v7  ;;  %6587 = vmatprep.subr.bf16.mxu0 %v6978_v9  ;;  %v6244_v31 = vunpack.c.h.bf16 %v6342_v8  ;;  %v551_v36 = vadd.f32 %v7407_v39, %v515_v20 }
  0x3d   : > { %4600 = vmatprep.mubr.bf16.mxu1 %v1825_v57  ;;  %v1280_v0 = vsel %vm7383_vm7, 0, %v1279_v60  ;;  %v929_v11 = vshrl.u32 %v6147_v54, 16  ;;  %v932_v12 = vshll.u32 %v6147_v54, 16  ;;  %v937_v13 = vshrl.u32 %v6148_v2, 16  ;;  %v1128_v19 = vld [vmem:[#allocation2 + $0xb0] sm:$0x1] }
  0x3e   : > { %4601 = vmatmul.mubr.bf16.vlgmr.msra.gmra.mrb[0].mxu1 %v6946_v45  ;;  %1281 = vst [vmem:[#allocation2 + $0x9c] sm:$0x1] %v1280_v0  ;;  %v940_v14 = vshll.u32 %v6148_v2, 16  ;;  %v748_v16 = vrot.slane %v7513_v47, 4  ;;  %v752_v17 = vrot.slane %v750_v5, 7  ;;  %v6959_v33 = vld [vmem:[%s8370_s3 + $0xd8] sm:$0xff]   ;;  %v536_v55 = vmul.f32 %v6243_v29, %v7393_v32 }
  0x3f   : > { %6472 = vmatpush3.bf16.msra.mxu1 %v6947_v37  ;;  %v931_v26 = vrot.slane %v929_v11, 7  ;;  %v939_v27 = vrot.slane %v937_v13, 7  ;;  %v582_v37 = vmax.f32 %v550_v21, 0.0  ;;  %v6961_v50 = vld [vmem:[%s8370_s3 + $0x98] sm:$0xff]   ;;  %v537_v59 = vmul.f32 %v6244_v31, %v7393_v32  ;;  %v6967_v3 = vld [vmem:[%s8370_s3 + $0xe0] sm:$0xff]  }
  0x40   : > { %6473 = vmatprep.subr.bf16.mxu1 %v6949_v46  ;;  %v755_v34 = vor.u32 %v753_v6, %v752_v17  ;;  %v757_v35 = vrot.slane %v752_v17, 4  ;;  %v583_v46 = vmax.f32 %v551_v36, 0.0  ;;  %v572_v0 = vadd.f32 %v7407_v39, %v536_v55  ;;  %v1054_v11 = vld [vmem:[#allocation2 + $0x30] sm:$0xf]  ;;  %v1131_v55 = vld [vmem:[#allocation2 + $0xb4] sm:$0xf] }
  0x41   : > { %v934_v38 = vor.u32 %v932_v12, %v931_v26  ;;  %v935_v40 = vrot.slane %v931_v26, 4  ;;  %v942_v41 = vor.u32 %v940_v14, %v939_v27  ;;  %v944_v42 = vrot.slane %v939_v27, 4  ;;  %v6951_v43 = vld [vmem:[#allocation2 + $0x18] sm:$0xff]   ;;  %v6954_v61 = vld [vmem:[#allocation2 + $0xa4] ss:$0 sps:$4 sm:$0x11]  }
  0x42   : > { %v756_v44 = vsel %vm7367_vm5, %v748_v16, %v755_v34  ;;  %v1052_v45 = vsel %vm7383_vm7, %v757_v35, %v1051_v10  ;;  %v6127_v47 = vpack.c.bf16 %v582_v37, %v582_v37  ;;  %v1695_v56 = vshrl.u32 %v6951_v43, 16  ;;  %v6956_v2 = vld [vmem:[#allocation2 + $0x18] sm:$0xff]   ;;  %v6970_v14 = vld [vmem:[%s8370_s3 + $0xa0] sm:$0xff]  }
  0x43   : > { %6474 = vmatpush3.bf16.msra.mxu1 %v6950_v63  ;;  %v6952_v48 = vld [vmem:[#allocation2 + $0x20] ss:$0 sps:$4 sm:$0x11]   ;;  %1050 = vst [vmem:[#allocation2 + $0x28] sm:$0xf] %v756_v44  ;;  %v943_v51 = vsel %vm7367_vm5, %v935_v40, %v942_v41  ;;  %v1125_v52 = vsel %vm7376_vm6, %v934_v38, %v1124_v18  ;;  %v1129_v54 = vsel %vm7383_vm7, %v944_v42, %v1128_v19  ;;  %v1697_v57 = vshll.u32 %v6951_v43, 16 }
  0x44   : > { %6475 = vmatprep.subr.bf16.mxu1 %v6955_v4  ;;  %1053 = vst [vmem:[#allocation2 + $0x2c] sm:$0x1] %v1052_v45  ;;  %1126 = vst [vmem:[#allocation2 + $0xa8] sm:$0xf] %v1125_v52  ;;  %v7565_v58 = vpack.c.bf16 %v583_v46, %v583_v46  ;;  %v1702_v60 = vshll.u32 %v6952_v48, 16  ;;  %v759_v4 = vshrl.u32 %v6127_v47, 16  ;;  %v573_v5 = vadd.f32 %v7407_v39, %v537_v59 }
  0x45   : > { %v6953_v49 = vld [vmem:[#allocation2 + $0x9c] sm:$0xff]   ;;  %1127 = vst [vmem:[#allocation2 + $0xac] sm:$0xf] %v943_v51  ;;  %1130 = vst [vmem:[#allocation2 + $0xb0] sm:$0x1] %v1129_v54  ;;  %v1699_v1 = vrot.slane %v1697_v57, 1 }
  0x46   : > { %v1827_v62 = vshrl.u32 %v6953_v49, 16  ;;  %v1829_v63 = vshll.u32 %v6953_v49, 16  ;;  %v1704_v6 = vrot.slane %v1702_v60, 1  ;;  %v1834_v8 = vshll.u32 %v6954_v61, 16  ;;  %v1249_v9 = vld [vmem:[#allocation2 + $0x24] sm:$0x1] }
  0x47   : > { %6476 = vmatpush3.bf16.msra.mxu1 %v6958_v25  ;;  %v762_v10 = vshll.u32 %v6127_v47, 16  ;;  %v1700_v12 = vor.u32 %v1699_v1, %v1695_v56  ;;  %v1250_v13 = vsel %vm7383_vm7, 0, %v1249_v9  ;;  %v761_v16 = vrot.slane %v759_v4, 7  ;;  %v6982_v18 = vld [vmem:[%s8370_s3 + $0x110] sm:$0xff]   ;;  %v6957_v21 = vld [vmem:[#allocation2 + $0x9c] sm:$0xff]   ;;  %v6971_v25 = vld [vmem:[%s8370_s3 + $0xe8] sm:$0xff]  }
  0x48   : > { %6477 = vmatprep.subr.bf16.mxu1 %v6959_v33  ;;  %v1831_v7 = vrot.slane %v1829_v63, 1  ;;  %v767_v17 = vshrl.u32 %v7565_v58, 16  ;;  %v1836_v20 = vrot.slane %v1834_v8, 1  ;;  %1251 = vst [vmem:[#allocation2 + $0x24] sm:$0x1] %v1250_v13  ;;  %v770_v26 = vshll.u32 %v7565_v58, 16  ;;  %6588 = vmatpush3.bf16.msra.mxu0 %v6982_v18 }
  0x49   : > { %v604_v27 = vmax.f32 %v572_v0, 0.0  ;;  %v1705_v29 = vsel %vm1669_vm9, %v1700_v12, %v1704_v6  ;;  %v764_v33 = vor.u32 %v762_v10, %v761_v16  ;;  %v765_v38 = vrot.slane %v761_v16, 4  ;;  %v6972_v43 = vld [vmem:[%s8370_s3 + $0xa8] sm:$0xff]   ;;  %v1058_v45 = vld [vmem:[#allocation2 + $0x38] sm:$0x1]  ;;  %v6977_v56 = vld [vmem:[%s8370_s3 + $0xf0] sm:$0xff]  }
  0x4a   : > { %v1832_v19 = vor.u32 %v1831_v7, %v1827_v62  ;;  %4520 = vmatprep.mubr.bf16.mxu0 %v1705_v29  ;;  %v769_v46 = vrot.slane %v767_v17, 7  ;;  %v605_v47 = vmax.f32 %v573_v5, 0.0  ;;  %v6332_v57 = vld [vmem:[%s7365_s26 + $0x20] sm:$0xff]   ;;  %v6981_v0 = vld [vmem:[%s8370_s3 + $0xb0] sm:$0xff]   ;;  %v6983_v1 = vld [vmem:[%s8370_s3 + $0xf8] sm:$0xff]  }
  0x4b   : > { %6478 = vmatpush3.bf16.msra.mxu1 %v6961_v50  ;;  %v1304_v31 = vld [vmem:[#allocation2 + $0x2c] sm:$0x1]  ;;  %v1282_v36 = vld [vmem:[#allocation2 + $0xa8] sm:$0x1]  ;;  %v6149_v40 = vpack.c.bf16 %v604_v27, %v604_v27  ;;  %4521 = vmatmul.mubr.bf16.gmra.mrb[8].mxu0 %v6956_v2  ;;  %v1055_v44 = vsel %vm7376_vm6, %v764_v33, %v1054_v11  ;;  %v6203_v59 = vunpack.c.l.bf16 %v6332_v57  ;;  %v6204_v60 = vunpack.c.h.bf16 %v6332_v57  ;;  %v6984_v13 = vld [vmem:[%s8370_s3 + $0xb8] sm:$0xff]  }
  0x4c   : > { %6479 = vmatprep.subr.bf16.mxu1 %v6967_v3  ;;  %v1837_v34 = vsel %vm1669_vm9, %v1832_v19, %v1836_v20  ;;  %v1305_v35 = vsel %vm7428_vm8, 0, %v1304_v31  ;;  %v1337_v37 = vld [vmem:[#allocation2 + $0xb0] sm:$0x1]  ;;  %v1283_v41 = vsel %vm7383_vm7, 0, %v1282_v36  ;;  %1056 = vst [vmem:[#allocation2 + $0x30] sm:$0xf] %v1055_v44  ;;  %v772_v50 = vor.u32 %v770_v26, %v769_v46 }
  0x4d   : > { %4608 = vmatprep.mubr.bf16.mxu1 %v1837_v34  ;;  %1306 = vst [vmem:[#allocation2 + $0x2c] sm:$0x1] %v1305_v35  ;;  %v1338_v42 = vsel %vm7428_vm8, 0, %v1337_v37  ;;  %1284 = vst [vmem:[#allocation2 + $0xa8] sm:$0x1] %v1283_v41  ;;  %v946_v48 = vshrl.u32 %v6149_v40, 16  ;;  %v6150_v52 = vpack.c.bf16 %v605_v47, %v605_v47  ;;  %v516_v9 = vmul.f32 %v6203_v59, %v7393_v32 }
  0x4e   : > { %4609 = vmatmul.mubr.bf16.gmra.mrb[4].mxu1 %v6957_v21  ;;  %1339 = vst [vmem:[#allocation2 + $0xb0] sm:$0x1] %v1338_v42  ;;  %v949_v49 = vshll.u32 %v6149_v40, 16  ;;  %v774_v51 = vrot.slane %v769_v46, 4  ;;  %v773_v61 = vsel %vm7367_vm5, %v765_v38, %v772_v50  ;;  %v517_v10 = vmul.f32 %v6204_v60, %v7393_v32  ;;  %v1135_v17 = vld [vmem:[#allocation2 + $0xbc] sm:$0x1] }
  0x4f   : > { %6480 = vmatpush3.bf16.msra.mxu1 %v6970_v14  ;;  %v948_v54 = vrot.slane %v946_v48, 7  ;;  %v6963_v58 = vld [vmem:[#allocation2 + $0x24] sm:$0xff]   ;;  %1057 = vst [vmem:[#allocation2 + $0x34] sm:$0xf] %v773_v61  ;;  %v954_v5 = vshrl.u32 %v6150_v52, 16  ;;  %v957_v7 = vshll.u32 %v6150_v52, 16  ;;  %v552_v18 = vadd.f32 %v7407_v39, %v516_v9 }
  0x50   : > { %6481 = vmatprep.subr.bf16.mxu1 %v6971_v25  ;;  %v1059_v62 = vsel %vm7383_vm7, %v774_v51, %v1058_v45  ;;  %v1707_v2 = vshrl.u32 %v6963_v58, 16  ;;  %v1709_v3 = vshll.u32 %v6963_v58, 16  ;;  %v553_v19 = vadd.f32 %v7407_v39, %v517_v10  ;;  %v6968_v26 = vld [vmem:[#allocation2 + $0x24] sm:$0xff]   ;;  %v6994_v57 = vld [vmem:[%s8370_s3 + $0x118] sm:$0xff]   ;;  %v7651_v10 = vld [vmem:[%s8371_s4] ss:$0 sm:$0xff] }
  0x51   : > { %v951_v63 = vor.u32 %v949_v49, %v948_v54  ;;  %1060 = vst [vmem:[#allocation2 + $0x38] sm:$0x1] %v1059_v62  ;;  %v952_v4 = vrot.slane %v948_v54, 4  ;;  %v956_v32 = vrot.slane %v954_v5, 7  ;;  %v584_v34 = vmax.f32 %v552_v18, 0.0  ;;  %v6988_v39 = vld [vmem:[%s8370_s3 + $0x1c0] sm:$0xff]  }
  0x52   : > { %v1711_v11 = vrot.slane %v1709_v3, 1  ;;  %v585_v38 = vmax.f32 %v553_v19, 0.0  ;;  %v6993_v49 = vld [vmem:[%s8370_s3 + $0x158] sm:$0xff]   ;;  %v6333_v62 = vld [vmem:[%s7365_s26 + $0x28] sm:$0xff]   ;;  %v1065_v5 = vld [vmem:[#allocation2 + $0x44] sm:$0x1] }
  0x53   : > { %6482 = vmatpush3.bf16.msra.mxu1 %v6972_v43  ;;  %v1132_v8 = vsel %vm7376_vm6, %v951_v63, %v1131_v55  ;;  %v1252_v27 = vld [vmem:[#allocation2 + $0x30] sm:$0x1]  ;;  %v959_v36 = vor.u32 %v957_v7, %v956_v32  ;;  %v961_v37 = vrot.slane %v956_v32, 4  ;;  %v6129_v44 = vpack.c.bf16 %v584_v34, %v584_v34  ;;  %6589 = vmatprep.subr.bf16.mxu0 %v6993_v49  ;;  %v1061_v60 = vld [vmem:[#allocation2 + $0x3c] sm:$0xf] }
  0x54   : > { %v6964_v6 = vld [vmem:[#allocation2 + $0x2c] ss:$0 sps:$4 sm:$0x11]   ;;  %6483 = vmatprep.subr.bf16.mxu1 %v6977_v56  ;;  %1133 = vst [vmem:[#allocation2 + $0xb4] sm:$0xf] %v1132_v8  ;;  %v1712_v20 = vor.u32 %v1711_v11, %v1707_v2  ;;  %v1253_v33 = vsel %vm7383_vm7, 0, %v1252_v27  ;;  %v6130_v51 = vpack.c.bf16 %v585_v38, %v585_v38  ;;  %6590 = vmatpush3.bf16.msra.mxu0 %v6994_v57  ;;  %v6208_v2 = vunpack.c.h.bf16 %v6333_v62 }
  0x55   : > { %v6965_v12 = vld [vmem:[#allocation2 + $0xa8] sm:$0xff]   ;;  %v1714_v14 = vshll.u32 %v6964_v6, 16  ;;  %v6966_v16 = vld [vmem:[#allocation2 + $0xb0] ss:$0 sps:$4 sm:$0x11]   ;;  %v960_v47 = vsel %vm7367_vm5, %v952_v4, %v959_v36  ;;  %v1136_v48 = vsel %vm7383_vm7, %v961_v37, %v1135_v17  ;;  %v776_v52 = vshrl.u32 %v6129_v44, 16 }
  0x56   : > { %v1839_v21 = vshrl.u32 %v6965_v12, 16  ;;  %v1841_v25 = vshll.u32 %v6965_v12, 16  ;;  %v1846_v31 = vshll.u32 %v6966_v16, 16  ;;  %1254 = vst [vmem:[#allocation2 + $0x30] sm:$0x1] %v1253_v33  ;;  %v6969_v42 = vld [vmem:[#allocation2 + $0xa8] sm:$0xff]   ;;  %v519_v16 = vmul.f32 %v7651_v10, %v6208_v2 }
  0x57   : > { %6484 = vmatpush3.bf16.msra.mxu1 %v6981_v0  ;;  %v1716_v29 = vrot.slane %v1714_v14, 1  ;;  %1134 = vst [vmem:[#allocation2 + $0xb8] sm:$0xf] %v960_v47  ;;  %1137 = vst [vmem:[#allocation2 + $0xbc] sm:$0x1] %v1136_v48  ;;  %v779_v54 = vshll.u32 %v6129_v44, 16 }
  0x58   : > { %6485 = vmatprep.subr.bf16.mxu1 %v6983_v1  ;;  %v1843_v35 = vrot.slane %v1841_v25, 1  ;;  %v1848_v41 = vrot.slane %v1846_v31, 1  ;;  %v1307_v43 = vld [vmem:[#allocation2 + $0x38] sm:$0x1]  ;;  %v778_v58 = vrot.slane %v776_v52, 7  ;;  %v784_v59 = vshrl.u32 %v6130_v51, 16 }
  0x59   : > { %v1717_v40 = vsel %vm1669_vm9, %v1712_v20, %v1716_v29  ;;  %v1308_v46 = vsel %vm7428_vm8, 0, %v1307_v43  ;;  %v787_v61 = vshll.u32 %v6130_v51, 16  ;;  %v6207_v1 = vunpack.c.l.bf16 %v6333_v62  ;;  %v7646_v9 = vld [vmem:[#allocation2] sm:$0xfe]  }
  0x5a   : > { %4528 = vmatprep.mubr.bf16.mxu0 %v1717_v40  ;;  %v1844_v45 = vor.u32 %v1843_v35, %v1839_v21  ;;  %1309 = vst [vmem:[#allocation2 + $0x38] sm:$0x1] %v1308_v46  ;;  %v781_v0 = vor.u32 %v779_v54, %v778_v58  ;;  %v782_v3 = vrot.slane %v778_v58, 4  ;;  %v786_v4 = vrot.slane %v784_v59, 7  ;;  %v7658_v19 = vld [vmem:[%s8371_s4 + $0x1] ss:$0 sm:$0xff] }
  0x5b   : > { %6486 = vmatpush3.bf16.msra.mxu1 %v6984_v13  ;;  %4529 = vmatmul.mubr.bf16.gmra.mrb[12].mxu0 %v6968_v26  ;;  %v1285_v50 = vld [vmem:[#allocation2 + $0xb4] sm:$0x1]  ;;  %v518_v11 = vmul.f32 %v7651_v10, %v6207_v1  ;;  %v555_v33 = vadd.f32 %v7658_v19, %v519_v16  ;;  %v2071_v40 = vrot.slane %v7646_v9, 1  ;;  %v7004_v47 = vld [vmem:[%s8370_s3 + $0x160] sm:$0xff]   ;;  %v1068_v59 = vld [vmem:[#allocation2 + $0x48] sm:$0xf] }
  0x5c   : > { %6695 = vmatprep.subr.bf16.mxu1 %v6988_v39  ;;  %v1849_v55 = vsel %vm1669_vm9, %v1844_v45, %v1848_v41  ;;  %v1286_v56 = vsel %vm7383_vm7, 0, %v1285_v50  ;;  %v1062_v8 = vsel %vm7376_vm6, %v781_v0, %v1061_v60  ;;  %v789_v13 = vor.u32 %v787_v61, %v786_v4  ;;  %v6334_v21 = vld [vmem:[%s7365_s26 + $0x30] sm:$0xff]   ;;  %v7676_v49 = vld [vmem:[#allocation2 + $0x8] ss:$0 sps:$4 sm:$0x11]   ;;  %6591 = vmatprep.subr.bf16.mxu0 %v7004_v47 }
  0x5d   : > { %4616 = vmatprep.mubr.bf16.mxu1 %v1849_v55  ;;  %1287 = vst [vmem:[#allocation2 + $0xb4] sm:$0x1] %v1286_v56  ;;  %v6973_v63 = vld [vmem:[#allocation2 + $0x30] sm:$0xff]   ;;  %v791_v14 = vrot.slane %v786_v4, 4  ;;  %1063 = vst [vmem:[#allocation2 + $0x3c] sm:$0xf] %v1062_v8  ;;  %v554_v20 = vadd.f32 %v7658_v19, %v518_v11  ;;  %v6211_v34 = vunpack.c.l.bf16 %v6334_v21  ;;  %v6212_v35 = vunpack.c.h.bf16 %v6334_v21 }
  0x5e   : > { %4617 = vmatmul.mubr.bf16.gmra.mrb[8].mxu1 %v6969_v42  ;;  %v1719_v6 = vshrl.u32 %v6973_v63, 16  ;;  %v1721_v7 = vshll.u32 %v6973_v63, 16  ;;  %v1340_v18 = vld [vmem:[#allocation2 + $0xbc] sm:$0x1]  ;;  %v790_v32 = vsel %vm7367_vm5, %v782_v3, %v789_v13  ;;  %v6979_v38 = vld [vmem:[#allocation2 + $0x30] sm:$0xff]   ;;  %v587_v41 = vmax.f32 %v555_v33, 0.0 }
  0x5f   : > { %v1341_v26 = vsel %vm7428_vm8, 0, %v1340_v18  ;;  %v1066_v29 = vsel %vm7383_vm7, %v791_v14, %v1065_v5  ;;  %1064 = vst [vmem:[#allocation2 + $0x40] sm:$0xf] %v790_v32  ;;  %v586_v39 = vmax.f32 %v554_v20, 0.0  ;;  %v520_v42 = vmul.f32 %v7651_v10, %v6211_v34  ;;  %v1072_v13 = vld [vmem:[#allocation2 + $0x50] sm:$0x1] }
  0x60   : > { %v1723_v17 = vrot.slane %v1721_v7, 1  ;;  %1342 = vst [vmem:[#allocation2 + $0xbc] sm:$0x1] %v1341_v26  ;;  %1067 = vst [vmem:[#allocation2 + $0x44] sm:$0x1] %v1066_v29  ;;  %v521_v43 = vmul.f32 %v7651_v10, %v6212_v35  ;;  %v6132_v50 = vpack.c.bf16 %v587_v41, %v587_v41  ;;  %v6987_v7 = vld [vmem:[#allocation2 + $0xc] sm:$0xff]  }
  0x61   : > { %v6974_v12 = vld [vmem:[#allocation2 + $0x38] ss:$0 sps:$4 sm:$0x11]   ;;  %v6131_v46 = vpack.c.bf16 %v586_v39, %v586_v39  ;;  %v556_v51 = vadd.f32 %v7658_v19, %v520_v42  ;;  %v2072_v8 = vrot.slane %v7676_v49, 1  ;;  %v1075_v41 = vld [vmem:[#allocation2 + $0x54] sm:$0xf] }
  0x62   : > { %v1726_v25 = vshll.u32 %v6974_v12, 16  ;;  %v1724_v31 = vor.u32 %v1723_v17, %v1719_v6  ;;  %v801_v57 = vshrl.u32 %v6132_v50, 16  ;;  %v804_v58 = vshll.u32 %v6132_v50, 16  ;;  %v7009_v6 = vld [vmem:[%s8370_s3 + $0x120] sm:$0xff]   ;;  %v6335_v32 = vld [vmem:[%s7365_s26 + $0x38] sm:$0xff]   ;;  %v7017_v47 = vld [vmem:[%s8370_s3 + $0x168] sm:$0xff]  }
  0x63   : > { %v793_v55 = vshrl.u32 %v6131_v46, 16  ;;  %v796_v56 = vshll.u32 %v6131_v46, 16  ;;  %v557_v60 = vadd.f32 %v7658_v19, %v521_v43  ;;  %v588_v61 = vmax.f32 %v556_v51, 0.0  ;;  %6592 = vmatpush3.bf16.msra.mxu0 %v7009_v6  ;;  %v1079_v46 = vld [vmem:[#allocation2 + $0x5c] sm:$0x1]  ;;  %v7018_v51 = vld [vmem:[%s8370_s3 + $0x128] sm:$0xff]  }
  0x64   : > { %v6975_v27 = vld [vmem:[#allocation2 + $0xb4] sm:$0xff]   ;;  %v1728_v36 = vrot.slane %v1726_v25, 1  ;;  %v1255_v48 = vld [vmem:[#allocation2 + $0x3c] sm:$0x1]  ;;  %v803_v12 = vrot.slane %v801_v57, 7  ;;  %v6215_v34 = vunpack.c.l.bf16 %v6335_v32  ;;  %v6216_v35 = vunpack.c.h.bf16 %v6335_v32  ;;  %6593 = vmatprep.subr.bf16.mxu0 %v7017_v47  ;;  %v6992_v57 = vld [vmem:[%s8370_s3 + $0x180] sm:$0xff]  }
  0x65   : > { %v1853_v37 = vshll.u32 %v6975_v27, 16  ;;  %v1851_v45 = vshrl.u32 %v6975_v27, 16  ;;  %v1256_v54 = vsel %vm7383_vm7, 0, %v1255_v48  ;;  %v795_v63 = vrot.slane %v793_v55, 7  ;;  %v6980_v17 = vld [vmem:[#allocation2 + $0xb4] sm:$0xff]   ;;  %v7005_v6 = vld [vmem:[%s8370_s3 + $0x1c8] sm:$0xff]  }
  0x66   : > { %v1729_v44 = vsel %vm1669_vm9, %v1724_v31, %v1728_v36  ;;  %1257 = vst [vmem:[#allocation2 + $0x3c] sm:$0x1] %v1256_v54  ;;  %v6133_v1 = vpack.c.bf16 %v588_v61, %v588_v61  ;;  %v589_v14 = vmax.f32 %v557_v60, 0.0  ;;  %v806_v25 = vor.u32 %v804_v58, %v803_v12  ;;  %v6336_v60 = vld [vmem:[%s7365_s26 + $0x40] sm:$0xff]  }
  0x67   : > { %4536 = vmatprep.mubr.bf16.mxu0 %v1729_v44  ;;  %v1855_v52 = vrot.slane %v1853_v37, 1  ;;  %v6976_v62 = vld [vmem:[#allocation2 + $0xbc] ss:$0 sps:$4 sm:$0x11]   ;;  %v1310_v0 = vld [vmem:[#allocation2 + $0x44] sm:$0x1]  ;;  %v798_v5 = vor.u32 %v796_v56, %v795_v63  ;;  %v522_v49 = vmul.f32 %v7651_v10, %v6215_v34  ;;  %v523_v50 = vmul.f32 %v7651_v10, %v6216_v35  ;;  %6594 = vmatpush3.bf16.msra.mxu0 %v7018_v51 }
  0x68   : > { %4537 = vmatmul.mubr.bf16.gmra.mrb[16].mxu0 %v6979_v38  ;;  %v1858_v3 = vshll.u32 %v6976_v62, 16  ;;  %v1311_v4 = vsel %vm7428_vm8, 0, %v1310_v0  ;;  %v799_v11 = vrot.slane %v795_v63, 4  ;;  %v810_v20 = vshrl.u32 %v6133_v1, 16  ;;  %v6997_v0 = vld [vmem:[#allocation2 + $0x18] sm:$0xff]  }
  0x69   : > { %v1856_v2 = vor.u32 %v1855_v52, %v1851_v45  ;;  %1312 = vst [vmem:[#allocation2 + $0x44] sm:$0x1] %v1311_v4  ;;  %v1069_v18 = vsel %vm7376_vm6, %v798_v5, %v1068_v59  ;;  %v813_v21 = vshll.u32 %v6133_v1, 16  ;;  %v808_v26 = vrot.slane %v803_v12, 4  ;;  %v6999_v1 = vld [vmem:[#allocation2 + $0xc] sm:$0xfe]  }
  0x6a   : > { %v1860_v16 = vrot.slane %v1858_v3, 1  ;;  %1070 = vst [vmem:[#allocation2 + $0x48] sm:$0xf] %v1069_v18  ;;  %v6134_v27 = vpack.c.bf16 %v589_v14, %v589_v14  ;;  %v812_v33 = vrot.slane %v810_v20, 7  ;;  %v807_v36 = vsel %vm7367_vm5, %v799_v11, %v806_v25  ;;  %v7010_v25 = vld [vmem:[%s8370_s3 + $0x188] sm:$0xff]  }
  0x6b   : > { %v1073_v37 = vsel %vm7383_vm7, %v808_v26, %v1072_v13  ;;  %1071 = vst [vmem:[#allocation2 + $0x4c] sm:$0xf] %v807_v36  ;;  %v2073_v56 = vsel %vm2070_vm10, %v2071_v40, %v2072_v8  ;;  %v6219_v3 = vunpack.c.l.bf16 %v6336_v60  ;;  %v7000_v40 = vld [vmem:[#allocation2 + $0x14] ss:$0 sps:$4 sm:$0x11]   ;;  %v2074_v20 = vrot.slane %v6999_v1, 1 }
  0x6c   : > { %v1861_v29 = vsel %vm1669_vm9, %v1856_v2, %v1860_v16  ;;  %v818_v38 = vshrl.u32 %v6134_v27, 16  ;;  %v821_v39 = vshll.u32 %v6134_v27, 16  ;;  %1074 = vst [vmem:[#allocation2 + $0x50] sm:$0x1] %v1073_v37  ;;  %v815_v44 = vor.u32 %v813_v21, %v812_v33  ;;  %v7022_v27 = vld [vmem:[%s8370_s3 + $0x1d0] sm:$0xff]   ;;  %v7003_v36 = vld [vmem:[#allocation2 + $0x24] sm:$0xff]  }
  0x6d   : > { %v6985_v31 = vld [vmem:[#allocation2 + $0x3c] sm:$0xff]   ;;  %4624 = vmatprep.mubr.bf16.mxu1 %v1861_v29  ;;  %v816_v45 = vrot.slane %v812_v33, 4  ;;  %v558_v2 = vadd.f32 %v7658_v19, %v522_v49  ;;  %v524_v12 = vmul.f32 %v7651_v10, %v6219_v3  ;;  %v2075_v21 = vrot.slane %v7000_v40, 1  ;;  %v1086_v49 = vld [vmem:[#allocation2 + $0x68] sm:$0x1] }
  0x6e   : > { %4625 = vmatmul.mubr.bf16.gmra.mrb[12].mxu1 %v6980_v17  ;;  %v1731_v42 = vshrl.u32 %v6985_v31, 16  ;;  %v1733_v43 = vshll.u32 %v6985_v31, 16  ;;  %v820_v48 = vrot.slane %v818_v38, 7  ;;  %v1076_v55 = vsel %vm7376_vm6, %v815_v44, %v1075_v41  ;;  %v6989_v11 = vld [vmem:[#allocation2 + $0x3c] sm:$0xff]  }
  0x6f   : > { %4665 = vmatprep.mubr.bf16.mxu1 %v6987_v7  ;;  %1077 = vst [vmem:[#allocation2 + $0x54] sm:$0xf] %v1076_v55  ;;  %v559_v7 = vadd.f32 %v7658_v19, %v523_v50  ;;  %v7728_v17 = vld [vmem:[#allocation2 + $0x18] sm:$0xfe]   ;;  %v590_v18 = vmax.f32 %v558_v2, 0.0  ;;  %v6220_v33 = vunpack.c.h.bf16 %v6336_v60  ;;  %v560_v34 = vadd.f32 %v7658_v19, %v524_v12 }
  0x70   : > { %v6986_v52 = vld [vmem:[#allocation2 + $0x44] ss:$0 sps:$4 sm:$0x11]   ;;  %v1735_v54 = vrot.slane %v1733_v43, 1  ;;  %v823_v58 = vor.u32 %v821_v39, %v820_v48  ;;  %v825_v59 = vrot.slane %v820_v48, 4  ;;  %v2077_v38 = vrot.slane %v7728_v17, 1 }
  0x71   : > { %v1738_v62 = vshll.u32 %v6986_v52, 16  ;;  %v1258_v63 = vld [vmem:[#allocation2 + $0x48] sm:$0x1]  ;;  %v591_v26 = vmax.f32 %v559_v7, 0.0  ;;  %v6135_v31 = vpack.c.bf16 %v590_v18, %v590_v18  ;;  %v2076_v44 = vsel %vm2070_vm10, %v2074_v20, %v2075_v21  ;;  %v7013_v17 = vld [vmem:[#allocation2 + $0x30] sm:$0xff]  }
  0x72   : > { %v1736_v61 = vor.u32 %v1735_v54, %v1731_v42  ;;  %v1259_v9 = vsel %vm7383_vm7, 0, %v1258_v63  ;;  %v824_v4 = vsel %vm7367_vm5, %v816_v45, %v823_v58  ;;  %v1080_v5 = vsel %vm7383_vm7, %v825_v59, %v1079_v46  ;;  %v7008_v29 = vld [vmem:[#allocation2 + $0x20] ss:$0 sps:$4 sm:$0x11]   ;;  %v7026_v42 = vld [vmem:[%s8370_s3 + $0x190] sm:$0xff]  }
  0x73   : > { %v1740_v8 = vrot.slane %v1738_v62, 1  ;;  %1260 = vst [vmem:[#allocation2 + $0x48] sm:$0x1] %v1259_v9  ;;  %1078 = vst [vmem:[#allocation2 + $0x58] sm:$0xf] %v824_v4  ;;  %v6136_v37 = vpack.c.bf16 %v591_v26, %v591_v26  ;;  %v827_v39 = vshrl.u32 %v6135_v31, 16  ;;  %v525_v50 = vmul.f32 %v7651_v10, %v6220_v33 }
  0x74   : > { %1081 = vst [vmem:[#allocation2 + $0x5c] sm:$0x1] %v1080_v5  ;;  %v1313_v13 = vld [vmem:[#allocation2 + $0x50] sm:$0x1]  ;;  %v830_v41 = vshll.u32 %v6135_v31, 16  ;;  %v592_v51 = vmax.f32 %v560_v34, 0.0 }
  0x75   : > { %v1741_v14 = vsel %vm1669_vm9, %v1736_v61, %v1740_v8  ;;  %v1314_v16 = vsel %vm7428_vm8, 0, %v1313_v13  ;;  %v835_v45 = vshrl.u32 %v6136_v37, 16  ;;  %v1082_v46 = vld [vmem:[#allocation2 + $0x60] sm:$0xf]  ;;  %v829_v48 = vrot.slane %v827_v39, 7 }
  0x76   : > { %4666 = vmatmul.mubr.bf16.vlgmr.msra.gmra.mrb[16].mxu1 %v2073_v56  ;;  %4544 = vmatprep.mubr.bf16.mxu0 %v1741_v14  ;;  %1315 = vst [vmem:[#allocation2 + $0x50] sm:$0x1] %v1314_v16  ;;  %v1261_v32 = vld [vmem:[#allocation2 + $0x54] sm:$0x1]  ;;  %v2078_v58 = vrot.slane %v7008_v29, 1  ;;  %v838_v62 = vshll.u32 %v6136_v37, 16  ;;  %v561_v9 = vadd.f32 %v7658_v19, %v525_v50  ;;  %v6137_v40 = vpack.c.bf16 %v592_v51, %v592_v51 }
  0x77   : > { %6696 = vmatpush3.bf16.msra.mxu1 %v6992_v57  ;;  %4545 = vmatmul.mubr.bf16.gmra.mrb[20].mxu0 %v6989_v11  ;;  %v1262_v35 = vsel %vm7383_vm7, 0, %v1261_v32  ;;  %v837_v56 = vrot.slane %v835_v45, 7  ;;  %v832_v59 = vor.u32 %v830_v41, %v829_v48  ;;  %v833_v61 = vrot.slane %v829_v48, 4  ;;  %v7751_v3 = vld [vmem:[#allocation2 + $0x2c] ss:$0 sps:$4 sm:$0x11]  }
  0x78   : > { %4673 = vmatprep.mubr.bf16.mxu1 %v6997_v0  ;;  %6697 = vmatprep.subr.bf16.mxu1 %v7005_v6  ;;  %1263 = vst [vmem:[#allocation2 + $0x54] sm:$0x1] %v1262_v35  ;;  %v7747_v0 = vld [vmem:[#allocation2 + $0x24] sm:$0xfe]   ;;  %v2079_v12 = vsel %vm2070_vm10, %v2077_v38, %v2078_v58  ;;  %v593_v21 = vmax.f32 %v561_v9, 0.0  ;;  %v847_v26 = vshll.u32 %v6137_v40, 16 }
  0x79   : > { %v842_v63 = vrot.slane %v837_v56, 4  ;;  %v1083_v2 = vsel %vm7376_vm6, %v832_v59, %v1082_v46  ;;  %v840_v6 = vor.u32 %v838_v62, %v837_v56  ;;  %v2080_v18 = vrot.slane %v7747_v0, 1  ;;  %v1089_v31 = vld [vmem:[#allocation2 + $0x6c] sm:$0xf]  ;;  %v7034_v50 = vld [vmem:[%s8370_s3 + $0x130] sm:$0xff]   ;;  %v7021_v56 = vld [vmem:[#allocation2 + $0x3c] sm:$0xff]  }
  0x7a   : > { %v6995_v43 = vld [vmem:[#allocation2 + $0x48] sm:$0xff]   ;;  %1084 = vst [vmem:[#allocation2 + $0x60] sm:$0xf] %v1083_v2  ;;  %v2081_v35 = vrot.slane %v7751_v3, 1  ;;  %v7024_v62 = vld [vmem:[#allocation2 + $0x30] sm:$0xfe]  }
  0x7b   : > { %6698 = vmatpush3.bf16.msra.mxu1 %v7010_v25  ;;  %v1316_v47 = vld [vmem:[#allocation2 + $0x5c] sm:$0x1]  ;;  %v1743_v52 = vshrl.u32 %v6995_v43, 16  ;;  %v1745_v54 = vshll.u32 %v6995_v43, 16  ;;  %v1087_v7 = vsel %vm7383_vm7, %v842_v63, %v1086_v49  ;;  %v6998_v11 = vld [vmem:[#allocation2 + $0x48] sm:$0xff]   ;;  %v841_v16 = vsel %vm7367_vm5, %v833_v61, %v840_v6  ;;  %v7030_v43 = vld [vmem:[%s8370_s3 + $0x170] sm:$0xff]  }
  0x7c   : > { %6699 = vmatprep.subr.bf16.mxu1 %v7022_v27  ;;  %v1317_v55 = vsel %vm7428_vm8, 0, %v1316_v47  ;;  %1088 = vst [vmem:[#allocation2 + $0x68] sm:$0x1] %v1087_v7  ;;  %1085 = vst [vmem:[#allocation2 + $0x64] sm:$0xf] %v841_v16  ;;  %v844_v25 = vshrl.u32 %v6137_v40, 16  ;;  %6595 = vmatprep.subr.bf16.mxu0 %v7030_v43  ;;  %v2082_v0 = vsel %vm2070_vm10, %v2080_v18, %v2081_v35 }
  0x7d   : > { %v6996_v57 = vld [vmem:[#allocation2 + $0x50] ss:$0 sps:$4 sm:$0x11]   ;;  %1318 = vst [vmem:[#allocation2 + $0x5c] sm:$0x1] %v1317_v55  ;;  %v1747_v60 = vrot.slane %v1745_v54, 1  ;;  %6596 = vmatpush3.bf16.msra.mxu0 %v7034_v50 }
  0x7e   : > { %4674 = vmatmul.mubr.bf16.gmra.mrb[20].mxu1 %v2076_v44  ;;  %v1750_v1 = vshll.u32 %v6996_v57, 16  ;;  %v6337_v27 = vld [vmem:[%s7365_s26 + $0x48] sm:$0xff]   ;;  %v846_v37 = vrot.slane %v844_v25, 7  ;;  %v1093_v55 = vld [vmem:[#allocation2 + $0x74] sm:$0x1]  ;;  %v2083_v40 = vrot.slane %v7024_v62, 1 }
  0x7f   : > { %4681 = vmatprep.mubr.bf16.mxu1 %v7003_v36  ;;  %6700 = vmatpush3.bf16.msra.mxu1 %v7026_v42  ;;  %v1748_v4 = vor.u32 %v1747_v60, %v1743_v52  ;;  %v7001_v5 = vld [vmem:[#allocation2 + $0x54] sm:$0xff]   ;;  %v6223_v33 = vunpack.c.l.bf16 %v6337_v27  ;;  %v6224_v34 = vunpack.c.h.bf16 %v6337_v27  ;;  %v6138_v36 = vpack.c.bf16 %v593_v21, %v593_v21 }
  0x80   : > { %v1752_v8 = vrot.slane %v1750_v1, 1  ;;  %v1755_v13 = vshrl.u32 %v7001_v5, 16  ;;  %v1757_v14 = vshll.u32 %v7001_v5, 16  ;;  %v7006_v44 = vld [vmem:[#allocation2 + $0x54] sm:$0xff]   ;;  %v849_v46 = vor.u32 %v847_v26, %v846_v37 }
  0x81   : > { %v526_v41 = vmul.f32 %v7651_v10, %v6223_v33  ;;  %v527_v42 = vmul.f32 %v7651_v10, %v6224_v34  ;;  %v1264_v45 = vld [vmem:[#allocation2 + $0x60] sm:$0x1]  ;;  %v850_v47 = vrot.slane %v846_v37, 4  ;;  %v852_v48 = vshrl.u32 %v6138_v36, 16  ;;  %v6338_v5 = vld [vmem:[%s7365_s26 + $0x50] sm:$0xff]   ;;  %v7038_v43 = vld [vmem:[%s8370_s3 + $0x1d8] sm:$0xff]  }
  0x82   : > { %v1753_v20 = vsel %vm1669_vm9, %v1748_v4, %v1752_v8  ;;  %v1759_v29 = vrot.slane %v1757_v14, 1  ;;  %v855_v49 = vshll.u32 %v6138_v36, 16  ;;  %v1265_v52 = vsel %vm7383_vm7, 0, %v1264_v45  ;;  %v7025_v3 = vld [vmem:[#allocation2 + $0x38] ss:$0 sps:$4 sm:$0x11]   ;;  %6701 = vmatprep.subr.bf16.mxu1 %v7038_v43 }
  0x83   : > { %4552 = vmatprep.mubr.bf16.mxu0 %v1753_v20  ;;  %v1319_v54 = vld [vmem:[#allocation2 + $0x68] sm:$0x1]  ;;  %v562_v57 = vadd.f32 %v7658_v19, %v526_v41  ;;  %v563_v58 = vadd.f32 %v7658_v19, %v527_v42  ;;  %1266 = vst [vmem:[#allocation2 + $0x60] sm:$0x1] %v1265_v52  ;;  %v854_v60 = vrot.slane %v852_v48, 7  ;;  %v1090_v61 = vsel %vm7376_vm6, %v849_v46, %v1089_v31 }
  0x84   : > { %v7002_v32 = vld [vmem:[#allocation2 + $0x5c] ss:$0 sps:$4 sm:$0x11]   ;;  %4553 = vmatmul.mubr.bf16.gmra.mrb[24].mxu0 %v6998_v11  ;;  %v1760_v38 = vor.u32 %v1759_v29, %v1755_v13  ;;  %v1320_v59 = vsel %vm7428_vm8, 0, %v1319_v54  ;;  %1091 = vst [vmem:[#allocation2 + $0x6c] sm:$0xf] %v1090_v61  ;;  %v6227_v13 = vunpack.c.l.bf16 %v6338_v5  ;;  %v6228_v14 = vunpack.c.h.bf16 %v6338_v5 }
  0x85   : > { %v1762_v39 = vshll.u32 %v7002_v32, 16  ;;  %1321 = vst [vmem:[#allocation2 + $0x68] sm:$0x1] %v1320_v59  ;;  %v857_v1 = vor.u32 %v855_v49, %v854_v60  ;;  %v859_v2 = vrot.slane %v854_v60, 4  ;;  %v594_v9 = vmax.f32 %v562_v57, 0.0  ;;  %v7029_v29 = vld [vmem:[#allocation2 + $0x48] sm:$0xff]  }
  0x86   : > { %4682 = vmatmul.mubr.bf16.gmra.mrb[24].mxu1 %v2079_v12  ;;  %v595_v4 = vmax.f32 %v563_v58, 0.0  ;;  %v2084_v8 = vrot.slane %v7025_v3, 1  ;;  %v528_v21 = vmul.f32 %v7651_v10, %v6227_v13  ;;  %v1096_v27 = vld [vmem:[#allocation2 + $0x78] sm:$0xf]  ;;  %v1100_v32 = vld [vmem:[#allocation2 + $0x80] sm:$0x1]  ;;  %v529_v31 = vmul.f32 %v7651_v10, %v6228_v14 }
  0x87   : > { %4689 = vmatprep.mubr.bf16.mxu1 %v7013_v17  ;;  %v1764_v51 = vrot.slane %v1762_v39, 1  ;;  %v858_v6 = vsel %vm7367_vm5, %v850_v47, %v857_v1  ;;  %v1094_v7 = vsel %vm7383_vm7, %v859_v2, %v1093_v55  ;;  %v6139_v11 = vpack.c.bf16 %v594_v9, %v594_v9  ;;  %v7032_v48 = vld [vmem:[#allocation2 + $0x3c] sm:$0xfe]   ;;  %v7033_v60 = vld [vmem:[#allocation2 + $0x44] ss:$0 sps:$4 sm:$0x11]  }
  0x88   : > { %1092 = vst [vmem:[#allocation2 + $0x70] sm:$0xf] %v858_v6  ;;  %1095 = vst [vmem:[#allocation2 + $0x74] sm:$0x1] %v1094_v7  ;;  %v6140_v12 = vpack.c.bf16 %v595_v4, %v595_v4  ;;  %v2085_v26 = vsel %vm2070_vm10, %v2083_v40, %v2084_v8  ;;  %v564_v42 = vadd.f32 %v7658_v19, %v528_v21  ;;  %v7042_v49 = vld [vmem:[%s8370_s3 + $0x198] sm:$0xff]   ;;  %v2087_v1 = vrot.slane %v7033_v60, 1 }
  0x89   : > { %v1765_v63 = vsel %vm1669_vm9, %v1760_v38, %v1764_v51  ;;  %v861_v16 = vshrl.u32 %v6139_v11, 16  ;;  %v864_v17 = vshll.u32 %v6139_v11, 16  ;;  %v565_v54 = vadd.f32 %v7658_v19, %v529_v31  ;;  %6702 = vmatpush3.bf16.msra.mxu1 %v7042_v49  ;;  %v7037_v2 = vld [vmem:[#allocation2 + $0x54] sm:$0xff]   ;;  %v1103_v6 = vld [vmem:[#allocation2 + $0x84] sm:$0xf] }
  0x8a   : > { %4560 = vmatprep.mubr.bf16.mxu0 %v1765_v63  ;;  %v7011_v18 = vld [vmem:[#allocation2 + $0x60] sm:$0xff]   ;;  %v869_v20 = vshrl.u32 %v6140_v12, 16  ;;  %v872_v41 = vshll.u32 %v6140_v12, 16  ;;  %v596_v55 = vmax.f32 %v564_v42, 0.0  ;;  %v2086_v19 = vrot.slane %v7032_v48, 1  ;;  %v7043_v3 = vld [vmem:[%s8370_s3 + $0x178] sm:$0xff]  }
  0x8b   : > { %v1767_v33 = vshrl.u32 %v7011_v18, 16  ;;  %v1769_v34 = vshll.u32 %v7011_v18, 16  ;;  %v1267_v35 = vld [vmem:[#allocation2 + $0x6c] sm:$0x1]  ;;  %v863_v36 = vrot.slane %v861_v16, 7  ;;  %v7014_v45 = vld [vmem:[#allocation2 + $0x60] sm:$0xff]   ;;  %6597 = vmatprep.subr.bf16.mxu0 %v7043_v3 }
  0x8c   : > { %4561 = vmatmul.mubr.bf16.gmra.mrb[28].mxu0 %v7006_v44  ;;  %v7012_v25 = vld [vmem:[#allocation2 + $0x68] ss:$0 sps:$4 sm:$0x11]   ;;  %v871_v37 = vrot.slane %v869_v20, 7  ;;  %v1268_v39 = vsel %vm7383_vm7, 0, %v1267_v35  ;;  %v597_v62 = vmax.f32 %v565_v54, 0.0  ;;  %v6141_v63 = vpack.c.bf16 %v596_v55, %v596_v55 }
  0x8d   : > { %v1774_v38 = vshll.u32 %v7012_v25, 16  ;;  %v1771_v44 = vrot.slane %v1769_v34, 1  ;;  %1269 = vst [vmem:[#allocation2 + $0x6c] sm:$0x1] %v1268_v39  ;;  %v866_v10 = vor.u32 %v864_v17, %v863_v36  ;;  %v867_v46 = vrot.slane %v863_v36, 4  ;;  %v7044_v13 = vld [vmem:[%s8370_s3 + $0x138] sm:$0xff]  }
  0x8e   : > { %4690 = vmatmul.mubr.bf16.gmra.mrb[28].mxu1 %v2082_v0  ;;  %v876_v47 = vrot.slane %v871_v37, 4  ;;  %v874_v52 = vor.u32 %v872_v41, %v871_v37  ;;  %v6142_v9 = vpack.c.bf16 %v597_v62, %v597_v62  ;;  %v878_v40 = vshrl.u32 %v6141_v63, 16  ;;  %v1107_v25 = vld [vmem:[#allocation2 + $0x8c] sm:$0x1]  ;;  %6598 = vmatpush3.bf16.msra.mxu0 %v7044_v13  ;;  %v7055_v49 = vld [vmem:[%s8370_s3 + $0x1e0] sm:$0xff]  }
  0x8f   : > { %4697 = vmatprep.mubr.bf16.mxu1 %v7021_v56  ;;  %v1776_v50 = vrot.slane %v1774_v38, 1  ;;  %v1322_v51 = vld [vmem:[#allocation2 + $0x74] sm:$0x1]  ;;  %v1772_v56 = vor.u32 %v1771_v44, %v1767_v33  ;;  %v1097_v58 = vsel %vm7376_vm6, %v866_v10, %v1096_v27  ;;  %v881_v4 = vshll.u32 %v6141_v63, 16  ;;  %v7040_v39 = vld [vmem:[#allocation2 + $0x48] sm:$0xfe]   ;;  %6703 = vmatprep.subr.bf16.mxu1 %v7055_v49 }
  0x90   : > { %v1323_v57 = vsel %vm7428_vm8, 0, %v1322_v51  ;;  %v1101_v59 = vsel %vm7383_vm7, %v876_v47, %v1100_v32  ;;  %v875_v61 = vsel %vm7367_vm5, %v867_v46, %v874_v52  ;;  %1098 = vst [vmem:[#allocation2 + $0x78] sm:$0xf] %v1097_v58  ;;  %v2088_v5 = vsel %vm2070_vm10, %v2086_v19, %v2087_v1  ;;  %v7041_v43 = vld [vmem:[#allocation2 + $0x50] ss:$0 sps:$4 sm:$0x11]  }
  0x91   : > { %1324 = vst [vmem:[#allocation2 + $0x74] sm:$0x1] %v1323_v57  ;;  %1102 = vst [vmem:[#allocation2 + $0x80] sm:$0x1] %v1101_v59  ;;  %v1777_v0 = vsel %vm1669_vm9, %v1772_v56, %v1776_v50  ;;  %v880_v8 = vrot.slane %v878_v40, 7  ;;  %v886_v11 = vshrl.u32 %v6142_v9, 16 }
  0x92   : > { %1099 = vst [vmem:[#allocation2 + $0x7c] sm:$0xf] %v875_v61  ;;  %4568 = vmatprep.mubr.bf16.mxu0 %v1777_v0  ;;  %v889_v12 = vshll.u32 %v6142_v9, 16  ;;  %v7045_v44 = vld [vmem:[#allocation2 + $0x60] sm:$0xff]   ;;  %v2089_v10 = vrot.slane %v7040_v39, 1  ;;  %v7825_v46 = vld [vmem:[#allocation2 + $0xc] sm:$0xff]  }
  0x93   : > { %v883_v17 = vor.u32 %v881_v4, %v880_v8  ;;  %v884_v18 = vrot.slane %v880_v8, 4  ;;  %v888_v21 = vrot.slane %v886_v11, 7  ;;  %v2090_v48 = vrot.slane %v7041_v43, 1  ;;  %v7046_v52 = vld [vmem:[#allocation2 + $0xc] sm:$0xfe]  }
  0x94   : > { %4569 = vmatmul.mubr.bf16.gmra.mrb[32].mxu0 %v7014_v45  ;;  %v7019_v7 = vld [vmem:[#allocation2 + $0x6c] sm:$0xff]   ;;  %v2474_v57 = vshll.u32 %v7825_v46, 16  ;;  %v7047_v19 = vld [vmem:[#allocation2 + $0x14] ss:$0 sps:$4 sm:$0x11]   ;;  %v2472_v1 = vshrl.u32 %v7825_v46, 16 }
  0x95   : > { %v1779_v14 = vshrl.u32 %v7019_v7, 16  ;;  %v1781_v16 = vshll.u32 %v7019_v7, 16  ;;  %v891_v35 = vor.u32 %v889_v12, %v888_v21  ;;  %v7023_v37 = vld [vmem:[#allocation2 + $0x6c] sm:$0xff]   ;;  %v893_v38 = vrot.slane %v888_v21, 4  ;;  %v7048_v9 = vld [vmem:[#allocation2 + $0x54] sm:$0xfe]  }
  0x96   : > { %4698 = vmatmul.mubr.bf16.gmra.mrb[32].mxu1 %v2085_v26  ;;  %v2091_v50 = vsel %vm2070_vm10, %v2089_v10, %v2090_v48  ;;  %v2871_v3 = vrot.slane %v7046_v52, 1  ;;  %v7049_v4 = vld [vmem:[#allocation2 + $0x5c] ss:$0 sps:$4 sm:$0x11]   ;;  %v2092_v7 = vrot.slane %v7048_v9, 1  ;;  %v2476_v8 = vrot.slane %v2474_v57, 1 }
  0x97   : > { %4705 = vmatprep.mubr.bf16.mxu1 %v7029_v29  ;;  %v1783_v26 = vrot.slane %v1781_v16, 1  ;;  %v1270_v27 = vld [vmem:[#allocation2 + $0x78] sm:$0x1]  ;;  %v1104_v29 = vsel %vm7376_vm6, %v883_v17, %v1103_v6  ;;  %v892_v42 = vsel %vm7367_vm5, %v884_v18, %v891_v35  ;;  %v1108_v45 = vsel %vm7383_vm7, %v893_v38, %v1107_v25  ;;  %v7841_v6 = vld [vmem:[%s8370_s3 + $0x200] sm:$0xff]  }
  0x98   : > { %v7020_v20 = vld [vmem:[#allocation2 + $0x74] ss:$0 sps:$4 sm:$0x11]   ;;  %v1325_v32 = vld [vmem:[#allocation2 + $0x80] sm:$0x1]  ;;  %v1271_v33 = vsel %vm7383_vm7, 0, %v1270_v27  ;;  %6831 = vmatprep.subr.bf16.mxu0 %v7841_v6 }
  0x99   : > { %v1786_v31 = vshll.u32 %v7020_v20, 16  ;;  %v1326_v34 = vsel %vm7428_vm8, 0, %v1325_v32  ;;  %1105 = vst [vmem:[#allocation2 + $0x84] sm:$0xf] %v1104_v29  ;;  %v1784_v36 = vor.u32 %v1783_v26, %v1779_v14  ;;  %1272 = vst [vmem:[#allocation2 + $0x78] sm:$0x1] %v1271_v33 }
  0x9a   : > { %1327 = vst [vmem:[#allocation2 + $0x80] sm:$0x1] %v1326_v34  ;;  %1106 = vst [vmem:[#allocation2 + $0x88] sm:$0xf] %v892_v42  ;;  %v2093_v13 = vrot.slane %v7049_v4, 1  ;;  %v2872_v14 = vrot.slane %v7047_v19, 1 }
  0x9b   : > { %v1788_v41 = vrot.slane %v1786_v31, 1  ;;  %1109 = vst [vmem:[#allocation2 + $0x8c] sm:$0x1] %v1108_v45  ;;  %v7051_v16 = vld [vmem:[#allocation2 + $0x14] ss:$0 sps:$4 sm:$0x11]  }
  0x9c   : > { %v2094_v20 = vsel %vm2070_vm10, %v2092_v7, %v2093_v13  ;;  %v2479_v21 = vshll.u32 %v7051_v16, 16  ;;  %v7059_v25 = vld [vmem:[#allocation2 + $0x18] sm:$0xff]   ;;  %v7054_v29 = vld [vmem:[#allocation2 + $0x20] ss:$0 sps:$4 sm:$0x11]   ;;  %v7067_v57 = vld [vmem:[#allocation2 + $0x24] sm:$0xff]  }
  0x9d   : > { %v1789_v47 = vsel %vm1669_vm9, %v1784_v36, %v1788_v41  ;;  %v7053_v32 = vld [vmem:[#allocation2 + $0x18] sm:$0xfe]   ;;  %v2484_v31 = vshrl.u32 %v7059_v25, 16  ;;  %v2486_v38 = vshll.u32 %v7059_v25, 16  ;;  %v2875_v41 = vrot.slane %v7054_v29, 1  ;;  %v7061_v10 = vld [vmem:[%s8370_s3 + $0x1a0] sm:$0xff]  }
  0x9e   : > { %4706 = vmatmul.mubr.bf16.gmra.mrb[36].mxu1 %v2088_v5  ;;  %4576 = vmatprep.mubr.bf16.mxu0 %v1789_v47  ;;  %v7052_v5 = vld [vmem:[#allocation2 + $0x6c] sm:$0xff]   ;;  %v2481_v36 = vrot.slane %v2479_v21, 1  ;;  %v7057_v42 = vld [vmem:[#allocation2 + $0x60] sm:$0xfe]   ;;  %v2496_v7 = vshrl.u32 %v7067_v57, 16 }
  0x9f   : > { %4713 = vmatprep.mubr.bf16.mxu1 %v7037_v2  ;;  %4577 = vmatmul.mubr.bf16.gmra.mrb[36].mxu0 %v7023_v37  ;;  %v2874_v37 = vrot.slane %v7053_v32, 1  ;;  %v7058_v45 = vld [vmem:[#allocation2 + $0x68] ss:$0 sps:$4 sm:$0x11]   ;;  %v2095_v46 = vrot.slane %v7057_v42, 1 }
  0xa0   : > { %v1273_v51 = vld [vmem:[#allocation2 + $0x84] sm:$0x1]  ;;  %v7027_v54 = vld [vmem:[#allocation2 + $0x78] sm:$0xff]   ;;  %v7060_v47 = vld [vmem:[#allocation2 + $0x20] ss:$0 sps:$4 sm:$0x11]   ;;  %6704 = vmatpush3.bf16.msra.mxu1 %v7061_v10 }
  0xa1   : > { %v1274_v55 = vsel %vm7383_vm7, 0, %v1273_v51  ;;  %v7028_v56 = vld [vmem:[#allocation2 + $0x80] ss:$0 sps:$4 sm:$0x11]   ;;  %v1791_v58 = vshrl.u32 %v7027_v54, 16  ;;  %v1793_v59 = vshll.u32 %v7027_v54, 16  ;;  %v2876_v19 = vsel %vm2070_vm10, %v2874_v37, %v2875_v41 }
  0xa2   : > { %1275 = vst [vmem:[#allocation2 + $0x84] sm:$0x1] %v1274_v55  ;;  %v1798_v60 = vshll.u32 %v7028_v56, 16  ;;  %v1328_v61 = vld [vmem:[#allocation2 + $0x8c] sm:$0x1]  ;;  %v7031_v63 = vld [vmem:[#allocation2 + $0x78] sm:$0xff]  }
  0xa3   : > { %v1795_v62 = vrot.slane %v1793_v59, 1  ;;  %v1329_v0 = vsel %vm7428_vm8, 0, %v1328_v61  ;;  %v2096_v48 = vrot.slane %v7058_v45, 1  ;;  %v7062_v49 = vld [vmem:[#allocation2 + $0x78] sm:$0xff]   ;;  %v2488_v51 = vrot.slane %v2486_v38, 1  ;;  %v7079_v38 = vld [vmem:[#allocation2 + $0x90] sm:$0xff]  }
  0xa4   : > { %v1800_v2 = vrot.slane %v1798_v60, 1  ;;  %1330 = vst [vmem:[#allocation2 + $0x8c] sm:$0x1] %v1329_v0  ;;  %v2491_v52 = vshll.u32 %v7060_v47, 16  ;;  %v7063_v55 = vld [vmem:[#allocation2 + $0x24] sm:$0xfe]  }
  0xa5   : > { %v1796_v40 = vor.u32 %v1795_v62, %v1791_v58  ;;  %v2097_v54 = vsel %vm2070_vm10, %v2095_v46, %v2096_v48  ;;  %v7064_v56 = vld [vmem:[#allocation2 + $0x2c] ss:$0 sps:$4 sm:$0x11]   ;;  %v2877_v60 = vrot.slane %v7063_v55, 1  ;;  %v7065_v61 = vld [vmem:[#allocation2 + $0x6c] sm:$0xfe]   ;;  %v2489_v9 = vor.u32 %v2488_v51, %v2484_v31 }
  0xa6   : > { %4714 = vmatmul.mubr.bf16.gmra.mrb[40].mxu1 %v2091_v50  ;;  %v2477_v50 = vor.u32 %v2476_v8, %v2472_v1  ;;  %v2493_v59 = vrot.slane %v2491_v52, 1  ;;  %v2878_v62 = vrot.slane %v7064_v56, 1  ;;  %v2098_v0 = vrot.slane %v7065_v61, 1  ;;  %v7068_v1 = vld [vmem:[#allocation2 + $0x2c] ss:$0 sps:$4 sm:$0x11]  }
  0xa7   : > { %4721 = vmatprep.mubr.bf16.mxu1 %v7045_v44  ;;  %v1801_v11 = vsel %vm1669_vm9, %v1796_v40, %v1800_v2  ;;  %v2873_v44 = vsel %vm2070_vm10, %v2871_v3, %v2872_v14  ;;  %v2498_v3 = vshll.u32 %v7067_v57, 16  ;;  %v2503_v40 = vshll.u32 %v7068_v1, 16  ;;  %v7070_v8 = vld [vmem:[#allocation2 + $0x30] sm:$0xfe]   ;;  %v7074_v21 = vld [vmem:[#allocation2 + $0x78] sm:$0xfe]  }
  0xa8   : > { %4584 = vmatprep.mubr.bf16.mxu0 %v1801_v11  ;;  %v2482_v58 = vsel %vm1669_vm9, %v2477_v50, %v2481_v36  ;;  %v7072_v11 = vld [vmem:[%s8370_s3 + $0x1e8] sm:$0xff]   ;;  %v7071_v13 = vld [vmem:[#allocation2 + $0x38] ss:$0 sps:$4 sm:$0x11]   ;;  %v2494_v16 = vsel %vm1669_vm9, %v2489_v9, %v2493_v59  ;;  %v7084_v10 = vld [vmem:[#allocation2 + $0x3c] sm:$0xff]  }
  0xa9   : > { %v7035_v12 = vld [vmem:[#allocation2 + $0x84] sm:$0xff]   ;;  %4585 = vmatmul.mubr.bf16.gmra.mrb[40].mxu0 %v7031_v63  ;;  %v7066_v63 = vld [vmem:[#allocation2 + $0x74] ss:$0 sps:$4 sm:$0x11]   ;;  %v2505_v14 = vrot.slane %v2503_v40, 1  ;;  %6705 = vmatprep.subr.bf16.mxu1 %v7072_v11  ;;  %v2881_v25 = vrot.slane %v7071_v13, 1 }
  0xaa   : > { %v1803_v17 = vshrl.u32 %v7035_v12, 16  ;;  %v1805_v18 = vshll.u32 %v7035_v12, 16  ;;  %v7039_v35 = vld [vmem:[#allocation2 + $0x84] sm:$0xff]   ;;  %v2099_v2 = vrot.slane %v7066_v63, 1  ;;  %v2500_v12 = vrot.slane %v2498_v3, 1  ;;  %v7086_v56 = vld [vmem:[#allocation2 + $0x9c] sm:$0xff]  }
  0xab   : > { %v7036_v26 = vld [vmem:[#allocation2 + $0x8c] ss:$0 sps:$4 sm:$0x11]   ;;  %v7069_v4 = vld [vmem:[#allocation2 + $0x84] sm:$0xff]   ;;  %v2522_v55 = vshll.u32 %v7084_v10, 16  ;;  %v7089_v59 = vld [vmem:[%s8370_s3 + $0x1f0] sm:$0xff]  }
  0xac   : > { %v1807_v27 = vrot.slane %v1805_v18, 1  ;;  %v1810_v34 = vshll.u32 %v7036_v26, 16  ;;  %v7076_v18 = vld [vmem:[#allocation2 + $0x30] sm:$0xff]   ;;  %v7075_v26 = vld [vmem:[#allocation2 + $0x80] ss:$0 sps:$4 sm:$0x11]   ;;  %v2501_v29 = vor.u32 %v2500_v12, %v2496_v7 }
  0xad   : > { %v2510_v32 = vshll.u32 %v7076_v18, 16  ;;  %v2102_v31 = vrot.slane %v7075_v26, 1  ;;  %v7082_v47 = vld [vmem:[#allocation2 + $0x84] sm:$0xfe]   ;;  %v2524_v63 = vrot.slane %v2522_v55, 1  ;;  %v7095_v40 = vld [vmem:[%s8370_s3 + $0x1b0] sm:$0xff]  }
  0xae   : > { %4722 = vmatmul.mubr.bf16.gmra.mrb[44].mxu1 %v2094_v20  ;;  %v1808_v33 = vor.u32 %v1807_v27, %v1803_v17  ;;  %v1812_v39 = vrot.slane %v1810_v34, 1  ;;  %v2880_v17 = vrot.slane %v7070_v8, 1  ;;  %v2879_v20 = vsel %vm2070_vm10, %v2877_v60, %v2878_v62  ;;  %v7083_v48 = vld [vmem:[#allocation2 + $0x8c] ss:$0 sps:$4 sm:$0x11]   ;;  %v7132_v24 = vld [vmem:[#allocation2 + $0x84] sm:$0xff]  }
  0xaf   : > { %4729 = vmatprep.mubr.bf16.mxu1 %v7052_v5  ;;  %v2100_v5 = vsel %vm2070_vm10, %v2098_v0, %v2099_v2  ;;  %v2101_v27 = vrot.slane %v7074_v21, 1  ;;  %v2508_v34 = vshrl.u32 %v7076_v18, 16  ;;  %v2506_v41 = vsel %vm1669_vm9, %v2501_v29, %v2505_v14  ;;  %v7087_v61 = vld [vmem:[#allocation2 + $0x48] sm:$0xfe]   ;;  %v7097_v26 = vld [vmem:[#allocation2 + $0x54] sm:$0xfe]  }
  0xb0   : > { %v1813_v43 = vsel %vm1669_vm9, %v1808_v33, %v1812_v39  ;;  %v7077_v33 = vld [vmem:[#allocation2 + $0x38] ss:$0 sps:$4 sm:$0x11]   ;;  %v7080_v39 = vld [vmem:[#allocation2 + $0x3c] sm:$0xfe]   ;;  %v2512_v42 = vrot.slane %v2510_v32, 1 }
  0xb1   : > { %4592 = vmatprep.mubr.bf16.mxu0 %v1813_v43  ;;  %v2103_v36 = vsel %vm2070_vm10, %v2101_v27, %v2102_v31  ;;  %v2515_v37 = vshll.u32 %v7077_v33, 16  ;;  %v7081_v43 = vld [vmem:[#allocation2 + $0x44] ss:$0 sps:$4 sm:$0x11]   ;;  %v2883_v46 = vrot.slane %v7080_v39, 1  ;;  %v2104_v51 = vrot.slane %v7082_v47, 1 }
  0xb2   : > { %4593 = vmatmul.mubr.bf16.gmra.mrb[44].mxu0 %v7039_v35  ;;  %v7078_v35 = vld [vmem:[%s8370_s3 + $0x1a8] sm:$0xff]   ;;  %v2884_v50 = vrot.slane %v7081_v43, 1  ;;  %v2105_v52 = vrot.slane %v7083_v48, 1  ;;  %v2520_v60 = vshrl.u32 %v7084_v10, 16  ;;  %v2886_v9 = vrot.slane %v7087_v61, 1  ;;  %v7101_v32 = vld [vmem:[#allocation2 + $0x54] sm:$0xff]  }
  0xb3   : > { %4826 = vmatprep.mubr.bf16.mxu0 %v2873_v44  ;;  %6706 = vmatpush3.bf16.msra.mxu1 %v7078_v35  ;;  %v2882_v44 = vsel %vm2070_vm10, %v2880_v17, %v2881_v25  ;;  %v2517_v45 = vrot.slane %v2515_v37, 1  ;;  %v7088_v0 = vld [vmem:[#allocation2 + $0x50] ss:$0 sps:$4 sm:$0x11]   ;;  %v7093_v3 = vld [vmem:[#allocation2 + $0x48] sm:$0xff]   ;;  %v2889_v31 = vrot.slane %v7097_v26, 1 }
  0xb4   : > { %v2106_v57 = vsel %vm2070_vm10, %v2104_v51, %v2105_v52  ;;  %6707 = vmatprep.subr.bf16.mxu1 %v7089_v59  ;;  %v2885_v1 = vsel %vm2070_vm10, %v2883_v46, %v2884_v50  ;;  %v2887_v7 = vrot.slane %v7088_v0, 1  ;;  %v7092_v8 = vld [vmem:[#allocation2 + $0x98] ss:$0 sps:$4 sm:$0x11]   ;;  %v2534_v12 = vshll.u32 %v7093_v3, 16  ;;  %v7110_v59 = vld [vmem:[#allocation2 + $0x60] sm:$0xff]  }
  0xb5   : > { %v2108_v13 = vrot.slane %v7092_v8, 1  ;;  %v7094_v14 = vld [vmem:[#allocation2 + $0x50] ss:$0 sps:$4 sm:$0x11]   ;;  %v7099_v35 = vld [vmem:[#allocation2 + $0x9c] sm:$0xfe]  }
  0xb6   : > { %4730 = vmatmul.mubr.bf16.gmra.mrb[48].mxu1 %v2097_v54  ;;  %v7085_v54 = vld [vmem:[#allocation2 + $0x44] ss:$0 sps:$4 sm:$0x11]   ;;  %v2539_v21 = vshll.u32 %v7094_v14, 16  ;;  %v2888_v25 = vsel %vm2070_vm10, %v2886_v9, %v2887_v7  ;;  %v2110_v37 = vrot.slane %v7099_v35, 1  ;;  %v7103_v43 = vld [vmem:[#allocation2 + $0xb4] sm:$0xff]  }
  0xb7   : > { %4737 = vmatprep.mubr.bf16.mxu1 %v7062_v49  ;;  %v2513_v49 = vor.u32 %v2512_v42, %v2508_v34  ;;  %6708 = vmatpush3.bf16.msra.mxu1 %v7095_v40  ;;  %v7098_v27 = vld [vmem:[#allocation2 + $0x5c] ss:$0 sps:$4 sm:$0x11]   ;;  %v2544_v42 = vshrl.u32 %v7101_v32, 16  ;;  %v7104_v48 = vld [vmem:[#allocation2 + $0x60] sm:$0xfe]  }
  0xb8   : > { %v2541_v29 = vrot.slane %v2539_v21, 1  ;;  %v2890_v34 = vrot.slane %v7098_v27, 1  ;;  %v7102_v39 = vld [vmem:[#allocation2 + $0x5c] ss:$0 sps:$4 sm:$0x11]   ;;  %v2892_v51 = vrot.slane %v7104_v48, 1 }
  0xb9   : > { %v2518_v62 = vsel %vm1669_vm9, %v2513_v49, %v2517_v45  ;;  %v2551_v46 = vshll.u32 %v7102_v39, 16  ;;  %v7105_v50 = vld [vmem:[#allocation2 + $0x68] ss:$0 sps:$4 sm:$0x11]   ;;  %v7106_v52 = vld [vmem:[%s8370_s3 + $0x1f8] sm:$0xff]   ;;  %v2558_v0 = vshll.u32 %v7110_v59, 16 }
  0xba   : > { %4827 = vmatmul.mubr.bf16.vlgmr.msra.gmra.mrb[48].mxu0 %v2482_v58  ;;  %v2527_v58 = vshll.u32 %v7085_v54, 16  ;;  %v2891_v47 = vsel %vm2070_vm10, %v2889_v31, %v2890_v34  ;;  %v2893_v55 = vrot.slane %v7105_v50, 1  ;;  %6709 = vmatprep.subr.bf16.mxu1 %v7106_v52  ;;  %v7111_v61 = vld [vmem:[#allocation2 + $0x68] ss:$0 sps:$4 sm:$0x11]   ;;  %v6343_v9 = vld [vmem:[%s7365_s26 + $0x78] sm:$0xff]  }
  0xbb   : > { %4834 = vmatprep.mubr.bf16.mxu0 %v2876_v19  ;;  %6832 = vmatpush3.bf16.msra.mxu0 %v7841_v6  ;;  %v7073_v6 = vld [vmem:[%s8370_s3 + $0x208] sm:$0xff]   ;;  %v7090_v19 = vld [vmem:[%s8370_s3 + $0x210] sm:$0xff]   ;;  %v2553_v49 = vrot.slane %v2551_v46, 1  ;;  %v6248_v7 = vunpack.c.h.bf16 %v6343_v9  ;;  %v7234_v14 = vld [vmem:[%s8371_s4] ss:$0 sm:$0xff] }
  0xbc   : > { %6833 = vmatprep.subr.bf16.mxu0 %v7073_v6  ;;  %v2529_v2 = vrot.slane %v2527_v58, 1  ;;  %v7109_v58 = vld [vmem:[#allocation2 + $0xb0] ss:$0 sps:$4 sm:$0x11]   ;;  %v7235_v21 = vld [vmem:[%s8371_s4 + $0x1] ss:$0 sm:$0xff] }
  0xbd   : > { %v7118_v8 = vld [vmem:[#allocation2 + $0x6c] sm:$0xff]   ;;  %v7119_v34 = vld [vmem:[#allocation2 + $0x74] ss:$0 sps:$4 sm:$0x11]   ;;  %v1138_v52 = vld [vmem:[#allocation2 + $0xc0] sm:$0xf] }
  0xbe   : > { %4738 = vmatmul.mubr.bf16.gmra.mrb[52].mxu1 %v2100_v5  ;;  %v2525_v5 = vor.u32 %v2524_v63, %v2520_v60  ;;  %v2556_v63 = vshrl.u32 %v7110_v59, 16  ;;  %v2575_v39 = vshll.u32 %v7119_v34, 16  ;;  %v7916_v59 = vld [vmem:[#allocation2 + $0xb4] sm:$0xfe]  }
  0xbf   : > { %4745 = vmatprep.mubr.bf16.mxu1 %v7069_v4  ;;  %6834 = vmatpush3.bf16.msra.mxu0 %v7073_v6  ;;  %v7091_v4 = vld [vmem:[#allocation2 + $0x90] sm:$0xfe]   ;;  %v2532_v6 = vshrl.u32 %v7093_v3, 16  ;;  %v2563_v3 = vshll.u32 %v7111_v61, 16  ;;  %v7125_v61 = vld [vmem:[#allocation2 + $0x78] sm:$0xff]  }
  0xc0   : > { %6835 = vmatprep.subr.bf16.mxu0 %v7090_v19  ;;  %v2107_v11 = vrot.slane %v7091_v4, 1  ;;  %v2530_v17 = vsel %vm1669_vm9, %v2525_v5, %v2529_v2  ;;  %v2894_v2 = vsel %vm2070_vm10, %v2892_v51, %v2893_v55  ;;  %v2560_v4 = vrot.slane %v2558_v0, 1  ;;  %v7117_v0 = vld [vmem:[#allocation2 + $0xbc] ss:$0 sps:$4 sm:$0x11]  }
  0xc1   : > { %v6247_v5 = vunpack.c.l.bf16 %v6343_v9  ;;  %v2582_v9 = vshll.u32 %v7125_v61, 16 }
  0xc2   : > { %4835 = vmatmul.mubr.bf16.gmra.mrb[52].mxu0 %v2494_v16  ;;  %v7096_v16 = vld [vmem:[#allocation2 + $0xa8] sm:$0xff]   ;;  %v2109_v18 = vsel %vm2070_vm10, %v2107_v11, %v2108_v13  ;;  %v2565_v13 = vrot.slane %v2563_v3, 1  ;;  %v2580_v3 = vshrl.u32 %v7125_v61, 16 }
  0xc3   : > { %4842 = vmatprep.mubr.bf16.mxu0 %v2879_v20  ;;  %6836 = vmatpush3.bf16.msra.mxu0 %v7090_v19  ;;  %v2536_v20 = vrot.slane %v2534_v12, 1  ;;  %v7114_v11 = vld [vmem:[#allocation2 + $0x6c] sm:$0xfe]   ;;  %v2561_v12 = vor.u32 %v2560_v4, %v2556_v63  ;;  %v7128_v4 = vld [vmem:[#allocation2 + $0x84] sm:$0xfe]  }
  0xc5   : > { %v2537_v33 = vor.u32 %v2536_v20, %v2532_v6  ;;  %v538_v6 = vmul.f32 %v7234_v14, %v6247_v5  ;;  %v2570_v20 = vshll.u32 %v7118_v8, 16  ;;  %v2584_v5 = vrot.slane %v2582_v9, 1  ;;  %v7143_v9 = vld [vmem:[#allocation2 + $0x9c] sm:$0xfe]  }
  0xc6   : > { %4746 = vmatmul.mubr.bf16.gmra.mrb[56].mxu1 %v2103_v36  ;;  %v7100_v36 = vld [vmem:[#allocation2 + $0xa4] ss:$0 sps:$4 sm:$0x11]  }
  0xc7   : > { %4753 = vmatprep.mubr.bf16.mxu1 %v7079_v38  ;;  %v2111_v38 = vrot.slane %v7100_v36, 1  ;;  %v2572_v36 = vrot.slane %v2570_v20, 1 }
  0xc9   : > { %v2112_v45 = vsel %vm2070_vm10, %v2110_v37, %v2111_v38 }
  0xca   : > { %4843 = vmatmul.mubr.bf16.gmra.mrb[56].mxu0 %v2506_v41  ;;  %v2546_v41 = vshll.u32 %v7101_v32, 16  ;;  %v2568_v32 = vshrl.u32 %v7118_v8, 16  ;;  %v7129_v8 = vld [vmem:[#allocation2 + $0x8c] ss:$0 sps:$4 sm:$0x11]  }
  0xcb   : > { %4850 = vmatprep.mubr.bf16.mxu0 %v2882_v44  ;;  %v2542_v44 = vsel %vm1669_vm9, %v2537_v33, %v2541_v29  ;;  %v2566_v29 = vsel %vm1669_vm9, %v2561_v12, %v2565_v13  ;;  %v2116_v12 = vrot.slane %v7916_v59, 1  ;;  %v7141_v59 = vld [vmem:[#allocation2 + $0x98] ss:$0 sps:$4 sm:$0x11]  }
  0xcc   : > { %v2548_v10 = vrot.slane %v2546_v41, 1  ;;  %v7120_v41 = vld [vmem:[#allocation2 + $0x78] sm:$0xfe]  }
  0xcd   : > { %v2898_v48 = vrot.slane %v7120_v41, 1 }
  0xce   : > { %4754 = vmatmul.mubr.bf16.gmra.mrb[60].mxu1 %v2106_v57  ;;  %v2549_v54 = vor.u32 %v2548_v10, %v2544_v42  ;;  %v7108_v57 = vld [vmem:[#allocation2 + $0xa8] sm:$0xfe]   ;;  %v2573_v42 = vor.u32 %v2572_v36, %v2568_v32  ;;  %v2592_v32 = vshrl.u32 %v7132_v24, 16 }
  0xcf   : > { %4761 = vmatprep.mubr.bf16.mxu1 %v7086_v56  ;;  %v7107_v56 = vld [vmem:[%s8370_s3 + $0x218] sm:$0xff]   ;;  %v2113_v60 = vrot.slane %v7108_v57, 1 }
  0xd0   : > { %6837 = vmatprep.subr.bf16.mxu0 %v7107_v56  ;;  %v2554_v19 = vsel %vm1669_vm9, %v2549_v54, %v2553_v49  ;;  %v7124_v54 = vld [vmem:[%s8370_s3 + $0x220] sm:$0xff]  }
  0xd1   : > { %6838 = vmatpush3.bf16.msra.mxu0 %v7107_v56 }
  0xd2   : > { %4851 = vmatmul.mubr.bf16.gmra.mrb[60].mxu0 %v2518_v62  ;;  %v2114_v62 = vrot.slane %v7109_v58, 1  ;;  %6839 = vmatprep.subr.bf16.mxu0 %v7124_v54 }
  0xd3   : > { %4858 = vmatprep.mubr.bf16.mxu0 %v2885_v1  ;;  %v7112_v1 = vld [vmem:[%s8370_s3 + $0x1b8] sm:$0xff]  }
  0xd4   : > { %v2115_v40 = vsel %vm2070_vm10, %v2113_v60, %v2114_v62  ;;  %6710 = vmatpush3.bf16.msra.mxu1 %v7112_v1  ;;  %v7122_v1 = vld [vmem:[#allocation2 + $0x18] sm:$0xff]  }
  0xd5   : > { %6840 = vmatpush3.bf16.msra.mxu0 %v7124_v54  ;;  %v3275_v13 = vshll.u32 %v7122_v1, 16  ;;  %v7140_v54 = vld [vmem:[#allocation2 + $0x90] sm:$0xff]  }
  0xd6   : > { %4762 = vmatmul.mubr.bf16.gmra.mrb[64].mxu1 %v2109_v18  ;;  %v2895_v18 = vrot.slane %v7114_v11, 1  ;;  %v2901_v11 = vrot.slane %v7128_v4, 1 }
  0xd7   : > { %4769 = vmatprep.mubr.bf16.mxu1 %v7096_v16  ;;  %v539_v16 = vmul.f32 %v7234_v14, %v6248_v7  ;;  %v2585_v14 = vor.u32 %v2584_v5, %v2580_v3  ;;  %v3277_v34 = vrot.slane %v3275_v13, 1 }
  0xd9   : > { %v575_v26 = vadd.f32 %v7235_v21, %v539_v16  ;;  %v2117_v16 = vrot.slane %v7117_v0, 1  ;;  %v2611_v0 = vshll.u32 %v7141_v59, 16  ;;  %v7162_v59 = vld [vmem:[#allocation2 + $0xb4] sm:$0xff]  }
  0xda   : > { %4859 = vmatmul.mubr.bf16.gmra.mrb[64].mxu0 %v2530_v17  ;;  %v7115_v17 = vld [vmem:[#allocation2 + $0x74] ss:$0 sps:$4 sm:$0x11]  }
  0xdb   : > { %4866 = vmatprep.mubr.bf16.mxu0 %v2888_v25  ;;  %v574_v25 = vadd.f32 %v7235_v21, %v538_v6  ;;  %v2896_v27 = vrot.slane %v7115_v17, 1  ;;  %v607_v33 = vmax.f32 %v575_v26, 0.0  ;;  %v2902_v6 = vrot.slane %v7129_v8, 1  ;;  %v7130_v21 = vld [vmem:[#allocation2 + $0x24] sm:$0xff]  }
  0xdc   : > { %v3287_v41 = vshll.u32 %v7130_v21, 16  ;;  %v2613_v3 = vrot.slane %v2611_v0, 1  ;;  %v2907_v8 = vrot.slane %v7143_v9, 1 }
  0xdd   : > { %v606_v31 = vmax.f32 %v574_v25, 0.0  ;;  %v2897_v35 = vsel %vm2070_vm10, %v2895_v18, %v2896_v27  ;;  %v6152_v38 = vpack.c.bf16 %v607_v33, %v607_v33  ;;  %v2903_v20 = vsel %vm2070_vm10, %v2901_v11, %v2902_v6  ;;  %v7133_v25 = vld [vmem:[#allocation2 + $0x8c] ss:$0 sps:$4 sm:$0x11]  }
  0xde   : > { %4770 = vmatmul.mubr.bf16.gmra.mrb[68].mxu1 %v2112_v45  ;;  %v7131_v27 = vld [vmem:[#allocation2 + $0x2c] ss:$0 sps:$4 sm:$0x11]   ;;  %v3273_v33 = vshrl.u32 %v7122_v1, 16 }
  0xdf   : > { %4777 = vmatprep.mubr.bf16.mxu1 %v7103_v43  ;;  %v6151_v37 = vpack.c.bf16 %v606_v31, %v606_v31  ;;  %v7121_v43 = vld [vmem:[#allocation2 + $0x80] ss:$0 sps:$4 sm:$0x11]   ;;  %v971_v10 = vshrl.u32 %v6152_v38, 16  ;;  %v974_v46 = vshll.u32 %v6152_v38, 16 }
  0xe0   : > { %v2899_v49 = vrot.slane %v7121_v43, 1  ;;  %v7135_v43 = vld [vmem:[#allocation2 + $0x90] sm:$0xfe]  }
  0xe1   : > { %v966_v45 = vshll.u32 %v6151_v37, 16  ;;  %v7909_v51 = vrot.slane %v971_v10, 7  ;;  %v3292_v10 = vshll.u32 %v7131_v27, 16 }
  0xe2   : > { %4867 = vmatmul.mubr.bf16.gmra.mrb[68].mxu0 %v2542_v44  ;;  %v963_v44 = vshrl.u32 %v6151_v37, 16  ;;  %v2900_v60 = vsel %vm2070_vm10, %v2898_v48, %v2899_v49  ;;  %v7139_v37 = vld [vmem:[%s8370_s3 + $0x228] sm:$0xff]   ;;  %v7137_v49 = vld [vmem:[#allocation2 + $0x30] sm:$0xff]  }
  0xe3   : > { %4874 = vmatprep.mubr.bf16.mxu0 %v2891_v47  ;;  %v2577_v47 = vrot.slane %v2575_v39, 1  ;;  %v976_v57 = vor.u32 %v974_v46, %v7909_v51  ;;  %6841 = vmatprep.subr.bf16.mxu0 %v7139_v37  ;;  %v3294_v61 = vrot.slane %v3292_v10, 1  ;;  %v3297_v13 = vshrl.u32 %v7137_v49, 16 }
  0xe4   : > { %v965_v50 = vrot.slane %v963_v44, 7  ;;  %v7136_v44 = vld [vmem:[#allocation2 + $0x98] ss:$0 sps:$4 sm:$0x11]   ;;  %6842 = vmatpush3.bf16.msra.mxu0 %v7139_v37  ;;  %v978_v0 = vrot.slane %v7909_v51, 4 }
  0xe5   : > { %v2578_v58 = vsel %vm1669_vm9, %v2573_v42, %v2577_v47  ;;  %v2904_v47 = vrot.slane %v7135_v43, 1  ;;  %v2905_v48 = vrot.slane %v7136_v44, 1  ;;  %v7152_v43 = vld [vmem:[#allocation2 + $0x48] sm:$0xff]   ;;  %v7161_v51 = vld [vmem:[#allocation2 + $0x5c] ss:$0 sps:$4 sm:$0x11]  }
  0xe6   : > { %4778 = vmatmul.mubr.bf16.gmra.mrb[72].mxu1 %v2115_v40  ;;  %v968_v55 = vor.u32 %v966_v45, %v965_v50  ;;  %v969_v56 = vrot.slane %v965_v50, 4  ;;  %v3278_v45 = vor.u32 %v3277_v34, %v3273_v33  ;;  %v3285_v50 = vshrl.u32 %v7130_v21, 16  ;;  %v7150_v34 = vld [vmem:[#allocation2 + $0xa8] sm:$0xfe]  }
  0xe8   : > { %v977_v62 = vsel %vm7367_vm5, %v969_v56, %v976_v57  ;;  %v1139_v63 = vsel %vm7376_vm6, %v968_v55, %v1138_v52  ;;  %v2906_v52 = vsel %vm2070_vm10, %v2904_v47, %v2905_v48  ;;  %v2118_v56 = vsel %vm2070_vm10, %v2116_v12, %v2117_v16  ;;  %v7127_v12 = vld [vmem:[#allocation2 + $0x18] sm:$0xff]  }
  0xe9   : > { %1140 = vst [vmem:[#allocation2 + $0xc0] sm:$0xf] %v1139_v63  ;;  %1141 = vst [vmem:[#allocation2 + $0xc4] sm:$0xf] %v977_v62  ;;  %v2606_v62 = vshll.u32 %v7140_v54, 16  ;;  %v3299_v63 = vshll.u32 %v7137_v49, 16 }
  0xea   : > { %4875 = vmatmul.mubr.bf16.gmra.mrb[72].mxu0 %v2554_v19  ;;  %v7126_v19 = vld [vmem:[#allocation2 + $0x80] ss:$0 sps:$4 sm:$0x11]   ;;  %v7153_v49 = vld [vmem:[#allocation2 + $0x50] ss:$0 sps:$4 sm:$0x11]  }
  0xeb   : > { %4882 = vmatprep.mubr.bf16.mxu0 %v2894_v2  ;;  %v7123_v2 = vld [vmem:[#allocation2 + $0x20] ss:$0 sps:$4 sm:$0x11]   ;;  %v2587_v40 = vshll.u32 %v7126_v19, 16  ;;  %v2604_v19 = vshrl.u32 %v7140_v54, 16  ;;  %v2608_v1 = vrot.slane %v2606_v62, 1 }
  0xec   : > { %v3280_v17 = vshll.u32 %v7123_v2, 16  ;;  %v7147_v2 = vld [vmem:[#allocation2 + $0x9c] sm:$0xff]   ;;  %v3301_v6 = vrot.slane %v3299_v63, 1 }
  0xed   : > { %v2589_v7 = vrot.slane %v2587_v40, 1  ;;  %v7144_v40 = vld [vmem:[#allocation2 + $0xa4] ss:$0 sps:$4 sm:$0x11]   ;;  %v2609_v5 = vor.u32 %v2608_v1, %v2604_v19  ;;  %v2616_v21 = vshrl.u32 %v7147_v2, 16  ;;  %v7142_v1 = vld [vmem:[#allocation2 + $0x30] sm:$0xff]  }
  0xee   : > { %v3282_v38 = vrot.slane %v3280_v17, 1  ;;  %v2908_v11 = vrot.slane %v7144_v40, 1  ;;  %v7146_v17 = vld [vmem:[#allocation2 + $0x44] ss:$0 sps:$4 sm:$0x11]   ;;  %v7160_v40 = vld [vmem:[#allocation2 + $0x54] sm:$0xff]  }
  0xef   : > { %v2590_v18 = vsel %vm1669_vm9, %v2585_v14, %v2589_v7  ;;  %v2614_v14 = vsel %vm1669_vm9, %v2609_v5, %v2613_v3  ;;  %v7158_v19 = vld [vmem:[#allocation2 + $0xb4] sm:$0xfe]   ;;  %v7159_v62 = vld [vmem:[#allocation2 + $0xbc] ss:$0 sps:$4 sm:$0x11]  }
  0xf0   : > { %v1288_v26 = vld [vmem:[#allocation2 + $0xc0] sm:$0x1]  ;;  %v3283_v57 = vsel %vm1669_vm9, %v3278_v45, %v3282_v38  ;;  %v2909_v16 = vsel %vm2070_vm10, %v2907_v8, %v2908_v11  ;;  %v7134_v38 = vld [vmem:[#allocation2 + $0x24] sm:$0xff]   ;;  %v2913_v3 = vrot.slane %v7158_v19, 1  ;;  %v2914_v9 = vrot.slane %v7159_v62, 1 }
  0xf1   : > { %v1289_v31 = vsel %vm7383_vm7, 0, %v1288_v26  ;;  %v7155_v45 = vld [vmem:[#allocation2 + $0xa8] sm:$0xff]  }
  0xf2   : > { %4883 = vmatmul.mubr.bf16.gmra.mrb[76].mxu0 %v2566_v29  ;;  %v2594_v29 = vshll.u32 %v7132_v24, 16  ;;  %1290 = vst [vmem:[#allocation2 + $0xc0] sm:$0x1] %v1289_v31  ;;  %v7145_v24 = vld [vmem:[#allocation2 + $0x3c] sm:$0xff]   ;;  %v7154_v31 = vld [vmem:[%s8370_s3 + $0x230] sm:$0xff]   ;;  %v2628_v54 = vshrl.u32 %v7155_v45, 16  ;;  %v2915_v11 = vsel %vm2070_vm10, %v2913_v3, %v2914_v9 }
  0xf3   : > { %4890 = vmatprep.mubr.bf16.mxu0 %v2897_v35  ;;  %v2599_v35 = vshll.u32 %v7133_v25, 16  ;;  %v2618_v25 = vshll.u32 %v7147_v2, 16  ;;  %v3311_v27 = vshll.u32 %v7145_v24, 16  ;;  %6843 = vmatprep.subr.bf16.mxu0 %v7154_v31  ;;  %v3309_v10 = vshrl.u32 %v7145_v24, 16  ;;  %v7175_v9 = vld [vmem:[#allocation2 + $0x18] sm:$0xfe]  }
  0xf4   : > { %v2596_v36 = vrot.slane %v2594_v29, 1  ;;  %6844 = vmatpush3.bf16.msra.mxu0 %v7154_v31  ;;  %v3328_v2 = vshll.u32 %v7153_v49, 16  ;;  %v7163_v24 = vld [vmem:[#allocation2 + $0xbc] ss:$0 sps:$4 sm:$0x11]   ;;  %v3333_v31 = vshrl.u32 %v7160_v40, 16 }
  0xf5   : > { %v2601_v39 = vrot.slane %v2599_v35, 1  ;;  %v2620_v29 = vrot.slane %v2618_v25, 1  ;;  %v7151_v35 = vld [vmem:[#allocation2 + $0xb0] ss:$0 sps:$4 sm:$0x11]   ;;  %v3313_v48 = vrot.slane %v3311_v27, 1 }
  0xf6   : > { %v2597_v42 = vor.u32 %v2596_v36, %v2592_v32  ;;  %v3302_v36 = vor.u32 %v3301_v6, %v3297_v13  ;;  %v2642_v13 = vshll.u32 %v7162_v59, 16  ;;  %v1142_v6 = vld [vmem:[#allocation2 + $0xc8] sm:$0x1]  ;;  %v7149_v27 = vld [vmem:[#allocation2 + $0x3c] sm:$0xff]  }
  0xf7   : > { %v2621_v37 = vor.u32 %v2620_v29, %v2616_v21  ;;  %v7953_v29 = vld [vmem:[#allocation2 + $0x60] sm:$0xff]  }
  0xf8   : > { %v2602_v46 = vsel %vm1669_vm9, %v2597_v42, %v2601_v39  ;;  %v3316_v39 = vshll.u32 %v7146_v17, 16  ;;  %v2911_v42 = vrot.slane %v7151_v35, 1  ;;  %v3335_v17 = vshll.u32 %v7160_v40, 16 }
  0xf9   : > { %v7113_v55 = vld [vmem:[#allocation2 + $0xc0] sm:$0xff]  }
  0xfa   : > { %4891 = vmatmul.mubr.bf16.gmra.mrb[80].mxu0 %v2578_v58  ;;  %v7138_v58 = vld [vmem:[#allocation2 + $0x38] ss:$0 sps:$4 sm:$0x11]   ;;  %4785 = vmatprep.mubr.bf16.mxu1 %v7113_v55  ;;  %v2630_v55 = vshll.u32 %v7155_v45, 16 }
  0xfb   : > { %4898 = vmatprep.mubr.bf16.mxu0 %v2900_v60  ;;  %v3289_v60 = vrot.slane %v3287_v41, 1  ;;  %4786 = vmatmul.mubr.bf16.gmra.mrb[76].mxu1 %v2118_v56  ;;  %v3304_v7 = vshll.u32 %v7138_v58, 16  ;;  %v2910_v41 = vrot.slane %v7150_v34, 1  ;;  %v3323_v56 = vshll.u32 %v7152_v43, 16 }
  0xfc   : > { %4987 = vmatprep.mubr.bf16.mxu1 %v3283_v57  ;;  %v2632_v58 = vrot.slane %v2630_v55, 1  ;;  %v7168_v34 = vld [vmem:[#allocation2 + $0x68] ss:$0 sps:$4 sm:$0x11]  }
  0xfd   : > { %v3290_v4 = vor.u32 %v3289_v60, %v3285_v50  ;;  %v3306_v26 = vrot.slane %v3304_v7, 1  ;;  %v7156_v50 = vld [vmem:[#allocation2 + $0xb0] ss:$0 sps:$4 sm:$0x11]   ;;  %v3314_v60 = vor.u32 %v3313_v48, %v3309_v10  ;;  %v3321_v7 = vshrl.u32 %v7152_v43, 16 }
  0xfe   : > { %v2635_v57 = vshll.u32 %v7156_v50, 16  ;;  %v2633_v63 = vor.u32 %v2632_v58, %v2628_v54  ;;  %v3325_v8 = vrot.slane %v3323_v56, 1  ;;  %v6375_v35 = vpop.f32.mrb[0].mxu0  ;;  %v3347_v43 = vshll.u32 %v7953_v29, 16 }
  0xff   : > { %v3307_v47 = vsel %vm1669_vm9, %v3302_v36, %v3306_v26  ;;  %v7169_v26 = vld [vmem:[%s8370_s3 + $0x238] sm:$0xff]   ;;  %v3352_v19 = vshll.u32 %v7168_v34, 16 }
 0x100   : > { %v3326_v21 = vor.u32 %v3325_v8, %v3321_v7  ;;  %6845 = vmatprep.subr.bf16.mxu0 %v7169_v26 }
 0x101   : > { %6846 = vmatpush3.bf16.msra.mxu0 %v7169_v26  ;;  %v3354_v7 = vrot.slane %v3352_v19, 1  ;;  %v3672_v26 = vrot.slane %v7175_v9, 1 }
 0x102   : > { %4899 = vmatmul.mubr.bf16.gmra.mrb[84].mxu0 %v2590_v18  ;;  %v7148_v18 = vld [vmem:[#allocation2 + $0xa4] ss:$0 sps:$4 sm:$0x11]  }
 0x103   : > { %4906 = vmatprep.mubr.bf16.mxu0 %v2903_v20  ;;  %v3295_v20 = vsel %vm1669_vm9, %v3290_v4, %v3294_v61  ;;  %v2623_v32 = vshll.u32 %v7148_v18, 16  ;;  %4988 = vmatmul.mubr.bf16.vlgmr.msra.gmra.mrb[80].mxu1 %v7127_v12  ;;  %v2637_v61 = vrot.slane %v2635_v57, 1  ;;  %v2640_v12 = vshrl.u32 %v7162_v59, 16  ;;  %v7173_v59 = vld [vmem:[#allocation2 + $0x6c] sm:$0xff]  }
 0x104   : > { %4995 = vmatprep.mubr.bf16.mxu1 %v3295_v20  ;;  %v2644_v18 = vrot.slane %v2642_v13, 1  ;;  %v1143_v20 = vsel %vm7383_vm7, %v978_v0, %v1142_v6  ;;  %v3359_v3 = vshll.u32 %v7173_v59, 16 }
 0x105   : > { %v2625_v33 = vrot.slane %v2623_v32, 1  ;;  %v2638_v4 = vsel %vm1669_vm9, %v2633_v63, %v2637_v61  ;;  %1144 = vst [vmem:[#allocation2 + $0xc8] sm:$0x1] %v1143_v20  ;;  %v3345_v61 = vshrl.u32 %v7953_v29, 16  ;;  %v7164_v20 = vld [vmem:[#allocation2 + $0x54] sm:$0xff]  }
 0x106   : > { %v2645_v32 = vor.u32 %v2644_v18, %v2640_v12  ;;  %v3357_v12 = vshrl.u32 %v7173_v59, 16 }
 0x107   : > { %v2626_v44 = vsel %vm1669_vm9, %v2621_v37, %v2625_v33  ;;  %v3337_v37 = vrot.slane %v3335_v17, 1 }
 0x109   : > { %v3338_v54 = vor.u32 %v3337_v37, %v3333_v31 }
 0x10a   : > { %4907 = vmatmul.mubr.bf16.gmra.mrb[88].mxu0 %v2602_v46  ;;  %v2912_v46 = vsel %vm2070_vm10, %v2910_v41, %v2911_v42  ;;  %v6376_v41 = vpop.f32.mrb[1].mxu0 }
 0x10b   : > { %4914 = vmatprep.mubr.bf16.mxu0 %v2906_v52  ;;  %v3318_v52 = vrot.slane %v3316_v39, 1  ;;  %4996 = vmatmul.mubr.bf16.gmra.mrb[84].mxu1 %v7134_v38  ;;  %v3340_v38 = vshll.u32 %v7161_v51, 16  ;;  %v7957_v39 = vld [vmem:[#allocation2 + $0xc0] sm:$0xfe]   ;;  %v7960_v45 = vadd.f32 %v6376_v41, %v6375_v35  ;;  %v6378_v10 = vpop.f32.mrb[2].mxu0  ;;  %v7180_v41 = vld [vmem:[#allocation2 + $0x78] sm:$0xff]  }
 0x10c   : > { %5003 = vmatprep.mubr.bf16.mxu1 %v3307_v47  ;;  %v1343_v47 = vld [vmem:[#allocation2 + $0xc8] sm:$0x1]  ;;  %v6379_v48 = vpop.f32.mrb[3].mxu0  ;;  %v3371_v59 = vshll.u32 %v7180_v41, 16  ;;  %v3369_v19 = vshrl.u32 %v7180_v41, 16 }
 0x10d   : > { %v3319_v5 = vsel %vm1669_vm9, %v3314_v60, %v3318_v52  ;;  %v7157_v52 = vld [vmem:[#allocation2 + $0x48] sm:$0xff]   ;;  %v3342_v55 = vrot.slane %v3340_v38, 1  ;;  %v1344_v56 = vsel %vm7428_vm8, 0, %v1343_v47  ;;  %v7966_v57 = vadd.f32 %v6379_v48, %v6378_v10  ;;  %v7181_v10 = vld [vmem:[#allocation2 + $0x80] ss:$0 sps:$4 sm:$0x11]  }
 0x10e   : > { %1345 = vst [vmem:[#allocation2 + $0xc8] sm:$0x1] %v1344_v56  ;;  %v2916_v60 = vrot.slane %v7957_v39, 1 }
 0x10f   : > { %v6381_v63 = vpop.f32.mrb[4].mxu0  ;;  %v3343_v40 = vsel %vm1669_vm9, %v3338_v54, %v3342_v55  ;;  %v7182_v54 = vld [vmem:[#allocation2 + $0x30] sm:$0xfe]   ;;  %v7183_v55 = vld [vmem:[#allocation2 + $0x38] ss:$0 sps:$4 sm:$0x11]  }
 0x110   : > { %v3679_v9 = vrot.slane %v7183_v55, 1 }
 0x111   : > { %v6447_v42 = vpop.f32.mrb[0].mxu1 }
 0x112   : > { %4915 = vmatmul.mubr.bf16.gmra.mrb[92].mxu0 %v2614_v14  ;;  %v2647_v14 = vshll.u32 %v7163_v24, 16 }
 0x113   : > { %4922 = vmatprep.mubr.bf16.mxu0 %v2909_v16  ;;  %5004 = vmatmul.mubr.bf16.gmra.mrb[88].mxu1 %v7142_v1  ;;  %v3330_v16 = vrot.slane %v3328_v2, 1  ;;  %v7174_v1 = vld [vmem:[#allocation2 + $0x74] ss:$0 sps:$4 sm:$0x11]   ;;  %v3349_v2 = vrot.slane %v3347_v43, 1 }
 0x114   : > { %5011 = vmatprep.mubr.bf16.mxu1 %v3319_v5  ;;  %v2649_v25 = vrot.slane %v2647_v14, 1  ;;  %v6382_v5 = vpop.f32.mrb[5].mxu0  ;;  %v3361_v14 = vrot.slane %v3359_v3, 1  ;;  %v3364_v6 = vshll.u32 %v7174_v1, 16  ;;  %v7185_v3 = vld [vmem:[#allocation2 + $0x3c] sm:$0xfe]  }
 0x115   : > { %v3331_v36 = vsel %vm1669_vm9, %v3326_v21, %v3330_v16  ;;  %v6384_v13 = vpop.f32.mrb[6].mxu0  ;;  %v7178_v16 = vld [vmem:[#allocation2 + $0x24] sm:$0xfe]  }
 0x116   : > { %v2650_v33 = vsel %vm1669_vm9, %v2645_v32, %v2649_v25  ;;  %v6385_v17 = vpop.f32.mrb[7].mxu0  ;;  %v7166_v21 = vld [vmem:[#allocation2 + $0xc8] ss:$0 sps:$4 sm:$0x11]   ;;  %v3350_v25 = vor.u32 %v3349_v2, %v3345_v61  ;;  %v3366_v38 = vrot.slane %v3364_v6, 1  ;;  %v3675_v48 = vrot.slane %v7178_v16, 1 }
 0x117   : > { %v7975_v32 = vadd.f32 %v6385_v17, %v6384_v13  ;;  %v7171_v31 = vld [vmem:[#allocation2 + $0xc8] ss:$0 sps:$4 sm:$0x11]   ;;  %v2917_v34 = vrot.slane %v7166_v21, 1  ;;  %v7172_v61 = vld [vmem:[#allocation2 + $0x60] sm:$0xff]  }
 0x118   : > { %v2659_v37 = vshll.u32 %v7171_v31, 16  ;;  %v3355_v43 = vsel %vm1669_vm9, %v3350_v25, %v3354_v7  ;;  %v3373_v7 = vrot.slane %v3371_v59, 1  ;;  %v7187_v16 = vld [vmem:[#allocation2 + $0x84] sm:$0xff]  }
 0x119   : > { %v3381_v31 = vshrl.u32 %v7187_v16, 16 }
 0x11a   : > { %4923 = vmatmul.mubr.bf16.gmra.mrb[96].mxu0 %v2626_v44  ;;  %v7170_v44 = vld [vmem:[#allocation2 + $0xc0] sm:$0xff]   ;;  %v2661_v47 = vrot.slane %v2659_v37, 1  ;;  %v3383_v37 = vshll.u32 %v7187_v16, 16 }
 0x11b   : > { %4930 = vmatprep.mubr.bf16.mxu0 %v2912_v46  ;;  %5012 = vmatmul.mubr.bf16.gmra.mrb[92].mxu1 %v7149_v27  ;;  %v6448_v46 = vpop.f32.mrb[1].mxu1  ;;  %v2654_v0 = vshll.u32 %v7170_v44, 16  ;;  %v2652_v8 = vshrl.u32 %v7170_v44, 16  ;;  %v7179_v27 = vld [vmem:[#allocation2 + $0x2c] ss:$0 sps:$4 sm:$0x11]  }
 0x11c   : > { %5019 = vmatprep.mubr.bf16.mxu1 %v3331_v36  ;;  %v7962_v49 = vadd.f32 %v6448_v46, %v6447_v42  ;;  %v6450_v50 = vpop.f32.mrb[2].mxu1  ;;  %v2918_v42 = vsel %vm2070_vm10, %v2916_v60, %v2917_v34  ;;  %v7190_v34 = vld [vmem:[#allocation2 + $0x50] ss:$0 sps:$4 sm:$0x11]  }
 0x11d   : > { %v6451_v58 = vpop.f32.mrb[3].mxu1  ;;  %v2656_v24 = vrot.slane %v2654_v0, 1  ;;  %v3678_v0 = vrot.slane %v7182_v54, 1 }
 0x11e   : > { %v7970_v62 = vadd.f32 %v6451_v58, %v6450_v50  ;;  %v6387_v46 = vpop.f32.mrb[8].mxu0  ;;  %v3362_v58 = vor.u32 %v3361_v14, %v3357_v12 }
 0x11f   : > { %v2657_v36 = vor.u32 %v2656_v24, %v2652_v8  ;;  %v6388_v60 = vpop.f32.mrb[9].mxu0  ;;  %v3680_v21 = vsel %vm2070_vm10, %v3678_v0, %v3679_v9  ;;  %v7195_v9 = vld [vmem:[#allocation2 + $0x98] ss:$0 sps:$4 sm:$0x11]  }
 0x120   : > { %v7985_v1 = vadd.f32 %v6388_v60, %v6387_v46  ;;  %v6390_v2 = vpop.f32.mrb[10].mxu0  ;;  %v3367_v12 = vsel %vm1669_vm9, %v3362_v58, %v3366_v38  ;;  %v7192_v46 = vld [vmem:[#allocation2 + $0x54] sm:$0xfe]  }
 0x121   : > { %v6453_v51 = vpop.f32.mrb[4].mxu1  ;;  %v2662_v56 = vsel %vm1669_vm9, %v2657_v36, %v2661_v47  ;;  %v3374_v36 = vor.u32 %v3373_v7, %v3369_v19  ;;  %v7193_v47 = vld [vmem:[#allocation2 + $0x5c] ss:$0 sps:$4 sm:$0x11]  }
 0x122   : > { %4931 = vmatmul.mubr.bf16.gmra.mrb[100].mxu0 %v2638_v4  ;;  %v7176_v4 = vld [vmem:[#allocation2 + $0x20] ss:$0 sps:$4 sm:$0x11]   ;;  %v6454_v18 = vpop.f32.mrb[5].mxu1  ;;  %v7184_v7 = vld [vmem:[#allocation2 + $0x78] sm:$0xff]  }
 0x123   : > { %4938 = vmatprep.mubr.bf16.mxu0 %v2915_v11  ;;  %v7973_v11 = vadd.f32 %v6382_v5, %v6381_v63  ;;  %5020 = vmatmul.mubr.bf16.gmra.mrb[96].mxu1 %v7157_v52  ;;  %v7977_v29 = vadd.f32 %v6454_v18, %v6453_v51  ;;  %v6456_v35 = vpop.f32.mrb[6].mxu1  ;;  %v3676_v52 = vrot.slane %v7179_v27, 1  ;;  %v3376_v63 = vshll.u32 %v7181_v10, 16 }
 0x124   : > { %5027 = vmatprep.mubr.bf16.mxu1 %v3343_v40  ;;  %v6457_v39 = vpop.f32.mrb[7].mxu1  ;;  %v7186_v40 = vld [vmem:[#allocation2 + $0x44] ss:$0 sps:$4 sm:$0x11]   ;;  %v3681_v51 = vrot.slane %v7185_v3, 1 }
 0x125   : > { %v7981_v44 = vadd.f32 %v6457_v39, %v6456_v35  ;;  %v3378_v13 = vrot.slane %v3376_v63, 1  ;;  %v3677_v17 = vsel %vm2070_vm10, %v3675_v48, %v3676_v52  ;;  %v3682_v25 = vrot.slane %v7186_v40, 1  ;;  %v7177_v35 = vld [vmem:[#allocation2 + $0x6c] sm:$0xff]  }
 0x126   : > { %v7194_v52 = vld [vmem:[#allocation2 + $0x90] sm:$0xff]   ;;  %v3688_v40 = vrot.slane %v7193_v47, 1 }
 0x127   : > { %v3379_v54 = vsel %vm1669_vm9, %v3374_v36, %v3378_v13  ;;  %v3683_v55 = vsel %vm2070_vm10, %v3681_v51, %v3682_v25  ;;  %v3395_v0 = vshll.u32 %v7194_v52, 16  ;;  %v7196_v13 = vld [vmem:[#allocation2 + $0x60] sm:$0xfe]   ;;  %v7197_v51 = vld [vmem:[#allocation2 + $0x68] ss:$0 sps:$4 sm:$0x11]  }
 0x12a   : > { %4939 = vmatmul.mubr.bf16.gmra.mrb[104].mxu0 %v2650_v33  ;;  %v3673_v33 = vrot.slane %v7176_v4, 1  ;;  %v6391_v4 = vpop.f32.mrb[11].mxu0 }
 0x12b   : > { %4946 = vmatprep.mubr.bf16.mxu0 %v2918_v42  ;;  %5028 = vmatmul.mubr.bf16.gmra.mrb[100].mxu1 %v7164_v20  ;;  %v7987_v8 = vadd.f32 %v6391_v4, %v6390_v2  ;;  %v7188_v20 = vld [vmem:[#allocation2 + $0x8c] ss:$0 sps:$4 sm:$0x11]   ;;  %v3685_v42 = vrot.slane %v7190_v34, 1 }
 0x12c   : > { %v3674_v50 = vsel %vm2070_vm10, %v3672_v26, %v3673_v33  ;;  %5035 = vmatprep.mubr.bf16.mxu1 %v3355_v43  ;;  %v7189_v33 = vld [vmem:[#allocation2 + $0x48] sm:$0xfe]   ;;  %v3388_v39 = vshll.u32 %v7188_v20, 16  ;;  %v3691_v20 = vrot.slane %v7197_v51, 1 }
 0x12d   : > { %v3684_v41 = vrot.slane %v7189_v33, 1  ;;  %v7200_v34 = vld [vmem:[#allocation2 + $0x74] ss:$0 sps:$4 sm:$0x11]   ;;  %v7206_v51 = vld [vmem:[#allocation2 + $0x84] sm:$0xfe]  }
 0x12e   : > { %v6393_v27 = vpop.f32.mrb[12].mxu0  ;;  %v3390_v60 = vrot.slane %v3388_v39, 1 }
 0x12f   : > { %v6394_v38 = vpop.f32.mrb[13].mxu0  ;;  %v3686_v2 = vsel %vm2070_vm10, %v3684_v41, %v3685_v42 }
 0x130   : > { %v7996_v43 = vadd.f32 %v6394_v38, %v6393_v27  ;;  %v6396_v10 = vpop.f32.mrb[14].mxu0  ;;  %v7199_v27 = vld [vmem:[#allocation2 + $0x6c] sm:$0xfe]  }
 0x131   : > { %v6459_v5 = vpop.f32.mrb[8].mxu1  ;;  %v6397_v48 = vpop.f32.mrb[15].mxu0 }
 0x132   : > { %4947 = vmatmul.mubr.bf16.gmra.mrb[108].mxu0 %v2662_v56  ;;  %v6460_v24 = vpop.f32.mrb[9].mxu1  ;;  %v3385_v56 = vrot.slane %v3383_v37, 1  ;;  %v8000_v58 = vadd.f32 %v6397_v48, %v6396_v10  ;;  %v7201_v37 = vld [vmem:[#allocation2 + $0x9c] sm:$0xff]   ;;  %v3693_v10 = vrot.slane %v7199_v27, 1 }
 0x133   : > { %6847 = vmatprep.mubr.bf16.mxu0 %v3674_v50  ;;  %v7990_v14 = vadd.f32 %v6460_v24, %v6459_v5  ;;  %v6462_v6 = vpop.f32.mrb[10].mxu1  ;;  %5036 = vmatmul.mubr.bf16.gmra.mrb[104].mxu1 %v7172_v61  ;;  %v3687_v61 = vrot.slane %v7192_v46, 1  ;;  %v3407_v48 = vshll.u32 %v7201_v37, 16 }
 0x134   : > { %v6463_v18 = vpop.f32.mrb[11].mxu1  ;;  %5043 = vmatprep.mubr.bf16.mxu1 %v3367_v12  ;;  %v3386_v24 = vor.u32 %v3385_v56, %v3381_v31  ;;  %v3393_v12 = vshrl.u32 %v7194_v52, 16  ;;  %v7202_v52 = vld [vmem:[#allocation2 + $0xa4] ss:$0 sps:$4 sm:$0x11]   ;;  %v3694_v56 = vrot.slane %v7200_v34, 1 }
 0x135   : > { %v7994_v26 = vadd.f32 %v6463_v18, %v6462_v6  ;;  %v3400_v6 = vshll.u32 %v7195_v9, 16  ;;  %v3690_v18 = vrot.slane %v7196_v13, 1  ;;  %v3689_v31 = vsel %vm2070_vm10, %v3687_v61, %v3688_v40 }
 0x136   : > { %v3391_v33 = vsel %vm1669_vm9, %v3386_v24, %v3390_v60  ;;  %v3412_v9 = vshll.u32 %v7202_v52, 16  ;;  %v3699_v34 = vrot.slane %v7206_v51, 1 }
 0x137   : > { %v3402_v38 = vrot.slane %v3400_v6, 1  ;;  %v3692_v42 = vsel %vm2070_vm10, %v3690_v18, %v3691_v20  ;;  %v3695_v6 = vsel %vm2070_vm10, %v3693_v10, %v3694_v56  ;;  %v7208_v20 = vld [vmem:[#allocation2 + $0xa8] sm:$0xff]   ;;  %v7209_v10 = vld [vmem:[#allocation2 + $0xb0] ss:$0 sps:$4 sm:$0x11]  }
 0x13a   : > { %6848 = vmatmul.mubr.bf16.vlgmr.msra.gmra.mrb[112].mxu0 %v3677_v17  ;;  %v3397_v17 = vrot.slane %v3395_v0, 1  ;;  %v7203_v0 = vld [vmem:[#allocation2 + $0x78] sm:$0xfe]  }
 0x13b   : > { %6851 = vmatprep.mubr.bf16.mxu0 %v3680_v21  ;;  %5044 = vmatmul.mubr.bf16.gmra.mrb[108].mxu1 %v7177_v35  ;;  %v6399_v5 = vpop.f32.mrb[16].mxu0 }
 0x13c   : > { %5051 = vmatprep.mubr.bf16.mxu1 %v3379_v54  ;;  %v6400_v16 = vpop.f32.mrb[17].mxu0  ;;  %v7191_v54 = vld [vmem:[#allocation2 + $0x84] sm:$0xff]  }
 0x13d   : > { %v8007_v21 = vadd.f32 %v6400_v16, %v6399_v5  ;;  %v6402_v25 = vpop.f32.mrb[18].mxu0  ;;  %v3409_v5 = vrot.slane %v3407_v48, 1  ;;  %v7207_v16 = vld [vmem:[#allocation2 + $0x8c] ss:$0 sps:$4 sm:$0x11]   ;;  %v3417_v48 = vshrl.u32 %v7208_v20, 16 }
 0x13e   : > { %v6403_v35 = vpop.f32.mrb[19].mxu0 }
 0x13f   : > { %v8011_v39 = vadd.f32 %v6403_v35, %v6402_v25  ;;  %v3700_v35 = vrot.slane %v7207_v16, 1 }
 0x141   : > { %v6465_v50 = vpop.f32.mrb[12].mxu1 }
 0x142   : > { %v6466_v59 = vpop.f32.mrb[13].mxu1  ;;  %6852 = vmatmul.mubr.bf16.gmra.mrb[116].mxu0 %v3683_v55  ;;  %v3398_v55 = vor.u32 %v3397_v17, %v3393_v12 }
 0x143   : > { %v8002_v19 = vadd.f32 %v6466_v59, %v6465_v50  ;;  %v6468_v63 = vpop.f32.mrb[14].mxu1  ;;  %6855 = vmatprep.mubr.bf16.mxu0 %v3686_v2  ;;  %5052 = vmatmul.mubr.bf16.gmra.mrb[112].mxu1 %v7184_v7  ;;  %v7204_v2 = vld [vmem:[#allocation2 + $0x80] ss:$0 sps:$4 sm:$0x11]   ;;  %v3696_v7 = vrot.slane %v7203_v0, 1 }
 0x144   : > { %v6469_v3 = vpop.f32.mrb[15].mxu1  ;;  %5059 = vmatprep.mubr.bf16.mxu1 %v3391_v33  ;;  %v3697_v24 = vrot.slane %v7204_v2, 1 }
 0x145   : > { %v8005_v4 = vadd.f32 %v6469_v3, %v6468_v63  ;;  %v3405_v63 = vshrl.u32 %v7201_v37, 16 }
 0x146   : > { %v3698_v25 = vsel %vm2070_vm10, %v3696_v7, %v3697_v24  ;;  %v7214_v24 = vld [vmem:[#allocation2 + $0xa4] ss:$0 sps:$4 sm:$0x11]  }
 0x149   : > { %v6487_v36 = vpop.f32.mrb[16].mxu1 }
 0x14a   : > { %v6488_v41 = vpop.f32.mrb[17].mxu1  ;;  %6856 = vmatmul.mubr.bf16.gmra.mrb[120].mxu0 %v3689_v31  ;;  %v6405_v61 = vpop.f32.mrb[20].mxu0  ;;  %v3419_v31 = vshll.u32 %v7208_v20, 16 }
 0x14b   : > { %v6489_v46 = vadd.f32 %v6488_v41, %v6487_v36  ;;  %v6490_v47 = vpop.f32.mrb[18].mxu1  ;;  %6859 = vmatprep.mubr.bf16.mxu0 %v3692_v42  ;;  %v6406_v40 = vpop.f32.mrb[21].mxu0  ;;  %5060 = vmatmul.mubr.bf16.gmra.mrb[116].mxu1 %v7191_v54  ;;  %v3410_v41 = vor.u32 %v3409_v5, %v3405_v63  ;;  %v7210_v54 = vld [vmem:[#allocation2 + $0x90] sm:$0xfe]   ;;  %v7213_v5 = vld [vmem:[#allocation2 + $0x9c] sm:$0xfe]  }
 0x14c   : > { %v6491_v50 = vpop.f32.mrb[19].mxu1  ;;  %v8020_v13 = vadd.f32 %v6406_v40, %v6405_v61  ;;  %v6408_v12 = vpop.f32.mrb[22].mxu0  ;;  %v3421_v52 = vrot.slane %v3419_v31, 1  ;;  %v3702_v63 = vrot.slane %v7210_v54, 1  ;;  %v3705_v20 = vrot.slane %v7213_v5, 1 }
 0x14d   : > { %v8015_v59 = vadd.f32 %v6489_v46, %v7960_v45  ;;  %v6492_v60 = vadd.f32 %v6491_v50, %v6490_v47  ;;  %v3403_v45 = vsel %vm1669_vm9, %v3398_v55, %v3402_v38  ;;  %v6409_v17 = vpop.f32.mrb[23].mxu0  ;;  %v7198_v38 = vld [vmem:[#allocation2 + $0x90] sm:$0xff]   ;;  %v7211_v55 = vld [vmem:[#allocation2 + $0x98] ss:$0 sps:$4 sm:$0x11]  }
 0x14e   : > { %v8025_v27 = vadd.f32 %v6409_v17, %v6408_v12  ;;  %5067 = vmatprep.mubr.bf16.mxu1 %v3403_v45  ;;  %v3703_v2 = vrot.slane %v7211_v55, 1  ;;  %v3422_v51 = vor.u32 %v3421_v52, %v3417_v48 }
 0x14f   : > { %v8018_v3 = vadd.f32 %v6492_v60, %v7966_v57  ;;  %v3414_v57 = vrot.slane %v3412_v9, 1  ;;  %v3424_v60 = vshll.u32 %v7209_v10, 16  ;;  %v7217_v10 = vld [vmem:[#allocation2 + $0xa8] sm:$0xfe]  }
 0x150   : > { %v3704_v7 = vsel %vm2070_vm10, %v3702_v63, %v3703_v2  ;;  %v7220_v63 = vld [vmem:[#allocation2 + $0xb4] sm:$0xfe]  }
 0x151   : > { %v6493_v18 = vpop.f32.mrb[20].mxu1  ;;  %v3415_v0 = vsel %vm1669_vm9, %v3410_v41, %v3414_v57  ;;  %v3706_v57 = vrot.slane %v7214_v24, 1 }
 0x152   : > { %v6494_v33 = vpop.f32.mrb[21].mxu1  ;;  %6860 = vmatmul.mubr.bf16.gmra.mrb[124].mxu0 %v3695_v6  ;;  %v3426_v6 = vrot.slane %v3424_v60, 1  ;;  %v3708_v60 = vrot.slane %v7217_v10, 1 }
 0x153   : > { %v6495_v36 = vadd.f32 %v6494_v33, %v6493_v18  ;;  %v6496_v37 = vpop.f32.mrb[22].mxu1  ;;  %6863 = vmatprep.mubr.bf16.mxu0 %v3698_v25  ;;  %5068 = vmatmul.mubr.bf16.gmra.mrb[120].mxu1 %v7198_v38  ;;  %v7205_v18 = vld [vmem:[#allocation2 + $0x9c] sm:$0xff]   ;;  %v3707_v55 = vsel %vm2070_vm10, %v3705_v20, %v3706_v57  ;;  %v7212_v20 = vld [vmem:[#allocation2 + $0xa8] sm:$0xff]  }
 0x154   : > { %v6497_v42 = vpop.f32.mrb[23].mxu1  ;;  %5075 = vmatprep.mubr.bf16.mxu1 %v3415_v0  ;;  %v3427_v48 = vsel %vm1669_vm9, %v3422_v51, %v3426_v6 }
 0x155   : > { %v8028_v46 = vadd.f32 %v6495_v36, %v7973_v11  ;;  %v6498_v47 = vadd.f32 %v6497_v42, %v6496_v37  ;;  %v3701_v11 = vsel %vm2070_vm10, %v3699_v34, %v3700_v35  ;;  %v7216_v36 = vld [vmem:[#allocation2 + $0xbc] ss:$0 sps:$4 sm:$0x11]  }
 0x156   : > { %v3436_v52 = vshll.u32 %v7216_v36, 16 }
 0x157   : > { %v6411_v50 = vpop.f32.mrb[24].mxu0  ;;  %v8031_v56 = vadd.f32 %v6498_v47, %v7975_v32  ;;  %v7215_v32 = vld [vmem:[#allocation2 + $0xb4] sm:$0xff]   ;;  %v7218_v47 = vld [vmem:[#allocation2 + $0xb0] ss:$0 sps:$4 sm:$0x11]  }
 0x158   : > { %v6412_v61 = vpop.f32.mrb[25].mxu0  ;;  %v3431_v34 = vshll.u32 %v7215_v32, 16  ;;  %v3429_v38 = vshrl.u32 %v7215_v32, 16  ;;  %v3438_v24 = vrot.slane %v3436_v52, 1  ;;  %v3711_v32 = vrot.slane %v7220_v63, 1 }
 0x159   : > { %v8034_v9 = vadd.f32 %v6412_v61, %v6411_v50  ;;  %v6414_v40 = vpop.f32.mrb[26].mxu0  ;;  %v6499_v45 = vpop.f32.mrb[24].mxu1  ;;  %v3709_v61 = vrot.slane %v7218_v47, 1  ;;  %v7226_v63 = vld [vmem:[#allocation2 + $0xc8] ss:$0 sps:$4 sm:$0x11]  }
 0x15a   : > { %v6415_v12 = vpop.f32.mrb[27].mxu0  ;;  %v6500_v17 = vpop.f32.mrb[25].mxu1  ;;  %6864 = vmatmul.mubr.bf16.gmra.mrb[128].mxu0 %v3701_v11  ;;  %v3433_v42 = vrot.slane %v3431_v34, 1 }
 0x15b   : > { %v8038_v16 = vadd.f32 %v6415_v12, %v6414_v40  ;;  %v6501_v25 = vadd.f32 %v6500_v17, %v6499_v45  ;;  %v6502_v33 = vpop.f32.mrb[26].mxu1  ;;  %6867 = vmatprep.mubr.bf16.mxu0 %v3704_v7  ;;  %5076 = vmatmul.mubr.bf16.gmra.mrb[124].mxu1 %v7205_v18  ;;  %v3710_v2 = vsel %vm2070_vm10, %v3708_v60, %v3709_v61  ;;  %v7221_v40 = vld [vmem:[#allocation2 + $0xbc] ss:$0 sps:$4 sm:$0x11]   ;;  %v7222_v7 = vld [vmem:[#allocation2 + $0xc0] sm:$0xff]  }
 0x15c   : > { %v6503_v35 = vpop.f32.mrb[27].mxu1  ;;  %5083 = vmatprep.mubr.bf16.mxu1 %v3427_v48  ;;  %v3712_v51 = vrot.slane %v7221_v40, 1  ;;  %v3443_v18 = vshll.u32 %v7222_v7, 16  ;;  %v3441_v36 = vshrl.u32 %v7222_v7, 16  ;;  %v1233_v40 = vld [vmem:[#allocation2 + $0xcc] sm:$0xf] }
 0x15d   : > { %v8041_v37 = vadd.f32 %v6501_v25, %v7985_v1  ;;  %v6504_v31 = vadd.f32 %v6503_v35, %v6502_v33  ;;  %v7223_v25 = vld [vmem:[#allocation2 + $0xc8] ss:$0 sps:$4 sm:$0x11]  }
 0x15e   : > { %v3713_v52 = vsel %vm2070_vm10, %v3711_v32, %v3712_v51  ;;  %v1234_v32 = vsel %vm7376_vm6, %v7356_v22, %v1233_v40 }
 0x15f   : > { %v6417_v41 = vpop.f32.mrb[28].mxu0  ;;  %v8045_v50 = vadd.f32 %v6504_v31, %v7987_v8  ;;  %v3434_v8 = vor.u32 %v3433_v42, %v3429_v38  ;;  %v3448_v42 = vshll.u32 %v7223_v25, 16  ;;  %1235 = vst [vmem:[#allocation2 + $0xcc] sm:$0xf] %v1234_v32 }
 0x160   : > { %v6418_v54 = vpop.f32.mrb[29].mxu0 }
 0x161   : > { %v8048_v0 = vadd.f32 %v6418_v54, %v6417_v41  ;;  %v6420_v1 = vpop.f32.mrb[30].mxu0  ;;  %v6505_v5 = vpop.f32.mrb[28].mxu1  ;;  %v3439_v38 = vsel %vm1669_vm9, %v3434_v8, %v3438_v24  ;;  %v3445_v41 = vrot.slane %v3443_v18, 1  ;;  %v3715_v8 = vrot.slane %v7226_v63, 1  ;;  %v7219_v18 = vld [vmem:[#allocation2 + $0xb4] sm:$0xff]  }
 0x162   : > { %v6421_v11 = vpop.f32.mrb[31].mxu0  ;;  %6868 = vmatmul.mubr.bf16.gmra.mrb[132].mxu0 %v3707_v55  ;;  %v6506_v45 = vpop.f32.mrb[29].mxu1 }
 0x163   : > { %v8051_v12 = vadd.f32 %v6421_v11, %v6420_v1  ;;  %6871 = vmatprep.mubr.bf16.mxu0 %v3710_v2  ;;  %v6507_v6 = vadd.f32 %v6506_v45, %v6505_v5  ;;  %v6508_v17 = vpop.f32.mrb[30].mxu1  ;;  %5084 = vmatmul.mubr.bf16.gmra.mrb[128].mxu1 %v7212_v20  ;;  %v7225_v1 = vld [vmem:[#allocation2 + $0xc0] sm:$0xfe]   ;;  %v1237_v11 = vld [vmem:[#allocation2 + $0xd4] sm:$0x1]  ;;  %v3446_v5 = vor.u32 %v3445_v41, %v3441_v36 }
 0x164   : > { %v6509_v57 = vpop.f32.mrb[31].mxu1  ;;  %5091 = vmatprep.mubr.bf16.mxu1 %v3439_v38  ;;  %v3714_v7 = vrot.slane %v7225_v1, 1  ;;  %v1238_v51 = vsel %vm7383_vm7, %v1183_v23, %v1237_v11 }
 0x165   : > { %v8054_v34 = vadd.f32 %v6507_v6, %v7996_v43  ;;  %v6510_v35 = vadd.f32 %v6509_v57, %v6508_v17  ;;  %v3450_v43 = vrot.slane %v3448_v42, 1  ;;  %1239 = vst [vmem:[#allocation2 + $0xd4] sm:$0x1] %v1238_v51 }
 0x166   : > { %v3716_v20 = vsel %vm2070_vm10, %v3714_v7, %v3715_v8  ;;  %v1291_v7 = vld [vmem:[#allocation2 + $0xcc] sm:$0x1] }
 0x167   : > { %v6423_v33 = vpop.f32.mrb[32].mxu0  ;;  %v8061_v54 = vadd.f32 %v6510_v35, %v8000_v58  ;;  %v3451_v15 = vsel %vm1669_vm9, %v3446_v5, %v3450_v43  ;;  %v7224_v5 = vld [vmem:[#allocation2 + $0xc0] sm:$0xff]  }
 0x168   : > { %v6424_v31 = vpop.f32.mrb[33].mxu0 }
 0x169   : > { %v8057_v10 = vadd.f32 %v6424_v31, %v6423_v33  ;;  %v6426_v47 = vpop.f32.mrb[34].mxu0  ;;  %v6511_v48 = vpop.f32.mrb[32].mxu1 }
 0x16a   : > { %v6427_v55 = vpop.f32.mrb[35].mxu0  ;;  %v6512_v60 = vpop.f32.mrb[33].mxu1  ;;  %6872 = vmatmul.mubr.bf16.gmra.mrb[136].mxu0 %v3713_v52 }
 0x16b   : > { %v8063_v61 = vadd.f32 %v6427_v55, %v6426_v47  ;;  %v6513_v2 = vadd.f32 %v6512_v60, %v6511_v48  ;;  %v6514_v58 = vpop.f32.mrb[34].mxu1  ;;  %6875 = vmatprep.mubr.bf16.mxu0 %v3716_v20  ;;  %5092 = vmatmul.mubr.bf16.gmra.mrb[132].mxu1 %v7219_v18 }
 0x16c   : > { %v6515_v6 = vpop.f32.mrb[35].mxu1  ;;  %5099 = vmatprep.mubr.bf16.mxu1 %v3451_v15  ;;  %v1346_v11 = vld [vmem:[#allocation2 + $0xd4] sm:$0x1] }
 0x16d   : > { %v8066_v24 = vadd.f32 %v6513_v2, %v8007_v21  ;;  %v6516_v21 = vadd.f32 %v6515_v6, %v6514_v58  ;;  %v7227_v6 = vld [vmem:[#allocation2 + $0xcc] sm:$0xfe]  }
 0x16f   : > { %v8080_v35 = vadd.f32 %v6516_v21, %v8011_v39 }
 0x171   : > { %v6517_v33 = vpop.f32.mrb[36].mxu1 }
 0x172   : > { %v6429_v45 = vpop.f32.mrb[36].mxu0  ;;  %v6518_v22 = vpop.f32.mrb[37].mxu1 }
 0x173   : > { %v6430_v17 = vpop.f32.mrb[37].mxu0  ;;  %v6519_v36 = vadd.f32 %v6518_v22, %v6517_v33  ;;  %v6520_v31 = vpop.f32.mrb[38].mxu1  ;;  %5100 = vmatmul.mubr.bf16.gmra.mrb[136].mxu1 %v7224_v5  ;;  %v3717_v22 = vrot.slane %v7227_v6, 1 }
 0x174   : > { %v8076_v57 = vadd.f32 %v6430_v17, %v6429_v45  ;;  %v6432_v25 = vpop.f32.mrb[38].mxu0  ;;  %v6521_v41 = vpop.f32.mrb[39].mxu1  ;;  %v1292_v45 = vsel %vm7383_vm7, 0, %v1291_v7 }
 0x175   : > { %v6433_v28 = vpop.f32.mrb[39].mxu0  ;;  %v8085_v47 = vadd.f32 %v6519_v36, %v8020_v13  ;;  %v6522_v48 = vadd.f32 %v6521_v41, %v6520_v31  ;;  %v1347_v13 = vsel %vm7428_vm8, 0, %v1346_v11  ;;  %1293 = vst [vmem:[#allocation2 + $0xcc] sm:$0x1] %v1292_v45 }
 0x176   : > { %v8082_v23 = vadd.f32 %v6433_v28, %v6432_v25  ;;  %1348 = vst [vmem:[#allocation2 + $0xd4] sm:$0x1] %v1347_v13 }
 0x177   : > { %v8090_v1 = vadd.f32 %v6522_v48, %v8025_v27 }
 0x179   : > { %v6523_v60 = vpop.f32.mrb[40].mxu1 }
 0x17a   : > { %v6524_v39 = vpop.f32.mrb[41].mxu1 }
 0x17b   : > { %v6525_v2 = vadd.f32 %v6524_v39, %v6523_v60  ;;  %v6526_v40 = vpop.f32.mrb[42].mxu1 }
 0x17c   : > { %v6435_v38 = vpop.f32.mrb[40].mxu0  ;;  %v6527_v58 = vpop.f32.mrb[43].mxu1 }
 0x17d   : > { %v6436_v42 = vpop.f32.mrb[41].mxu0  ;;  %v8097_v8 = vadd.f32 %v6525_v2, %v8034_v9  ;;  %v6528_v27 = vadd.f32 %v6527_v58, %v6526_v40  ;;  %v7228_v31 = vld [vmem:[#allocation2 + $0xd4] ss:$0 sps:$4 sm:$0x11]  }
 0x17e   : > { %v8087_v52 = vadd.f32 %v6436_v42, %v6435_v38  ;;  %v6438_v55 = vpop.f32.mrb[42].mxu0  ;;  %v7229_v42 = vld [vmem:[#allocation2 + $0xcc] sm:$0xff]   ;;  %v3718_v60 = vrot.slane %v7228_v31, 1 }
 0x17f   : > { %v6439_v43 = vpop.f32.mrb[43].mxu0  ;;  %v8102_v17 = vadd.f32 %v6528_v27, %v8038_v16  ;;  %v3455_v39 = vshll.u32 %v7229_v42, 16 }
 0x180   : > { %v8092_v63 = vadd.f32 %v6439_v43, %v6438_v55  ;;  %v3453_v43 = vshrl.u32 %v7229_v42, 16  ;;  %v3719_v11 = vsel %vm2070_vm10, %v3717_v22, %v3718_v60 }
 0x181   : > { %v6529_v32 = vpop.f32.mrb[44].mxu1  ;;  %6876 = vmatmul.mubr.bf16.gmra.mrb[140].mxu0 %v3719_v11  ;;  %v3457_v7 = vrot.slane %v3455_v39, 1 }
 0x182   : > { %v6530_v51 = vpop.f32.mrb[45].mxu1 }
 0x183   : > { %v6531_v18 = vadd.f32 %v6530_v51, %v6529_v32  ;;  %v6532_v53 = vpop.f32.mrb[46].mxu1  ;;  %v3458_v6 = vor.u32 %v3457_v7, %v3453_v43 }
 0x184   : > { %v6533_v21 = vpop.f32.mrb[47].mxu1 }
 0x185   : > { %v6441_v20 = vpop.f32.mrb[44].mxu0  ;;  %v8105_v25 = vadd.f32 %v6531_v18, %v8048_v0  ;;  %v6534_v33 = vadd.f32 %v6533_v21, %v6532_v53  ;;  %v7230_v0 = vld [vmem:[#allocation2 + $0xd4] ss:$0 sps:$4 sm:$0x11]   ;;  %v7231_v18 = vld [vmem:[#allocation2 + $0xcc] sm:$0xff]  }
 0x186   : > { %v6442_v9 = vpop.f32.mrb[45].mxu0 }
 0x187   : > { %v8107_v30 = vadd.f32 %v6442_v9, %v6441_v20  ;;  %v6444_v28 = vpop.f32.mrb[46].mxu0  ;;  %v8110_v36 = vadd.f32 %v6534_v33, %v8051_v12  ;;  %v3460_v12 = vshll.u32 %v7230_v0, 16 }
 0x188   : > { %v6445_v15 = vpop.f32.mrb[47].mxu0 }
 0x189   : > { %v6535_v16 = vpop.f32.mrb[48].mxu1  ;;  %v8112_v38 = vadd.f32 %v6445_v15, %v6444_v28  ;;  %v3462_v45 = vrot.slane %v3460_v12, 1 }
 0x18a   : > { %v6536_v41 = vpop.f32.mrb[49].mxu1 }
 0x18b   : > { %v6537_v48 = vadd.f32 %v6536_v41, %v6535_v16  ;;  %v6538_v55 = vpop.f32.mrb[50].mxu1  ;;  %v3463_v33 = vsel %vm1669_vm9, %v3458_v6, %v3462_v45 }
 0x18c   : > { %v6539_v40 = vpop.f32.mrb[51].mxu1  ;;  %5107 = vmatprep.mubr.bf16.mxu1 %v3463_v33 }
 0x18d   : > { %v8115_v2 = vadd.f32 %v6537_v48, %v8057_v10  ;;  %v6599_v5 = vpop.f32.mrb[48].mxu0  ;;  %v6540_v13 = vadd.f32 %v6539_v40, %v6538_v55  ;;  %5108 = vmatmul.mubr.bf16.gmra.mrb[140].mxu1 %v7231_v18 }
 0x18e   : > { %v6600_v58 = vpop.f32.mrb[49].mxu0 }
 0x18f   : > { %v6601_v27 = vadd.f32 %v6600_v58, %v6599_v5  ;;  %v6602_v32 = vpop.f32.mrb[50].mxu0  ;;  %v8119_v51 = vadd.f32 %v6540_v13, %v8063_v61 }
 0x190   : > { %v6603_v53 = vpop.f32.mrb[51].mxu0 }
 0x191   : > { %v6541_v10 = vpop.f32.mrb[52].mxu1  ;;  %v8122_v20 = vadd.f32 %v6601_v27, %v8015_v59  ;;  %v6604_v21 = vadd.f32 %v6603_v53, %v6602_v32 }
 0x192   : > { %v6542_v9 = vpop.f32.mrb[53].mxu1 }
 0x193   : > { %v6543_v28 = vadd.f32 %v6542_v9, %v6541_v10  ;;  %v6544_v22 = vpop.f32.mrb[54].mxu1  ;;  %v8126_v15 = vadd.f32 %v6604_v21, %v8018_v3 }
 0x194   : > { %v6545_v16 = vpop.f32.mrb[55].mxu1 }
 0x195   : > { %v8129_v61 = vadd.f32 %v6543_v28, %v8076_v57  ;;  %v6546_v31 = vadd.f32 %v6545_v16, %v6544_v22  ;;  %v6605_v41 = vpop.f32.mrb[52].mxu0 }
 0x196   : > { %v6606_v42 = vpop.f32.mrb[53].mxu0 }
 0x197   : > { %v8132_v59 = vadd.f32 %v6546_v31, %v8082_v23  ;;  %v6607_v48 = vadd.f32 %v6606_v42, %v6605_v41  ;;  %v6608_v55 = vpop.f32.mrb[54].mxu0 }
 0x198   : > { %v6609_v60 = vpop.f32.mrb[55].mxu0 }
 0x199   : > { %v8135_v0 = vadd.f32 %v6607_v48, %v8028_v46  ;;  %v6610_v43 = vadd.f32 %v6609_v60, %v6608_v55  ;;  %v6547_v3 = vpop.f32.mrb[56].mxu1 }
 0x19a   : > { %v6548_v39 = vpop.f32.mrb[57].mxu1 }
 0x19b   : > { %v8138_v40 = vadd.f32 %v6610_v43, %v8031_v56  ;;  %v6549_v57 = vadd.f32 %v6548_v39, %v6547_v3  ;;  %v6550_v11 = vpop.f32.mrb[58].mxu1 }
 0x19c   : > { %v6551_v12 = vpop.f32.mrb[59].mxu1 }
 0x19d   : > { %v6611_v5 = vpop.f32.mrb[56].mxu0  ;;  %v8141_v13 = vadd.f32 %v6549_v57, %v8087_v52  ;;  %v6552_v23 = vadd.f32 %v6551_v12, %v6550_v11 }
 0x19e   : > { %v6612_v7 = vpop.f32.mrb[57].mxu0 }
 0x19f   : > { %v6613_v58 = vadd.f32 %v6612_v7, %v6611_v5  ;;  %v6614_v45 = vpop.f32.mrb[58].mxu0  ;;  %v8144_v46 = vadd.f32 %v6552_v23, %v8092_v63 }
 0x1a0   : > { %v6615_v27 = vpop.f32.mrb[59].mxu0 }
 0x1a1   : > { %v8147_v32 = vadd.f32 %v6613_v58, %v8041_v37  ;;  %v6616_v56 = vadd.f32 %v6615_v27, %v6614_v45  ;;  %v6553_v6 = vpop.f32.mrb[60].mxu1 }
 0x1a2   : > { %v6554_v18 = vpop.f32.mrb[61].mxu1 }
 0x1a3   : > { %v8150_v53 = vadd.f32 %v6616_v56, %v8045_v50  ;;  %v6555_v10 = vadd.f32 %v6554_v18, %v6553_v6  ;;  %v6556_v52 = vpop.f32.mrb[62].mxu1 }
 0x1a4   : > { %v6557_v21 = vpop.f32.mrb[63].mxu1 }
 0x1a5   : > { %v6617_v9 = vpop.f32.mrb[60].mxu0  ;;  %v8153_v33 = vadd.f32 %v6555_v10, %v8107_v30  ;;  %v6558_v28 = vadd.f32 %v6557_v21, %v6556_v52 }
 0x1a6   : > { %v6618_v63 = vpop.f32.mrb[61].mxu0 }
 0x1a7   : > { %v6619_v22 = vadd.f32 %v6618_v63, %v6617_v9  ;;  %v6620_v16 = vpop.f32.mrb[62].mxu0  ;;  %v8156_v37 = vadd.f32 %v6558_v28, %v8112_v38 }
 0x1a8   : > { %v6621_v31 = vpop.f32.mrb[63].mxu0 }
 0x1a9   : > { %v8159_v41 = vadd.f32 %v6619_v22, %v8054_v34  ;;  %v6622_v50 = vadd.f32 %v6621_v31, %v6620_v16  ;;  %v6559_v48 = vpop.f32.mrb[64].mxu1 }
 0x1aa   : > { %v6560_v55 = vpop.f32.mrb[65].mxu1 }
 0x1ab   : > { %v8162_v42 = vadd.f32 %v6622_v50, %v8061_v54  ;;  %v6561_v30 = vadd.f32 %v6560_v55, %v6559_v48  ;;  %v6562_v43 = vpop.f32.mrb[66].mxu1 }
 0x1ac   : > { %v6563_v39 = vpop.f32.mrb[67].mxu1 }
 0x1ad   : > { %v6623_v60 = vpop.f32.mrb[64].mxu0  ;;  %v8165_v38 = vadd.f32 %v6561_v30, %v7962_v49  ;;  %v6564_v12 = vadd.f32 %v6563_v39, %v6562_v43 }
 0x1ae   : > { %v6624_v3 = vpop.f32.mrb[65].mxu0 }
 0x1af   : > { %v6625_v57 = vadd.f32 %v6624_v3, %v6623_v60  ;;  %v6626_v11 = vpop.f32.mrb[66].mxu0  ;;  %v8171_v54 = vadd.f32 %v6564_v12, %v7970_v62 }
 0x1b0   : > { %v6627_v5 = vpop.f32.mrb[67].mxu0 }
 0x1b1   : > { %v8168_v34 = vadd.f32 %v6625_v57, %v8066_v24  ;;  %v6628_v23 = vadd.f32 %v6627_v5, %v6626_v11  ;;  %v6565_v58 = vpop.f32.mrb[68].mxu1 }
 0x1b2   : > { %v6566_v45 = vpop.f32.mrb[69].mxu1 }
 0x1b3   : > { %v8174_v7 = vadd.f32 %v6628_v23, %v8080_v35  ;;  %v6567_v56 = vadd.f32 %v6566_v45, %v6565_v58  ;;  %v6568_v6 = vpop.f32.mrb[70].mxu1 }
 0x1b4   : > { %v6569_v49 = vpop.f32.mrb[71].mxu1 }
 0x1b5   : > { %v6629_v27 = vpop.f32.mrb[68].mxu0  ;;  %v8177_v21 = vadd.f32 %v6567_v56, %v7977_v29  ;;  %v6570_v24 = vadd.f32 %v6569_v49, %v6568_v6 }
 0x1b6   : > { %v6630_v18 = vpop.f32.mrb[69].mxu0 }
 0x1b7   : > { %v6631_v10 = vadd.f32 %v6630_v18, %v6629_v27  ;;  %v6632_v52 = vpop.f32.mrb[70].mxu0  ;;  %v8183_v35 = vadd.f32 %v6570_v24, %v7981_v44 }
 0x1b8   : > { %v6633_v9 = vpop.f32.mrb[71].mxu0 }
 0x1b9   : > { %v8180_v62 = vadd.f32 %v6631_v10, %v8085_v47  ;;  %v6634_v28 = vadd.f32 %v6633_v9, %v6632_v52  ;;  %v6571_v16 = vpop.f32.mrb[72].mxu1 }
 0x1ba   : > { %v6572_v50 = vpop.f32.mrb[73].mxu1 }
 0x1bb   : > { %v8186_v63 = vadd.f32 %v6634_v28, %v8090_v1  ;;  %v6573_v29 = vadd.f32 %v6572_v50, %v6571_v16  ;;  %v6574_v60 = vpop.f32.mrb[74].mxu1 }
 0x1bc   : > { %v6575_v43 = vpop.f32.mrb[75].mxu1 }
 0x1bd   : > { %v6635_v22 = vpop.f32.mrb[72].mxu0  ;;  %v8192_v44 = vadd.f32 %v6573_v29, %v7990_v14  ;;  %v6576_v39 = vadd.f32 %v6575_v43, %v6574_v60 }
 0x1be   : > { %v6636_v31 = vpop.f32.mrb[73].mxu0 }
 0x1bf   : > { %v6637_v48 = vadd.f32 %v6636_v31, %v6635_v22  ;;  %v6638_v55 = vpop.f32.mrb[74].mxu0  ;;  %v8198_v57 = vadd.f32 %v6576_v39, %v7994_v26 }
 0x1c0   : > { %v6639_v30 = vpop.f32.mrb[75].mxu0 }
 0x1c1   : > { %v8189_v47 = vadd.f32 %v6637_v48, %v8097_v8  ;;  %v6640_v3 = vadd.f32 %v6639_v30, %v6638_v55 }
 0x1c3   : > { %v8195_v1 = vadd.f32 %v6640_v3, %v8102_v17 }
 0x1c5   : > { %v6641_v11 = vpop.f32.mrb[76].mxu0 }
 0x1c6   : > { %v6642_v12 = vpop.f32.mrb[77].mxu0 }
 0x1c7   : > { %v6643_v5 = vadd.f32 %v6642_v12, %v6641_v11  ;;  %v6644_v23 = vpop.f32.mrb[78].mxu0 }
 0x1c8   : > { %v6645_v58 = vpop.f32.mrb[79].mxu0 }
 0x1c9   : > { %v8201_v45 = vadd.f32 %v6643_v5, %v8105_v25  ;;  %v6646_v8 = vadd.f32 %v6645_v58, %v6644_v23 }
 0x1cb   : > { %v8204_v27 = vadd.f32 %v6646_v8, %v8110_v36 }
 0x1cd   : > { %v6647_v14 = vpop.f32.mrb[80].mxu0 }
 0x1ce   : > { %v6648_v56 = vpop.f32.mrb[81].mxu0  ;;  %v6577_v55 = vpop.f32.mrb[76].mxu1 }
 0x1cf   : > { %v6649_v6 = vadd.f32 %v6648_v56, %v6647_v14  ;;  %v6650_v17 = vpop.f32.mrb[82].mxu0 }
 0x1d0   : > { %v6651_v18 = vpop.f32.mrb[83].mxu0 }
 0x1d1   : > { %v8207_v26 = vadd.f32 %v6649_v6, %v8115_v2  ;;  %v6652_v49 = vadd.f32 %v6651_v18, %v6650_v17 }
 0x1d3   : > { %v8210_v10 = vadd.f32 %v6652_v49, %v8119_v51  ;;  %v6578_v51 = vpop.f32.mrb[77].mxu1 }
 0x1d4   : > { %v6579_v43 = vadd.f32 %v6578_v51, %v6577_v55  ;;  %v6580_v3 = vpop.f32.mrb[78].mxu1 }
 0x1d5   : > { %v6653_v52 = vpop.f32.mrb[84].mxu0  ;;  %v6581_v39 = vpop.f32.mrb[79].mxu1 }
 0x1d6   : > { %v6654_v24 = vpop.f32.mrb[85].mxu0  ;;  %v6582_v11 = vadd.f32 %v6581_v39, %v6580_v3 }
 0x1d7   : > { %v6655_v25 = vadd.f32 %v6654_v24, %v6653_v52  ;;  %v6656_v9 = vpop.f32.mrb[86].mxu0 }
 0x1d8   : > { %v6657_v28 = vpop.f32.mrb[87].mxu0  ;;  %v8228_v5 = vadd.f32 %v6582_v11, %v8005_v4 }
 0x1d9   : > { %v8213_v36 = vadd.f32 %v6655_v25, %v8129_v61  ;;  %v6658_v22 = vadd.f32 %v6657_v28, %v6656_v9 }
 0x1db   : > { %v8216_v16 = vadd.f32 %v6658_v22, %v8132_v59  ;;  %v8225_v59 = vadd.f32 %v6579_v43, %v8002_v19 }
 0x1dd   : > { %v6659_v31 = vpop.f32.mrb[88].mxu0 }
 0x1de   : > { %v6660_v50 = vpop.f32.mrb[89].mxu0 }
 0x1df   : > { %v6661_v2 = vadd.f32 %v6660_v50, %v6659_v31  ;;  %v6662_v48 = vpop.f32.mrb[90].mxu0 }
 0x1e0   : > { %v6663_v29 = vpop.f32.mrb[91].mxu0 }
 0x1e1   : > { %v8219_v60 = vadd.f32 %v6661_v2, %v8141_v13  ;;  %v6664_v30 = vadd.f32 %v6663_v29, %v6662_v48  ;;  %v6711_v13 = vpop.f32.mrb[80].mxu1 }
 0x1e2   : > { %v6712_v56 = vpop.f32.mrb[81].mxu1 }
 0x1e3   : > { %v8222_v61 = vadd.f32 %v6664_v30, %v8144_v46  ;;  %v6713_v46 = vadd.f32 %v6712_v56, %v6711_v13  ;;  %v6714_v18 = vpop.f32.mrb[82].mxu1 }
 0x1e4   : > { %v6715_v49 = vpop.f32.mrb[83].mxu1 }
 0x1e5   : > { %v6665_v12 = vpop.f32.mrb[92].mxu0  ;;  %v6716_v52 = vadd.f32 %v6715_v49, %v6714_v18  ;;  %v8237_v4 = vadd.f32 %v6713_v46, %v8122_v20 }
 0x1e6   : > { %v6666_v23 = vpop.f32.mrb[93].mxu0 }
 0x1e7   : > { %v6667_v58 = vadd.f32 %v6666_v23, %v6665_v12  ;;  %v6668_v8 = vpop.f32.mrb[94].mxu0  ;;  %v8240_v9 = vadd.f32 %v6716_v52, %v8126_v15 }
 0x1e8   : > { %v6669_v14 = vpop.f32.mrb[95].mxu0 }
 0x1e9   : > { %v8231_v6 = vadd.f32 %v6667_v58, %v8153_v33  ;;  %v6670_v17 = vadd.f32 %v6669_v14, %v6668_v8  ;;  %v6717_v33 = vpop.f32.mrb[84].mxu1 }
 0x1ea   : > { %v6718_v50 = vpop.f32.mrb[85].mxu1 }
 0x1eb   : > { %v8234_v19 = vadd.f32 %v6670_v17, %v8156_v37  ;;  %v6719_v37 = vadd.f32 %v6718_v50, %v6717_v33  ;;  %v6720_v55 = vpop.f32.mrb[86].mxu1 }
 0x1ec   : > { %v6721_v29 = vpop.f32.mrb[87].mxu1 }
 0x1ed   : > { %v6671_v24 = vpop.f32.mrb[96].mxu0  ;;  %v6722_v51 = vadd.f32 %v6721_v29, %v6720_v55  ;;  %v8249_v30 = vadd.f32 %v6719_v37, %v8135_v0  ;;  %v6723_v39 = vpop.f32.mrb[88].mxu1 }
 0x1ee   : > { %v6672_v25 = vpop.f32.mrb[97].mxu0  ;;  %v6724_v12 = vpop.f32.mrb[89].mxu1 }
 0x1ef   : > { %v6673_v28 = vadd.f32 %v6672_v25, %v6671_v24  ;;  %v6674_v22 = vpop.f32.mrb[98].mxu0  ;;  %v8252_v43 = vadd.f32 %v6722_v51, %v8138_v40  ;;  %v6725_v58 = vadd.f32 %v6724_v12, %v6723_v39  ;;  %v6726_v8 = vpop.f32.mrb[90].mxu1 }
 0x1f0   : > { %v6675_v31 = vpop.f32.mrb[99].mxu0  ;;  %v6727_v14 = vpop.f32.mrb[91].mxu1 }
 0x1f1   : > { %v8243_v2 = vadd.f32 %v6673_v28, %v8165_v38  ;;  %v6676_v48 = vadd.f32 %v6675_v31, %v6674_v22  ;;  %v6728_v56 = vadd.f32 %v6727_v14, %v6726_v8  ;;  %v8261_v40 = vadd.f32 %v6725_v58, %v8147_v32  ;;  %v6729_v49 = vpop.f32.mrb[92].mxu1 }
 0x1f2   : > { %v6730_v25 = vpop.f32.mrb[93].mxu1 }
 0x1f3   : > { %v8246_v20 = vadd.f32 %v6676_v48, %v8171_v54  ;;  %v8264_v46 = vadd.f32 %v6728_v56, %v8150_v53  ;;  %v6731_v28 = vadd.f32 %v6730_v25, %v6729_v49  ;;  %v6732_v22 = vpop.f32.mrb[94].mxu1 }
 0x1f4   : > { %v6733_v31 = vpop.f32.mrb[95].mxu1 }
 0x1f5   : > { %v6677_v15 = vpop.f32.mrb[100].mxu0  ;;  %v6734_v50 = vadd.f32 %v6733_v31, %v6732_v22  ;;  %v5014_v53 = vadd.f32 %v6731_v28, %v8159_v41 }
 0x1f6   : > { %v6678_v3 = vpop.f32.mrb[101].mxu0  ;;  %v6735_v37 = vpop.f32.mrb[96].mxu1 }
 0x1f7   : > { %v6679_v11 = vadd.f32 %v6678_v3, %v6677_v15  ;;  %v6680_v38 = vpop.f32.mrb[102].mxu0  ;;  %v8274_v48 = vadd.f32 %v6734_v50, %v8162_v42  ;;  %v6736_v55 = vpop.f32.mrb[97].mxu1 }
 0x1f8   : > { %v6681_v23 = vpop.f32.mrb[103].mxu0  ;;  %v6737_v29 = vadd.f32 %v6736_v55, %v6735_v37  ;;  %v6738_v51 = vpop.f32.mrb[98].mxu1 }
 0x1f9   : > { %v8255_v13 = vadd.f32 %v6679_v11, %v8177_v21  ;;  %v6682_v54 = vadd.f32 %v6681_v23, %v6680_v38  ;;  %v6739_v15 = vpop.f32.mrb[99].mxu1 }
 0x1fa   : > { %v6740_v3 = vadd.f32 %v6739_v15, %v6738_v51 }
 0x1fb   : > { %v8258_v0 = vadd.f32 %v6682_v54, %v8183_v35 }
 0x1fc   : > { %v8280_v39 = vadd.f32 %v6740_v3, %v8174_v7 }
 0x1fd   : > { %v6683_v17 = vpop.f32.mrb[104].mxu0 }
 0x1fe   : > { %v6684_v18 = vpop.f32.mrb[105].mxu0  ;;  %v6741_v11 = vpop.f32.mrb[100].mxu1 }
 0x1ff   : > { %v6685_v52 = vadd.f32 %v6684_v18, %v6683_v17  ;;  %v6686_v24 = vpop.f32.mrb[106].mxu0 }
 0x200   : > { %v6687_v21 = vpop.f32.mrb[107].mxu0 }
 0x201   : > { %v8267_v33 = vadd.f32 %v6685_v52, %v8192_v44  ;;  %v6688_v35 = vadd.f32 %v6687_v21, %v6686_v24  ;;  %v8277_v44 = vadd.f32 %v6737_v29, %v8168_v34 }
 0x203   : > { %v8270_v32 = vadd.f32 %v6688_v35, %v8198_v57  ;;  %v6742_v57 = vpop.f32.mrb[101].mxu1 }
 0x204   : > { %v6743_v38 = vadd.f32 %v6742_v57, %v6741_v11  ;;  %v6744_v12 = vpop.f32.mrb[102].mxu1 }
 0x205   : > { %v6689_v41 = vpop.f32.mrb[108].mxu0  ;;  %v6745_v23 = vpop.f32.mrb[103].mxu1 }
 0x206   : > { %v6690_v42 = vpop.f32.mrb[109].mxu0  ;;  %v6746_v58 = vadd.f32 %v6745_v23, %v6744_v12  ;;  %v8283_v14 = vadd.f32 %v6743_v38, %v8180_v62  ;;  %v6747_v18 = vpop.f32.mrb[104].mxu1 }
 0x207   : > { %v6691_v8 = vadd.f32 %v6690_v42, %v6689_v41  ;;  %v6692_v54 = vpop.f32.mrb[110].mxu0  ;;  %v6748_v52 = vpop.f32.mrb[105].mxu1 }
 0x208   : > { %v6693_v56 = vpop.f32.mrb[111].mxu0  ;;  %v8289_v7 = vadd.f32 %v6746_v58, %v8186_v63  ;;  %v6749_v24 = vadd.f32 %v6748_v52, %v6747_v18  ;;  %v6750_v25 = vpop.f32.mrb[106].mxu1 }
 0x209   : > { %v8286_v34 = vadd.f32 %v6691_v8, %v8225_v59  ;;  %v6694_v17 = vadd.f32 %v6693_v56, %v6692_v54  ;;  %v6751_v28 = vpop.f32.mrb[107].mxu1 }
 0x20a   : > { %v6752_v35 = vadd.f32 %v6751_v28, %v6750_v25  ;;  %v8297_v63 = vadd.f32 %v6749_v24, %v8189_v47 }
 0x20b   : > { %v8292_v49 = vadd.f32 %v6694_v17, %v8228_v5 }
 0x20d   : > { %v6849_v21 = vpop.f32.mrb[112].mxu0 }
 0x20e   : > { %v5159_v62 = vadd.f32 %v6849_v21, %v8249_v30  ;;  %v5150_v22 = vpop.f32.mrb[113].mxu0  ;;  %v8309_v30 = vadd.f32 %v6752_v35, %v8195_v1  ;;  %v6753_v55 = vpop.f32.mrb[108].mxu1 }
 0x20f   : > { %v5151_v59 = vadd.f32 %v5150_v22, %v8237_v4  ;;  %v6850_v31 = vpop.f32.mrb[114].mxu0  ;;  %v6754_v15 = vpop.f32.mrb[109].mxu1 }
 0x210   : > { %v5162_v50 = vadd.f32 %v6850_v31, %v8252_v43  ;;  %v5153_v37 = vpop.f32.mrb[115].mxu0  ;;  %v5317_v3 = vmul.f32 %v5159_v62, %v5159_v62  ;;  %v6755_v11 = vadd.f32 %v6754_v15, %v6753_v55  ;;  %v6756_v57 = vpop.f32.mrb[110].mxu1 }
 0x211   : > { %v5154_v5 = vadd.f32 %v5153_v37, %v8240_v9  ;;  %v5315_v47 = vmul.f32 %v5151_v59, %v5151_v59  ;;  %v6757_v9 = vpop.f32.mrb[111].mxu1 }
 0x212   : > { %v6257_v4 = vpack.c.bf16 %v5162_v50, %v5159_v62  ;;  %v5318_v23 = vmul.f32 %v5162_v50, %v5162_v50  ;;  %v6758_v58 = vadd.f32 %v6757_v9, %v6756_v57  ;;  %v5046_v24 = vadd.f32 %v6755_v11, %v8201_v45 }
 0x213   : > { %v5277_v29 = vadd.f32 %v5154_v5, %v5151_v59  ;;  %v5316_v51 = vmul.f32 %v5154_v5, %v5154_v5  ;;  %v6252_v43 = vpack.c.bf16 %v5154_v5, %v5151_v59 }
 0x214   : > { %6344 = vst [vmem:[%s8305_s18 + $0x8] sm:$0xff] %v6257_v4   ;;  %v5049_v22 = vadd.f32 %v6758_v58, %v8204_v27 }
 0x215   : > { %v5278_v38 = vadd.f32 %v5277_v29, %v5159_v62  ;;  %v5347_v12 = vadd.f32 %v5316_v51, %v5315_v47  ;;  %6253 = vst [vmem:[%s8305_s18] sm:$0xff] %v6252_v43   ;;  %v6853_v41 = vpop.f32.mrb[116].mxu0 }
 0x216   : > { %v5175_v42 = vadd.f32 %v6853_v41, %v5014_v53  ;;  %v5166_v1 = vpop.f32.mrb[117].mxu0  ;;  %v6759_v35 = vpop.f32.mrb[112].mxu1 }
 0x217   : > { %v5348_v8 = vadd.f32 %v5347_v12, %v5317_v3  ;;  %v5167_v54 = vadd.f32 %v5166_v1, %v8261_v40  ;;  %v5279_v56 = vadd.f32 %v5278_v38, %v5162_v50  ;;  %v6854_v17 = vpop.f32.mrb[118].mxu0  ;;  %v6760_v37 = vpop.f32.mrb[113].mxu1 }
 0x218   : > { %v5178_v18 = vadd.f32 %v6854_v17, %v8274_v48  ;;  %v5169_v52 = vpop.f32.mrb[119].mxu0  ;;  %v5321_v48 = vmul.f32 %v5175_v42, %v5175_v42  ;;  %v6761_v5 = vadd.f32 %v6760_v37, %v6759_v35  ;;  %v6762_v4 = vpop.f32.mrb[114].mxu1 }
 0x219   : > { %v5280_v25 = vadd.f32 %v5279_v56, %v5167_v54  ;;  %v5319_v21 = vmul.f32 %v5167_v54, %v5167_v54  ;;  %v5349_v28 = vadd.f32 %v5348_v8, %v5318_v23  ;;  %v5170_v62 = vadd.f32 %v5169_v52, %v8264_v46  ;;  %v6763_v51 = vpop.f32.mrb[115].mxu1 }
 0x21a   : > { %v6267_v53 = vpack.c.bf16 %v5178_v18, %v5175_v42  ;;  %v5322_v29 = vmul.f32 %v5178_v18, %v5178_v18  ;;  %v6764_v27 = vadd.f32 %v6763_v51, %v6762_v4  ;;  %v5054_v41 = vadd.f32 %v6761_v5, %v8207_v26 }
 0x21b   : > { %v5350_v59 = vadd.f32 %v5349_v28, %v5319_v21  ;;  %v5281_v40 = vadd.f32 %v5280_v25, %v5170_v62  ;;  %v5320_v31 = vmul.f32 %v5170_v62, %v5170_v62  ;;  %v6262_v50 = vpack.c.bf16 %v5170_v62, %v5167_v54 }
 0x21c   : > { %6346 = vst [vmem:[%s8305_s18 + $0x18] sm:$0xff] %v6267_v53   ;;  %v5057_v58 = vadd.f32 %v6764_v27, %v8210_v10 }
 0x21d   : > { %v5282_v45 = vadd.f32 %v5281_v40, %v5175_v42  ;;  %v5351_v55 = vadd.f32 %v5350_v59, %v5320_v31  ;;  %6345 = vst [vmem:[%s8305_s18 + $0x10] sm:$0xff] %v6262_v50   ;;  %v6857_v47 = vpop.f32.mrb[120].mxu0 }
 0x21e   : > { %v5191_v46 = vadd.f32 %v6857_v47, %v8283_v14  ;;  %v5182_v43 = vpop.f32.mrb[121].mxu0  ;;  %v6765_v8 = vpop.f32.mrb[116].mxu1 }
 0x21f   : > { %v5352_v15 = vadd.f32 %v5351_v55, %v5321_v48  ;;  %v5183_v3 = vadd.f32 %v5182_v43, %v8277_v44  ;;  %v5283_v11 = vadd.f32 %v5282_v45, %v5178_v18  ;;  %v6858_v57 = vpop.f32.mrb[122].mxu0  ;;  %v6766_v18 = vpop.f32.mrb[117].mxu1 }
 0x220   : > { %v5194_v38 = vadd.f32 %v6858_v57, %v8289_v7  ;;  %v5185_v12 = vpop.f32.mrb[123].mxu0  ;;  %v5325_v7 = vmul.f32 %v5191_v46, %v5191_v46  ;;  %v6767_v52 = vadd.f32 %v6766_v18, %v6765_v8  ;;  %v6768_v25 = vpop.f32.mrb[118].mxu1 }
 0x221   : > { %v5284_v23 = vadd.f32 %v5283_v11, %v5183_v3  ;;  %v5323_v9 = vmul.f32 %v5183_v3, %v5183_v3  ;;  %v5353_v42 = vadd.f32 %v5352_v15, %v5322_v29  ;;  %v5186_v1 = vadd.f32 %v5185_v12, %v8280_v39  ;;  %v6769_v53 = vpop.f32.mrb[119].mxu1 }
 0x222   : > { %v6277_v14 = vpack.c.bf16 %v5194_v38, %v5191_v46  ;;  %v5326_v62 = vmul.f32 %v5194_v38, %v5194_v38  ;;  %v6770_v59 = vadd.f32 %v6769_v53, %v6768_v25  ;;  %v5062_v5 = vadd.f32 %v6767_v52, %v8213_v36 }
 0x223   : > { %v5354_v54 = vadd.f32 %v5353_v42, %v5323_v9  ;;  %v5285_v44 = vadd.f32 %v5284_v23, %v5186_v1  ;;  %v5324_v56 = vmul.f32 %v5186_v1, %v5186_v1  ;;  %v6272_v17 = vpack.c.bf16 %v5186_v1, %v5183_v3 }
 0x224   : > { %6348 = vst [vmem:[%s8305_s18 + $0x28] sm:$0xff] %v6277_v14  }
 0x225   : > { %v5286_v26 = vadd.f32 %v5285_v44, %v5191_v46  ;;  %v5355_v21 = vadd.f32 %v5354_v54, %v5324_v56  ;;  %6347 = vst [vmem:[%s8305_s18 + $0x20] sm:$0xff] %v6272_v17   ;;  %v6861_v28 = vpop.f32.mrb[124].mxu0 }
 0x226   : > { %v5207_v39 = vadd.f32 %v6861_v28, %v5046_v24  ;;  %v5198_v35 = vpop.f32.mrb[125].mxu0  ;;  %v5065_v24 = vadd.f32 %v6770_v59, %v8216_v16  ;;  %v6771_v51 = vpop.f32.mrb[120].mxu1 }
 0x227   : > { %v5356_v10 = vadd.f32 %v5355_v21, %v5325_v7  ;;  %v5199_v40 = vadd.f32 %v5198_v35, %v8297_v63  ;;  %v5287_v31 = vadd.f32 %v5286_v26, %v5194_v38  ;;  %v6862_v50 = vpop.f32.mrb[126].mxu0  ;;  %v6772_v15 = vpop.f32.mrb[121].mxu1 }
 0x228   : > { %v5210_v37 = vadd.f32 %v6862_v50, %v5049_v22  ;;  %v5201_v48 = vpop.f32.mrb[127].mxu0  ;;  %v5329_v22 = vmul.f32 %v5207_v39, %v5207_v39  ;;  %v6773_v3 = vadd.f32 %v6772_v15, %v6771_v51  ;;  %v6774_v11 = vpop.f32.mrb[122].mxu1 }
 0x229   : > { %v5288_v4 = vadd.f32 %v5287_v31, %v5199_v40  ;;  %v5327_v45 = vmul.f32 %v5199_v40, %v5199_v40  ;;  %v5357_v55 = vadd.f32 %v5356_v10, %v5326_v62  ;;  %v5202_v47 = vadd.f32 %v5201_v48, %v8309_v30  ;;  %v6775_v23 = vpop.f32.mrb[123].mxu1 }
 0x22a   : > { %v6287_v29 = vpack.c.bf16 %v5210_v37, %v5207_v39  ;;  %v5330_v12 = vmul.f32 %v5210_v37, %v5210_v37  ;;  %v6776_v42 = vadd.f32 %v6775_v23, %v6774_v11  ;;  %v5070_v56 = vadd.f32 %v6773_v3, %v8219_v60 }
 0x22b   : > { %v5358_v46 = vadd.f32 %v5357_v55, %v5327_v45  ;;  %v5289_v43 = vadd.f32 %v5288_v4, %v5202_v47  ;;  %v5328_v63 = vmul.f32 %v5202_v47, %v5202_v47  ;;  %v6282_v27 = vpack.c.bf16 %v5202_v47, %v5199_v40 }
 0x22c   : > { %6350 = vst [vmem:[%s8305_s18 + $0x38] sm:$0xff] %v6287_v29   ;;  %v5073_v26 = vadd.f32 %v6776_v42, %v8222_v61 }
 0x22d   : > { %v5290_v36 = vadd.f32 %v5289_v43, %v5207_v39  ;;  %v5359_v57 = vadd.f32 %v5358_v46, %v5328_v63  ;;  %6349 = vst [vmem:[%s8305_s18 + $0x30] sm:$0xff] %v6282_v27   ;;  %v6865_v38 = vpop.f32.mrb[128].mxu0 }
 0x22e   : > { %v5223_v30 = vadd.f32 %v6865_v38, %v5062_v5  ;;  %v5214_v9 = vpop.f32.mrb[129].mxu0  ;;  %v6777_v21 = vpop.f32.mrb[124].mxu1 }
 0x22f   : > { %v5360_v16 = vadd.f32 %v5359_v57, %v5329_v22  ;;  %v5215_v1 = vadd.f32 %v5214_v9, %v5054_v41  ;;  %v5291_v14 = vadd.f32 %v5290_v36, %v5210_v37  ;;  %v6866_v8 = vpop.f32.mrb[130].mxu0  ;;  %v6778_v39 = vpop.f32.mrb[125].mxu1 }
 0x230   : > { %v5226_v54 = vadd.f32 %v6866_v8, %v5065_v24  ;;  %v5217_v44 = vpop.f32.mrb[131].mxu0  ;;  %v5333_v35 = vmul.f32 %v5223_v30, %v5223_v30  ;;  %v6779_v59 = vadd.f32 %v6778_v39, %v6777_v21  ;;  %v6780_v10 = vpop.f32.mrb[126].mxu1 }
 0x231   : > { %v5292_v17 = vadd.f32 %v5291_v14, %v5215_v1  ;;  %v5331_v18 = vmul.f32 %v5215_v1, %v5215_v1  ;;  %v5361_v7 = vadd.f32 %v5360_v16, %v5330_v12  ;;  %v5218_v52 = vadd.f32 %v5217_v44, %v5057_v58  ;;  %v6781_v37 = vpop.f32.mrb[127].mxu1 }
 0x232   : > { %v6297_v25 = vpack.c.bf16 %v5226_v54, %v5223_v30  ;;  %v5334_v50 = vmul.f32 %v5226_v54, %v5226_v54  ;;  %v6782_v48 = vadd.f32 %v6781_v37, %v6780_v10  ;;  %v5078_v61 = vadd.f32 %v6779_v59, %v8231_v6 }
 0x233   : > { %v5362_v28 = vadd.f32 %v5361_v7, %v5331_v18  ;;  %v5293_v62 = vadd.f32 %v5292_v17, %v5218_v52  ;;  %v5332_v53 = vmul.f32 %v5218_v52, %v5218_v52  ;;  %v6292_v41 = vpack.c.bf16 %v5218_v52, %v5215_v1 }
 0x234   : > { %6352 = vst [vmem:[%s8305_s18 + $0x48] sm:$0xff] %v6297_v25   ;;  %v5081_v46 = vadd.f32 %v6782_v48, %v8234_v19 }
 0x235   : > { %v5294_v40 = vadd.f32 %v5293_v62, %v5223_v30  ;;  %v5363_v60 = vadd.f32 %v5362_v28, %v5332_v53  ;;  %6351 = vst [vmem:[%s8305_s18 + $0x40] sm:$0xff] %v6292_v41   ;;  %v6869_v31 = vpop.f32.mrb[132].mxu0 }
 0x236   : > { %v5230_v58 = vpop.f32.mrb[133].mxu0  ;;  %v5239_v29 = vadd.f32 %v6869_v31, %v5078_v61  ;;  %v6783_v27 = vpop.f32.mrb[128].mxu1 }
 0x237   : > { %v5364_v5 = vadd.f32 %v5363_v60, %v5333_v35  ;;  %v5231_v4 = vadd.f32 %v5230_v58, %v5070_v56  ;;  %v6870_v45 = vpop.f32.mrb[134].mxu0  ;;  %v5295_v55 = vadd.f32 %v5294_v40, %v5226_v54  ;;  %v6784_v3 = vpop.f32.mrb[129].mxu1 }
 0x238   : > { %v5233_v47 = vpop.f32.mrb[135].mxu0  ;;  %v5242_v22 = vadd.f32 %v6870_v45, %v5081_v46  ;;  %v6785_v57 = vadd.f32 %v6784_v3, %v6783_v27  ;;  %v6786_v38 = vpop.f32.mrb[130].mxu1  ;;  %v5337_v30 = vmul.f32 %v5239_v29, %v5239_v29 }
 0x239   : > { %v5335_v24 = vmul.f32 %v5231_v4, %v5231_v4  ;;  %v5365_v51 = vadd.f32 %v5364_v5, %v5334_v50  ;;  %v5296_v43 = vadd.f32 %v5295_v55, %v5231_v4  ;;  %v5234_v63 = vadd.f32 %v5233_v47, %v5073_v26  ;;  %v6787_v9 = vpop.f32.mrb[131].mxu1 }
 0x23a   : > { %v6307_v12 = vpack.c.bf16 %v5242_v22, %v5239_v29  ;;  %v6788_v1 = vadd.f32 %v6787_v9, %v6786_v38  ;;  %v5086_v14 = vadd.f32 %v6785_v57, %v8243_v2  ;;  %v5338_v54 = vmul.f32 %v5242_v22, %v5242_v22 }
 0x23b   : > { %v5366_v15 = vadd.f32 %v5365_v51, %v5335_v24  ;;  %v5297_v11 = vadd.f32 %v5296_v43, %v5234_v63  ;;  %v5336_v36 = vmul.f32 %v5234_v63, %v5234_v63  ;;  %v6302_v6 = vpack.c.bf16 %v5234_v63, %v5231_v4 }
 0x23c   : > { %6354 = vst [vmem:[%s8305_s18 + $0x58] sm:$0xff] %v6307_v12   ;;  %v5089_v7 = vadd.f32 %v6788_v1, %v8246_v20 }
 0x23d   : > { %v6873_v23 = vpop.f32.mrb[136].mxu0  ;;  %v5298_v42 = vadd.f32 %v5297_v11, %v5239_v29  ;;  %v5367_v16 = vadd.f32 %v5366_v15, %v5336_v36  ;;  %6353 = vst [vmem:[%s8305_s18 + $0x50] sm:$0xff] %v6302_v6  }
 0x23e   : > { %v5246_v19 = vpop.f32.mrb[137].mxu0  ;;  %v6789_v25 = vpop.f32.mrb[132].mxu1 }
 0x23f   : > { %v6874_v8 = vpop.f32.mrb[138].mxu0  ;;  %v5368_v44 = vadd.f32 %v5367_v16, %v5337_v30  ;;  %v5299_v56 = vadd.f32 %v5298_v42, %v5242_v22  ;;  %v5247_v18 = vadd.f32 %v5246_v19, %v5086_v14  ;;  %v6790_v62 = vpop.f32.mrb[133].mxu1 }
 0x240   : > { %v5249_v17 = vpop.f32.mrb[139].mxu0  ;;  %v6791_v53 = vadd.f32 %v6790_v62, %v6789_v25  ;;  %v6792_v39 = vpop.f32.mrb[134].mxu1 }
 0x241   : > { %v5369_v52 = vadd.f32 %v5368_v44, %v5338_v54  ;;  %v5300_v26 = vadd.f32 %v5299_v56, %v5247_v18  ;;  %v5339_v21 = vmul.f32 %v5247_v18, %v5247_v18  ;;  %v5250_v28 = vadd.f32 %v5249_v17, %v5089_v7  ;;  %v6793_v59 = vpop.f32.mrb[135].mxu1 }
 0x242   : > { %v5094_v40 = vadd.f32 %v6791_v53, %v8255_v13  ;;  %v6794_v60 = vadd.f32 %v6793_v59, %v6792_v39 }
 0x243   : > { %v5370_v41 = vadd.f32 %v5369_v52, %v5339_v21  ;;  %v5301_v35 = vadd.f32 %v5300_v26, %v5250_v28  ;;  %v5340_v2 = vmul.f32 %v5250_v28, %v5250_v28  ;;  %v6312_v10 = vpack.c.bf16 %v5250_v28, %v5247_v18 }
 0x244   : > { %v5255_v20 = vadd.f32 %v6873_v23, %v5094_v40  ;;  %v5097_v50 = vadd.f32 %v6794_v60, %v8258_v0 }
 0x245   : > { %v5371_v31 = vadd.f32 %v5370_v41, %v5340_v2  ;;  %6355 = vst [vmem:[%s8305_s18 + $0x60] sm:$0xff] %v6312_v10  }
 0x246   : > { %v5341_v37 = vmul.f32 %v5255_v20, %v5255_v20  ;;  %v5258_v58 = vadd.f32 %v6874_v8, %v5097_v50  ;;  %v5302_v48 = vadd.f32 %v5301_v35, %v5255_v20  ;;  %v6795_v5 = vpop.f32.mrb[136].mxu1 }
 0x247   : > { %v6796_v61 = vpop.f32.mrb[137].mxu1 }
 0x248   : > { %v5342_v4 = vmul.f32 %v5258_v58, %v5258_v58  ;;  %v6317_v45 = vpack.c.bf16 %v5258_v58, %v5255_v20  ;;  %v5372_v55 = vadd.f32 %v5371_v31, %v5341_v37  ;;  %v6797_v47 = vadd.f32 %v6796_v61, %v6795_v5  ;;  %v6798_v29 = vpop.f32.mrb[138].mxu1 }
 0x249   : > { %v6799_v24 = vpop.f32.mrb[139].mxu1  ;;  %v5303_v51 = vadd.f32 %v5302_v48, %v5258_v58 }
 0x24a   : > { %6356 = vst [vmem:[%s8305_s18 + $0x68] sm:$0xff] %v6317_v45   ;;  %v6800_v13 = vadd.f32 %v6799_v24, %v6798_v29  ;;  %v5102_v46 = vadd.f32 %v6797_v47, %v8267_v33  ;;  %v5373_v43 = vadd.f32 %v5372_v55, %v5342_v4 }
 0x24c   : > { %v5105_v63 = vadd.f32 %v6800_v13, %v8270_v32 }
 0x254   : > { %v6877_v0 = vpop.f32.mrb[140].mxu0 }
 0x255   : > { %v5262_v27 = vpop.f32.mrb[141].mxu0 }
 0x256   : > { %v5263_v15 = vadd.f32 %v5262_v27, %v5102_v46  ;;  %v6878_v22 = vpop.f32.mrb[142].mxu0 }
 0x257   : > { %v5265_v3 = vpop.f32.mrb[143].mxu0 }
 0x258   : > { %v5304_v11 = vadd.f32 %v5303_v51, %v5263_v15  ;;  %v5343_v36 = vmul.f32 %v5263_v15, %v5263_v15  ;;  %v5266_v6 = vadd.f32 %v5265_v3, %v5105_v63 }
 0x25a   : > { %v5374_v57 = vadd.f32 %v5373_v43, %v5343_v36  ;;  %v5305_v38 = vadd.f32 %v5304_v11, %v5266_v6  ;;  %v5344_v12 = vmul.f32 %v5266_v6, %v5266_v6  ;;  %v6322_v23 = vpack.c.bf16 %v5266_v6, %v5263_v15 }
 0x25c   : > { %v5375_v42 = vadd.f32 %v5374_v57, %v5344_v12  ;;  %6357 = vst [vmem:[%s8305_s18 + $0x70] sm:$0xff] %v6322_v23  }
 0x260   : > { %v6801_v30 = vpop.f32.mrb[140].mxu1 }
 0x261   : > { %v6802_v9 = vpop.f32.mrb[141].mxu1 }
 0x262   : > { %v6803_v33 = vadd.f32 %v6802_v9, %v6801_v30  ;;  %v6804_v32 = vpop.f32.mrb[142].mxu1 }
 0x263   : > { %v6805_v16 = vpop.f32.mrb[143].mxu1 }
 0x264   : > { %v5110_v19 = vadd.f32 %v6803_v33, %v8286_v34  ;;  %v6806_v1 = vadd.f32 %v6805_v16, %v6804_v32 }
 0x266   : > { %v5271_v14 = vadd.f32 %v6877_v0, %v5110_v19  ;;  %v5113_v8 = vadd.f32 %v6806_v1, %v8292_v49 }
 0x268   : > { %v5306_v54 = vadd.f32 %v5305_v38, %v5271_v14  ;;  %v5345_v44 = vmul.f32 %v5271_v14, %v5271_v14  ;;  %v5274_v56 = vadd.f32 %v6878_v22, %v5113_v8 }
 0x26a   : > { %v5376_v17 = vadd.f32 %v5375_v42, %v5345_v44  ;;  %v5307_v18 = vadd.f32 %v5306_v54, %v5274_v56  ;;  %v5346_v7 = vmul.f32 %v5274_v56, %v5274_v56  ;;  %v6327_v52 = vpack.c.bf16 %v5274_v56, %v5271_v14 }
 0x26c   : > { %v5308_v25 = vrot.slane %v5307_v18, 4  ;;  %v5377_v26 = vadd.f32 %v5376_v17, %v5346_v7  ;;  %6358 = vst [vmem:[%s8305_s18 + $0x78] sm:$0xff] %v6327_v52  }
 0x26e   : > { %v5309_v21 = vadd.f32 %v5308_v25, %v5307_v18  ;;  %v5378_v28 = vrot.slane %v5377_v26, 4 }
 0x270   : > { %v5310_v62 = vrot.slane %v5309_v21, 2  ;;  %v5379_v53 = vadd.f32 %v5378_v28, %v5377_v26 }
 0x272   : > { %v5311_v34 = vadd.f32 %v5310_v62, %v5309_v21  ;;  %v5380_v41 = vrot.slane %v5379_v53, 2 }
 0x274   : > { %v5312_v39 = vrot.slane %v5311_v34, 1  ;;  %v5381_v35 = vadd.f32 %v5380_v41, %v5379_v53 }
 0x276   : > { %v5313_v49 = vadd.f32 %v5312_v39, %v5311_v34  ;;  %v5382_v2 = vrot.slane %v5381_v35, 1 }
 0x278   : > { %5314 = vst [vmem:[%s436_s24] sm:$0x1] %v5313_v49  ;;  %v5383_v59 = vadd.f32 %v5382_v2, %v5381_v35 }
 0x27a   : > { %5384 = vst [vmem:[%s436_s24 + $0x1] sm:$0x1] %v5383_v59 }
 0x27b PF: > { %s17_s1 = sadd.s32 1, %s7258_s1   ;;  %s8382_s21 = smov %s7254_s22 }
 0x27c   : > { %p14_p5 = scmp.ge.s32.totalorder %s17_s1, 4   ;;  %s8383_s22 = smov %s8385_s2 }
 0x27e   :  { %16 = sbr.rel (!%p14_p5) target bundleno = 2 (0x2), region = 91 }

</bundles_post_ra>
